<compile_context>
chip_gen: v5e
topology: v5e:2x2
jax: 0.10.0
libtpu: 0.0.40
codegen_flags: <defaults>
</compile_context>

<pallas_src>
import functools

import jax
import jax.numpy as jnp
from jax.experimental import pallas as pl
from jax.experimental.pallas import tpu as pltpu


LEAKY_SLOPE = 0.02


def _mm_bias_act_kernel(x_ref, w_ref, b_ref, o_ref, acc_ref, *,
                        negative_slope, apply_act):
    """One K-tile of: o = act(x @ w + b).  Grid axis 0 iterates K tiles."""
    k = pl.program_id(0)

    @pl.when(k == 0)
    def _():
        acc_ref[...] = jnp.zeros_like(acc_ref)

    acc_ref[...] += jnp.dot(x_ref[...], w_ref[...],
                            preferred_element_type=jnp.float32)

    @pl.when(k == pl.num_programs(0) - 1)
    def _():
        y = acc_ref[...] + b_ref[...]
        if apply_act:
            y = jnp.where(y >= 0, y, negative_slope * y)
        o_ref[...] = y.astype(o_ref.dtype)


def matmul_bias_act(x, w, b, *, tk, apply_act=True,
                    negative_slope=LEAKY_SLOPE):
    """Fused y = leaky_relu(x @ w + b) (activation optional) on the MXU.

    x: (M, K), w: (K, N), b: (N,).  K is tiled by `tk` (must divide K);
    M and N use full-extent, lane-dense blocks (output resident in VMEM).
    """
    M, K = x.shape
    K2, N = w.shape
    assert K == K2 and K % tk == 0, (x.shape, w.shape, tk)
    nk = K // tk

    kernel = functools.partial(_mm_bias_act_kernel,
                               negative_slope=negative_slope,
                               apply_act=apply_act)
    return pl.pallas_call(
        kernel,
        out_shape=jax.ShapeDtypeStruct((M, N), x.dtype),
        grid_spec=pltpu.PrefetchScalarGridSpec(
            num_scalar_prefetch=0,
            grid=(nk,),
            in_specs=[
                pl.BlockSpec((M, tk), lambda k: (0, k)),
                pl.BlockSpec((tk, N), lambda k: (k, 0)),
                pl.BlockSpec((1, N), lambda k: (0, 0)),
            ],
            out_specs=pl.BlockSpec((M, N), lambda k: (0, 0)),
            scratch_shapes=[pltpu.VMEM((M, N), jnp.float32)],
        ),
        compiler_params=pltpu.CompilerParams(
            dimension_semantics=("arbitrary",)),   # K is a reduction axis
    )(x, w, b.reshape(1, N))


def _im2col(x, k, stride, pad):
    """NCHW -> (B*Ho*Wo, C*k*k) patches, column order (C, kh, kw) à la torch."""
    B, C, H, W = x.shape
    Ho = (H + 2 * pad - k) // stride + 1
    Wo = (W + 2 * pad - k) // stride + 1
    xp = jnp.pad(x, ((0, 0), (0, 0), (pad, pad), (pad, pad)))
    r = (jnp.arange(Ho) * stride)[:, None] + jnp.arange(k)[None, :]   # (Ho, k)
    c = (jnp.arange(Wo) * stride)[:, None] + jnp.arange(k)[None, :]   # (Wo, k)
    # advanced indexing -> (B, C, Ho, Wo, k, k)
    patches = xp[:, :, r[:, None, :, None], c[None, :, None, :]]
    patches = patches.transpose(0, 2, 3, 1, 4, 5)        # (B, Ho, Wo, C, k, k)
    return patches.reshape(B * Ho * Wo, C * k * k), Ho, Wo


def discriminator_forward(img, params):
    """Pallas forward pass matching Discriminator.forward (w_distance=True)."""
    B = img.shape[0]

    # Conv1 (C_in -> 64) as im2col + fused matmul/bias/LeakyReLU.
    p1, ho1, wo1 = _im2col(img, 4, 2, 1)                        # (B*14*14, 16)
    w1m = params["w1"].reshape(64, -1).T                        # (16, 64)
    y1 = matmul_bias_act(p1, w1m, params["b1"], tk=w1m.shape[0])
    y1 = y1.reshape(B, ho1, wo1, 64).transpose(0, 3, 1, 2)      # (B,64,14,14)

    # Conv2 (64 -> 128).
    p2, ho2, wo2 = _im2col(y1, 4, 2, 1)                         # (B*7*7, 1024)
    w2m = params["w2"].reshape(128, -1).T                       # (1024, 128)
    y2 = matmul_bias_act(p2, w2m, params["b2"], tk=1024)        # (B*49, 128)

    # Reshape layer: zero-cost metadata reshape (plus NHWC->NCHW flatten to
    # match torch's .view on contiguous NCHW).  No copy kernel.
    y2 = y2.reshape(B, ho2, wo2, 128).transpose(0, 3, 1, 2).reshape(B, -1)

    # Linear(6272 -> 1024) + LeakyReLU.  K tiled 7 x 896 so each weight tile
    # is ~3.5 MiB (double-buffered ~7 MiB) — fits v5e's 16 MiB scoped VMEM.
    y3 = matmul_bias_act(y2, params["wf1"].T, params["bf1"], tk=896)

    # Linear(1024 -> 1), no activation (w_distance=True -> no Sigmoid).
    # Pad N=1 -> 128 lanes for a dense unmasked store; slice back after.
    wf2p = jnp.zeros((1024, 128), jnp.float32).at[:, :1].set(params["wf2"].T)
    bf2p = jnp.zeros((128,), jnp.float32).at[:1].set(params["bf2"])
    y4 = matmul_bias_act(y3, wf2p, bf2p, tk=1024, apply_act=False)[:, :1]
    return y4


# ----------------------------- pure-JAX reference ---------------------------

def _leaky(x):
    return jnp.where(x >= 0, x, LEAKY_SLOPE * x)


def discriminator_ref(img, params):
    hi = jax.lax.Precision.HIGHEST
    y = jax.lax.conv_general_dilated(
        img, params["w1"], window_strides=(2, 2), padding=((1, 1), (1, 1)),
        dimension_numbers=("NCHW", "OIHW", "NCHW"), precision=hi)
    y = _leaky(y + params["b1"][None, :, None, None])
    y = jax.lax.conv_general_dilated(
        y, params["w2"], window_strides=(2, 2), padding=((1, 1), (1, 1)),
        dimension_numbers=("NCHW", "OIHW", "NCHW"), precision=hi)
    y = _leaky(y + params["b2"][None, :, None, None])
    y = y.reshape(y.shape[0], -1)                               # Reshape layer
    y = _leaky(jnp.dot(y, params["wf1"].T, precision=hi) + params["bf1"])
    y = jnp.dot(y, params["wf2"].T, precision=hi) + params["bf2"]
    return y


if __name__ == "__main__":
    key = jax.random.PRNGKey(0)
    ks = jax.random.split(key, 9)

    # cshape=(128, 7, 7) with two stride-2 convs implies a 28x28 input.
    B, C_IN, H, W = 2, 1, 28, 28
    IELS = 128 * 7 * 7                                          # 6272

    params = {
        "w1": 0.05 * jax.random.normal(ks[0], (64, C_IN, 4, 4), jnp.float32),
        "b1": 0.01 * jax.random.normal(ks[1], (64,), jnp.float32),
        "w2": 0.05 * jax.random.normal(ks[2], (128, 64, 4, 4), jnp.float32),
        "b2": 0.01 * jax.random.normal(ks[3], (128,), jnp.float32),
        "wf1": 0.05 * jax.random.normal(ks[4], (1024, IELS), jnp.float32),
        "bf1": 0.01 * jax.random.normal(ks[5], (1024,), jnp.float32),
        "wf2": 0.05 * jax.random.normal(ks[6], (1, 1024), jnp.float32),
        "bf2": 0.01 * jax.random.normal(ks[7], (1,), jnp.float32),
    }
    img = jax.random.normal(ks[8], (B, C_IN, H, W), jnp.float32)

    fwd = jax.jit(discriminator_forward)
    out = jax.block_until_ready(fwd(img, params))
    ref = jax.block_until_ready(discriminator_ref(img, params))

    assert out.shape == (B, 1), (out.shape, (B, 1))
    assert jnp.allclose(out, ref, rtol=2e-2, atol=5e-3), (
        "discriminator output mismatch", out, ref)

    print("KERNEL_OK")
</pallas_src>

<mosaic_0001>
module attributes {stable_mosaic.version = 11 : i64} {
  func.func @_mm_bias_act_kernel(%arg0: i32, %arg1: memref<392x16xf32, #tpu.memory_space<vmem>>, %arg2: memref<16x64xf32, #tpu.memory_space<vmem>>, %arg3: memref<1x64xf32, #tpu.memory_space<vmem>>, %arg4: memref<392x64xf32, #tpu.memory_space<vmem>>, %arg5: memref<392x64xf32, #tpu.memory_space<vmem>>) attributes {dimension_semantics = [#tpu.dimension_semantics<arbitrary>], iteration_bounds = array<i64: 1>, scalar_prefetch = 0 : i64, scratch_operands = 1 : i64, tpu.core_type = #tpu.core_type<tc>, window_params = [{transform_indices = @transform_0, window_bounds = array<i64: 392, 16>}, {transform_indices = @transform_1, window_bounds = array<i64: 16, 64>}, {pipeline_mode = #tpu.pipeline_mode<synchronous>, transform_indices = @transform_2, window_bounds = array<i64: 1, 64>}, {pipeline_mode = #tpu.pipeline_mode<synchronous>, transform_indices = @transform_3, window_bounds = array<i64: 392, 64>}]} {
    %c0_i32 = arith.constant 0 : i32
    %0 = arith.cmpi eq, %arg0, %c0_i32 : i32
    %1 = arith.extui %0 : i1 to i32
    %c0_i32_0 = arith.constant 0 : i32
    %2 = arith.cmpi ne, %1, %c0_i32_0 : i32
    scf.if %2 {
      %cst_10 = arith.constant 0.000000e+00 : f32
      %12 = vector.broadcast %cst_10 : f32 to vector<392x64xf32>
      %c0_11 = arith.constant 0 : index
      %c0_12 = arith.constant 0 : index
      %13 = vector.load %arg5[%c0_11, %c0_12] : memref<392x64xf32, #tpu.memory_space<vmem>>, vector<392x64xf32>
      tpu.vector_store %arg5[%c0_11, %c0_12], %12 {strides = array<i32>} : memref<392x64xf32, #tpu.memory_space<vmem>>, vector<392x64xf32>,
    } else {
    }
    %c0 = arith.constant 0 : index
    %c0_1 = arith.constant 0 : index
    %3 = vector.load %arg5[%c0, %c0_1] : memref<392x64xf32, #tpu.memory_space<vmem>>, vector<392x64xf32>
    %c0_2 = arith.constant 0 : index
    %c0_3 = arith.constant 0 : index
    %4 = vector.load %arg1[%c0_2, %c0_3] : memref<392x16xf32, #tpu.memory_space<vmem>>, vector<392x16xf32>
    %c0_4 = arith.constant 0 : index
    %c0_5 = arith.constant 0 : index
    %5 = vector.load %arg2[%c0_4, %c0_5] : memref<16x64xf32, #tpu.memory_space<vmem>>, vector<16x64xf32>
    %cst = arith.constant dense<0.000000e+00> : vector<392x64xf32>
    %6 = tpu.matmul %4, %5, %cst {dimension_numbers = #tpu.dot_dimension_numbers<[1], [0], [0], [1], [0, 0, 1, 1], [], []>} : vector<392x16xf32>, vector<16x64xf32>, vector<392x64xf32> -> vector<392x64xf32>
    %7 = arith.addf %3, %6 : vector<392x64xf32>
    %c0_6 = arith.constant 0 : index
    %c0_7 = arith.constant 0 : index
    %8 = vector.load %arg5[%c0_6, %c0_7] : memref<392x64xf32, #tpu.memory_space<vmem>>, vector<392x64xf32>
    tpu.vector_store %arg5[%c0_6, %c0_7], %7 {strides = array<i32>} : memref<392x64xf32, #tpu.memory_space<vmem>>, vector<392x64xf32>,
    %c0_i32_8 = arith.constant 0 : i32
    %9 = arith.cmpi eq, %arg0, %c0_i32_8 : i32
    %10 = arith.extui %9 : i1 to i32
    %c0_i32_9 = arith.constant 0 : i32
    %11 = arith.cmpi ne, %10, %c0_i32_9 : i32
    scf.if %11 {
      %c0_10 = arith.constant 0 : index
      %c0_11 = arith.constant 0 : index
      %12 = vector.load %arg5[%c0_10, %c0_11] : memref<392x64xf32, #tpu.memory_space<vmem>>, vector<392x64xf32>
      %c0_12 = arith.constant 0 : index
      %c0_13 = arith.constant 0 : index
      %13 = vector.load %arg3[%c0_12, %c0_13] : memref<1x64xf32, #tpu.memory_space<vmem>>, vector<1x64xf32>
      %14 = vector.broadcast %13 : vector<1x64xf32> to vector<392x64xf32>
      %15 = arith.addf %12, %14 : vector<392x64xf32>
      %cst_14 = arith.constant 0.000000e+00 : f32
      %16 = vector.broadcast %cst_14 : f32 to vector<392x64xf32>
      %17 = arith.cmpf oge, %15, %16 : vector<392x64xf32>
      %cst_15 = arith.constant 2.000000e-02 : f32
      %18 = vector.broadcast %cst_15 : f32 to vector<392x64xf32>
      %19 = arith.mulf %18, %15 : vector<392x64xf32>
      %20 = arith.select %17, %15, %19 : vector<392x64xi1>, vector<392x64xf32>
      %c0_16 = arith.constant 0 : index
      %c0_17 = arith.constant 0 : index
      %21 = vector.load %arg4[%c0_16, %c0_17] : memref<392x64xf32, #tpu.memory_space<vmem>>, vector<392x64xf32>
      tpu.vector_store %arg4[%c0_16, %c0_17], %20 {strides = array<i32>} : memref<392x64xf32, #tpu.memory_space<vmem>>, vector<392x64xf32>,
    } else {
    }
    return
  }
  func.func @transform_0(%arg0: i32) -> (i32, i32) {
    %c0_i32 = arith.constant 0 : i32
    %c0_i32_0 = arith.constant 0 : i32
    return %c0_i32, %arg0 : i32, i32
  }
  func.func @transform_1(%arg0: i32) -> (i32, i32) {
    %c0_i32 = arith.constant 0 : i32
    %c0_i32_0 = arith.constant 0 : i32
    return %arg0, %c0_i32 : i32, i32
  }
  func.func @transform_2(%arg0: i32) -> (i32, i32) {
    %c0_i32 = arith.constant 0 : i32
    %c0_i32_0 = arith.constant 0 : i32
    %c0_i32_1 = arith.constant 0 : i32
    return %c0_i32, %c0_i32_0 : i32, i32
  }
  func.func @transform_3(%arg0: i32) -> (i32, i32) {
    %c0_i32 = arith.constant 0 : i32
    %c0_i32_0 = arith.constant 0 : i32
    %c0_i32_1 = arith.constant 0 : i32
    return %c0_i32, %c0_i32_0 : i32, i32
  }
}

module attributes {stable_mosaic.version = 11 : i64} {
  func.func @_mm_bias_act_kernel(%arg0: i32, %arg1: memref<98x1024xf32, #tpu.memory_space<vmem>>, %arg2: memref<1024x128xf32, #tpu.memory_space<vmem>>, %arg3: memref<1x128xf32, #tpu.memory_space<vmem>>, %arg4: memref<98x128xf32, #tpu.memory_space<vmem>>, %arg5: memref<98x128xf32, #tpu.memory_space<vmem>>) attributes {dimension_semantics = [#tpu.dimension_semantics<arbitrary>], iteration_bounds = array<i64: 1>, scalar_prefetch = 0 : i64, scratch_operands = 1 : i64, tpu.core_type = #tpu.core_type<tc>, window_params = [{transform_indices = @transform_0, window_bounds = array<i64: 98, 1024>}, {transform_indices = @transform_1, window_bounds = array<i64: 1024, 128>}, {pipeline_mode = #tpu.pipeline_mode<synchronous>, transform_indices = @transform_2, window_bounds = array<i64: 1, 128>}, {pipeline_mode = #tpu.pipeline_mode<synchronous>, transform_indices = @transform_3, window_bounds = array<i64: 98, 128>}]} {
    %c0_i32 = arith.constant 0 : i32
    %0 = arith.cmpi eq, %arg0, %c0_i32 : i32
    %1 = arith.extui %0 : i1 to i32
    %c0_i32_0 = arith.constant 0 : i32
    %2 = arith.cmpi ne, %1, %c0_i32_0 : i32
    scf.if %2 {
      %cst_10 = arith.constant 0.000000e+00 : f32
      %12 = vector.broadcast %cst_10 : f32 to vector<98x128xf32>
      %c0_11 = arith.constant 0 : index
      %c0_12 = arith.constant 0 : index
      %13 = vector.load %arg5[%c0_11, %c0_12] : memref<98x128xf32, #tpu.memory_space<vmem>>, vector<98x128xf32>
      tpu.vector_store %arg5[%c0_11, %c0_12], %12 {strides = array<i32>} : memref<98x128xf32, #tpu.memory_space<vmem>>, vector<98x128xf32>,
    } else {
    }
    %c0 = arith.constant 0 : index
    %c0_1 = arith.constant 0 : index
    %3 = vector.load %arg5[%c0, %c0_1] : memref<98x128xf32, #tpu.memory_space<vmem>>, vector<98x128xf32>
    %c0_2 = arith.constant 0 : index
    %c0_3 = arith.constant 0 : index
    %4 = vector.load %arg1[%c0_2, %c0_3] : memref<98x1024xf32, #tpu.memory_space<vmem>>, vector<98x1024xf32>
    %c0_4 = arith.constant 0 : index
    %c0_5 = arith.constant 0 : index
    %5 = vector.load %arg2[%c0_4, %c0_5] : memref<1024x128xf32, #tpu.memory_space<vmem>>, vector<1024x128xf32>
    %cst = arith.constant dense<0.000000e+00> : vector<98x128xf32>
    %6 = tpu.matmul %4, %5, %cst {dimension_numbers = #tpu.dot_dimension_numbers<[1], [0], [0], [1], [0, 0, 1, 1], [], []>} : vector<98x1024xf32>, vector<1024x128xf32>, vector<98x128xf32> -> vector<98x128xf32>
    %7 = arith.addf %3, %6 : vector<98x128xf32>
    %c0_6 = arith.constant 0 : index
    %c0_7 = arith.constant 0 : index
    %8 = vector.load %arg5[%c0_6, %c0_7] : memref<98x128xf32, #tpu.memory_space<vmem>>, vector<98x128xf32>
    tpu.vector_store %arg5[%c0_6, %c0_7], %7 {strides = array<i32>} : memref<98x128xf32, #tpu.memory_space<vmem>>, vector<98x128xf32>,
    %c0_i32_8 = arith.constant 0 : i32
    %9 = arith.cmpi eq, %arg0, %c0_i32_8 : i32
    %10 = arith.extui %9 : i1 to i32
    %c0_i32_9 = arith.constant 0 : i32
    %11 = arith.cmpi ne, %10, %c0_i32_9 : i32
    scf.if %11 {
      %c0_10 = arith.constant 0 : index
      %c0_11 = arith.constant 0 : index
      %12 = vector.load %arg5[%c0_10, %c0_11] : memref<98x128xf32, #tpu.memory_space<vmem>>, vector<98x128xf32>
      %c0_12 = arith.constant 0 : index
      %c0_13 = arith.constant 0 : index
      %13 = vector.load %arg3[%c0_12, %c0_13] : memref<1x128xf32, #tpu.memory_space<vmem>>, vector<1x128xf32>
      %14 = vector.broadcast %13 : vector<1x128xf32> to vector<98x128xf32>
      %15 = arith.addf %12, %14 : vector<98x128xf32>
      %cst_14 = arith.constant 0.000000e+00 : f32
      %16 = vector.broadcast %cst_14 : f32 to vector<98x128xf32>
      %17 = arith.cmpf oge, %15, %16 : vector<98x128xf32>
      %cst_15 = arith.constant 2.000000e-02 : f32
      %18 = vector.broadcast %cst_15 : f32 to vector<98x128xf32>
      %19 = arith.mulf %18, %15 : vector<98x128xf32>
      %20 = arith.select %17, %15, %19 : vector<98x128xi1>, vector<98x128xf32>
      %c0_16 = arith.constant 0 : index
      %c0_17 = arith.constant 0 : index
      %21 = vector.load %arg4[%c0_16, %c0_17] : memref<98x128xf32, #tpu.memory_space<vmem>>, vector<98x128xf32>
      tpu.vector_store %arg4[%c0_16, %c0_17], %20 {strides = array<i32>} : memref<98x128xf32, #tpu.memory_space<vmem>>, vector<98x128xf32>,
    } else {
    }
    return
  }
  func.func @transform_0(%arg0: i32) -> (i32, i32) {
    %c0_i32 = arith.constant 0 : i32
    %c0_i32_0 = arith.constant 0 : i32
    return %c0_i32, %arg0 : i32, i32
  }
  func.func @transform_1(%arg0: i32) -> (i32, i32) {
    %c0_i32 = arith.constant 0 : i32
    %c0_i32_0 = arith.constant 0 : i32
    return %arg0, %c0_i32 : i32, i32
  }
  func.func @transform_2(%arg0: i32) -> (i32, i32) {
    %c0_i32 = arith.constant 0 : i32
    %c0_i32_0 = arith.constant 0 : i32
    %c0_i32_1 = arith.constant 0 : i32
    return %c0_i32, %c0_i32_0 : i32, i32
  }
  func.func @transform_3(%arg0: i32) -> (i32, i32) {
    %c0_i32 = arith.constant 0 : i32
    %c0_i32_0 = arith.constant 0 : i32
    %c0_i32_1 = arith.constant 0 : i32
    return %c0_i32, %c0_i32_0 : i32, i32
  }
}

module attributes {stable_mosaic.version = 11 : i64} {
  func.func @_mm_bias_act_kernel(%arg0: i32, %arg1: memref<2x896xf32, #tpu.memory_space<vmem>>, %arg2: memref<896x1024xf32, #tpu.memory_space<vmem>>, %arg3: memref<1x1024xf32, #tpu.memory_space<vmem>>, %arg4: memref<2x1024xf32, #tpu.memory_space<vmem>>, %arg5: memref<2x1024xf32, #tpu.memory_space<vmem>>) attributes {dimension_semantics = [#tpu.dimension_semantics<arbitrary>], iteration_bounds = array<i64: 7>, scalar_prefetch = 0 : i64, scratch_operands = 1 : i64, tpu.core_type = #tpu.core_type<tc>, window_params = [{transform_indices = @transform_0, window_bounds = array<i64: 2, 896>}, {transform_indices = @transform_1, window_bounds = array<i64: 896, 1024>}, {pipeline_mode = #tpu.pipeline_mode<synchronous>, transform_indices = @transform_2, window_bounds = array<i64: 1, 1024>}, {pipeline_mode = #tpu.pipeline_mode<synchronous>, transform_indices = @transform_3, window_bounds = array<i64: 2, 1024>}]} {
    %c0_i32 = arith.constant 0 : i32
    %0 = arith.cmpi eq, %arg0, %c0_i32 : i32
    %1 = arith.extui %0 : i1 to i32
    %c0_i32_0 = arith.constant 0 : i32
    %2 = arith.cmpi ne, %1, %c0_i32_0 : i32
    scf.if %2 {
      %cst_9 = arith.constant 0.000000e+00 : f32
      %12 = vector.broadcast %cst_9 : f32 to vector<2x1024xf32>
      %c0_10 = arith.constant 0 : index
      %c0_11 = arith.constant 0 : index
      %13 = vector.load %arg5[%c0_10, %c0_11] : memref<2x1024xf32, #tpu.memory_space<vmem>>, vector<2x1024xf32>
      tpu.vector_store %arg5[%c0_10, %c0_11], %12 {strides = array<i32>} : memref<2x1024xf32, #tpu.memory_space<vmem>>, vector<2x1024xf32>,
    } else {
    }
    %c0 = arith.constant 0 : index
    %c0_1 = arith.constant 0 : index
    %3 = vector.load %arg5[%c0, %c0_1] : memref<2x1024xf32, #tpu.memory_space<vmem>>, vector<2x1024xf32>
    %c0_2 = arith.constant 0 : index
    %c0_3 = arith.constant 0 : index
    %4 = vector.load %arg1[%c0_2, %c0_3] : memref<2x896xf32, #tpu.memory_space<vmem>>, vector<2x896xf32>
    %c0_4 = arith.constant 0 : index
    %c0_5 = arith.constant 0 : index
    %5 = vector.load %arg2[%c0_4, %c0_5] : memref<896x1024xf32, #tpu.memory_space<vmem>>, vector<896x1024xf32>
    %cst = arith.constant dense<0.000000e+00> : vector<2x1024xf32>
    %6 = tpu.matmul %4, %5, %cst {dimension_numbers = #tpu.dot_dimension_numbers<[1], [0], [0], [1], [0, 0, 1, 1], [], []>} : vector<2x896xf32>, vector<896x1024xf32>, vector<2x1024xf32> -> vector<2x1024xf32>
    %7 = arith.addf %3, %6 : vector<2x1024xf32>
    %c0_6 = arith.constant 0 : index
    %c0_7 = arith.constant 0 : index
    %8 = vector.load %arg5[%c0_6, %c0_7] : memref<2x1024xf32, #tpu.memory_space<vmem>>, vector<2x1024xf32>
    tpu.vector_store %arg5[%c0_6, %c0_7], %7 {strides = array<i32>} : memref<2x1024xf32, #tpu.memory_space<vmem>>, vector<2x1024xf32>,
    %c6_i32 = arith.constant 6 : i32
    %9 = arith.cmpi eq, %arg0, %c6_i32 : i32
    %10 = arith.extui %9 : i1 to i32
    %c0_i32_8 = arith.constant 0 : i32
    %11 = arith.cmpi ne, %10, %c0_i32_8 : i32
    scf.if %11 {
      %c0_9 = arith.constant 0 : index
      %c0_10 = arith.constant 0 : index
      %12 = vector.load %arg5[%c0_9, %c0_10] : memref<2x1024xf32, #tpu.memory_space<vmem>>, vector<2x1024xf32>
      %c0_11 = arith.constant 0 : index
      %c0_12 = arith.constant 0 : index
      %13 = vector.load %arg3[%c0_11, %c0_12] : memref<1x1024xf32, #tpu.memory_space<vmem>>, vector<1x1024xf32>
      %14 = vector.broadcast %13 : vector<1x1024xf32> to vector<2x1024xf32>
      %15 = arith.addf %12, %14 : vector<2x1024xf32>
      %cst_13 = arith.constant 0.000000e+00 : f32
      %16 = vector.broadcast %cst_13 : f32 to vector<2x1024xf32>
      %17 = arith.cmpf oge, %15, %16 : vector<2x1024xf32>
      %cst_14 = arith.constant 2.000000e-02 : f32
      %18 = vector.broadcast %cst_14 : f32 to vector<2x1024xf32>
      %19 = arith.mulf %18, %15 : vector<2x1024xf32>
      %20 = arith.select %17, %15, %19 : vector<2x1024xi1>, vector<2x1024xf32>
      %c0_15 = arith.constant 0 : index
      %c0_16 = arith.constant 0 : index
      %21 = vector.load %arg4[%c0_15, %c0_16] : memref<2x1024xf32, #tpu.memory_space<vmem>>, vector<2x1024xf32>
      tpu.vector_store %arg4[%c0_15, %c0_16], %20 {strides = array<i32>} : memref<2x1024xf32, #tpu.memory_space<vmem>>, vector<2x1024xf32>,
    } else {
    }
    return
  }
  func.func @transform_0(%arg0: i32) -> (i32, i32) {
    %c0_i32 = arith.constant 0 : i32
    %c0_i32_0 = arith.constant 0 : i32
    return %c0_i32, %arg0 : i32, i32
  }
  func.func @transform_1(%arg0: i32) -> (i32, i32) {
    %c0_i32 = arith.constant 0 : i32
    %c0_i32_0 = arith.constant 0 : i32
    return %arg0, %c0_i32 : i32, i32
  }
  func.func @transform_2(%arg0: i32) -> (i32, i32) {
    %c0_i32 = arith.constant 0 : i32
    %c0_i32_0 = arith.constant 0 : i32
    %c0_i32_1 = arith.constant 0 : i32
    return %c0_i32, %c0_i32_0 : i32, i32
  }
  func.func @transform_3(%arg0: i32) -> (i32, i32) {
    %c0_i32 = arith.constant 0 : i32
    %c0_i32_0 = arith.constant 0 : i32
    %c0_i32_1 = arith.constant 0 : i32
    return %c0_i32, %c0_i32_0 : i32, i32
  }
}

module attributes {stable_mosaic.version = 11 : i64} {
  func.func @_mm_bias_act_kernel(%arg0: i32, %arg1: memref<2x1024xf32, #tpu.memory_space<vmem>>, %arg2: memref<1024x128xf32, #tpu.memory_space<vmem>>, %arg3: memref<1x128xf32, #tpu.memory_space<vmem>>, %arg4: memref<2x128xf32, #tpu.memory_space<vmem>>, %arg5: memref<2x128xf32, #tpu.memory_space<vmem>>) attributes {dimension_semantics = [#tpu.dimension_semantics<arbitrary>], iteration_bounds = array<i64: 1>, scalar_prefetch = 0 : i64, scratch_operands = 1 : i64, tpu.core_type = #tpu.core_type<tc>, window_params = [{transform_indices = @transform_0, window_bounds = array<i64: 2, 1024>}, {transform_indices = @transform_1, window_bounds = array<i64: 1024, 128>}, {pipeline_mode = #tpu.pipeline_mode<synchronous>, transform_indices = @transform_2, window_bounds = array<i64: 1, 128>}, {pipeline_mode = #tpu.pipeline_mode<synchronous>, transform_indices = @transform_3, window_bounds = array<i64: 2, 128>}]} {
    %c0_i32 = arith.constant 0 : i32
    %0 = arith.cmpi eq, %arg0, %c0_i32 : i32
    %1 = arith.extui %0 : i1 to i32
    %c0_i32_0 = arith.constant 0 : i32
    %2 = arith.cmpi ne, %1, %c0_i32_0 : i32
    scf.if %2 {
      %cst_10 = arith.constant 0.000000e+00 : f32
      %12 = vector.broadcast %cst_10 : f32 to vector<2x128xf32>
      %c0_11 = arith.constant 0 : index
      %c0_12 = arith.constant 0 : index
      %13 = vector.load %arg5[%c0_11, %c0_12] : memref<2x128xf32, #tpu.memory_space<vmem>>, vector<2x128xf32>
      tpu.vector_store %arg5[%c0_11, %c0_12], %12 {strides = array<i32>} : memref<2x128xf32, #tpu.memory_space<vmem>>, vector<2x128xf32>,
    } else {
    }
    %c0 = arith.constant 0 : index
    %c0_1 = arith.constant 0 : index
    %3 = vector.load %arg5[%c0, %c0_1] : memref<2x128xf32, #tpu.memory_space<vmem>>, vector<2x128xf32>
    %c0_2 = arith.constant 0 : index
    %c0_3 = arith.constant 0 : index
    %4 = vector.load %arg1[%c0_2, %c0_3] : memref<2x1024xf32, #tpu.memory_space<vmem>>, vector<2x1024xf32>
    %c0_4 = arith.constant 0 : index
    %c0_5 = arith.constant 0 : index
    %5 = vector.load %arg2[%c0_4, %c0_5] : memref<1024x128xf32, #tpu.memory_space<vmem>>, vector<1024x128xf32>
    %cst = arith.constant dense<0.000000e+00> : vector<2x128xf32>
    %6 = tpu.matmul %4, %5, %cst {dimension_numbers = #tpu.dot_dimension_numbers<[1], [0], [0], [1], [0, 0, 1, 1], [], []>} : vector<2x1024xf32>, vector<1024x128xf32>, vector<2x128xf32> -> vector<2x128xf32>
    %7 = arith.addf %3, %6 : vector<2x128xf32>
    %c0_6 = arith.constant 0 : index
    %c0_7 = arith.constant 0 : index
    %8 = vector.load %arg5[%c0_6, %c0_7] : memref<2x128xf32, #tpu.memory_space<vmem>>, vector<2x128xf32>
    tpu.vector_store %arg5[%c0_6, %c0_7], %7 {strides = array<i32>} : memref<2x128xf32, #tpu.memory_space<vmem>>, vector<2x128xf32>,
    %c0_i32_8 = arith.constant 0 : i32
    %9 = arith.cmpi eq, %arg0, %c0_i32_8 : i32
    %10 = arith.extui %9 : i1 to i32
    %c0_i32_9 = arith.constant 0 : i32
    %11 = arith.cmpi ne, %10, %c0_i32_9 : i32
    scf.if %11 {
      %c0_10 = arith.constant 0 : index
      %c0_11 = arith.constant 0 : index
      %12 = vector.load %arg5[%c0_10, %c0_11] : memref<2x128xf32, #tpu.memory_space<vmem>>, vector<2x128xf32>
      %c0_12 = arith.constant 0 : index
      %c0_13 = arith.constant 0 : index
      %13 = vector.load %arg3[%c0_12, %c0_13] : memref<1x128xf32, #tpu.memory_space<vmem>>, vector<1x128xf32>
      %14 = vector.broadcast %13 : vector<1x128xf32> to vector<2x128xf32>
      %15 = arith.addf %12, %14 : vector<2x128xf32>
      %c0_14 = arith.constant 0 : index
      %c0_15 = arith.constant 0 : index
      %16 = vector.load %arg4[%c0_14, %c0_15] : memref<2x128xf32, #tpu.memory_space<vmem>>, vector<2x128xf32>
      tpu.vector_store %arg4[%c0_14, %c0_15], %15 {strides = array<i32>} : memref<2x128xf32, #tpu.memory_space<vmem>>, vector<2x128xf32>,
    } else {
    }
    return
  }
  func.func @transform_0(%arg0: i32) -> (i32, i32) {
    %c0_i32 = arith.constant 0 : i32
    %c0_i32_0 = arith.constant 0 : i32
    return %c0_i32, %arg0 : i32, i32
  }
  func.func @transform_1(%arg0: i32) -> (i32, i32) {
    %c0_i32 = arith.constant 0 : i32
    %c0_i32_0 = arith.constant 0 : i32
    return %arg0, %c0_i32 : i32, i32
  }
  func.func @transform_2(%arg0: i32) -> (i32, i32) {
    %c0_i32 = arith.constant 0 : i32
    %c0_i32_0 = arith.constant 0 : i32
    %c0_i32_1 = arith.constant 0 : i32
    return %c0_i32, %c0_i32_0 : i32, i32
  }
  func.func @transform_3(%arg0: i32) -> (i32, i32) {
    %c0_i32 = arith.constant 0 : i32
    %c0_i32_0 = arith.constant 0 : i32
    %c0_i32_1 = arith.constant 0 : i32
    return %c0_i32, %c0_i32_0 : i32, i32
  }
}

</mosaic_0001>

<bundles_post_ra>
// kernel: discriminator_forward.4
= control target key start
LH: loop header
LB: loop body
LE: loop exit
PB: predicated region body
PF: predicated region fallthrough
CT: control target
= control target key end

     0   :  { %vm168_vm0 = vcmask 130048   ;;  %vm18_vm1 = vcmask 523264   ;;  %v941_v38 = vmov 0.0   ;;  %s1561_s1 = inlined_call_operand.vmem [shape: f32[16,64], index: 1, kind: input, shape index: {}]   ;;  %s1562_s0 = inlined_call_operand.vmem [shape: f32[392,16], index: 0, kind: input, shape index: {}]   ;;  %s1563_s2 = inlined_call_operand.vmem [shape: f32[1,64], index: 2, kind: input, shape index: {}]   ;;  %s1564_s3 = inlined_call_operand.vmem [shape: f32[392,64], index: 3, kind: output, shape index: {}]  }
   0x1   :  { %v167_v0 = vld [vmem:[%s1561_s1 + $0x8] sm:$0xff]  ;;  %v166_v1 = vld [vmem:[%s1561_s1] sm:$0xff]  ;;  %v155_v5 = vld [vmem:[%s1562_s0 + $0x130] sm:$0xff]  ;;  %31 = vst.msk [vmem:[#allocation2 + $0x60] sm:$0xff] %vm18_vm1, %v941_v38 }
   0x2   :  { %934 = vmatpush.msra.mxu2 %v167_v0  ;;  %v142_v2 = vld [vmem:[%s1562_s0 + $0xc8] sm:$0xff]  ;;  %933 = vmatpush.msra.mxu1 %v167_v0  ;;  %v129_v3 = vld [vmem:[%s1562_s0 + $0x60] sm:$0xff]  ;;  %v143_v6 = vld [vmem:[%s1562_s0 + $0xd0] sm:$0xff]  ;;  %19 = vst.msk [vmem:[#allocation2] sm:$0xff] %vm18_vm1, %v941_v38 }
   0x3   :  { %330 = vmatpush.msra.mxu0 %v167_v0  ;;  %935 = vmatpush.msra.mxu3 %v167_v0  ;;  %v117_v4 = vld [vmem:[%s1562_s0] sm:$0xff]  ;;  %v130_v7 = vld [vmem:[%s1562_s0 + $0x68] sm:$0xff]  ;;  %v156_v9 = vld [vmem:[%s1562_s0 + $0x138] sm:$0xff]  ;;  %20 = vst.msk [vmem:[#allocation2 + $0x8] sm:$0xff] %vm18_vm1, %v941_v38 }
   0x4   :  { %937 = vmatpush.msra.mxu2 %v166_v1  ;;  %936 = vmatpush.msra.mxu1 %v166_v1  ;;  %v118_v8 = vld [vmem:[%s1562_s0 + $0x8] sm:$0xff]  ;;  %v144_v10 = vld [vmem:[%s1562_s0 + $0xd8] sm:$0xff]  ;;  %v131_v11 = vld [vmem:[%s1562_s0 + $0x70] sm:$0xff]  ;;  %21 = vst.msk [vmem:[#allocation2 + $0x10] sm:$0xff] %vm18_vm1, %v941_v38 }
   0x5   :  { %909 = vmatmul.msk.f32.vlgmr.msra.gmra.mxu2 %vm168_vm0, %v142_v2  ;;  %896 = vmatmul.msk.f32.vlgmr.msra.gmra.mxu1 %vm168_vm0, %v129_v3  ;;  %v119_v12 = vld [vmem:[%s1562_s0 + $0x10] sm:$0xff]  ;;  %v157_v13 = vld [vmem:[%s1562_s0 + $0x140] sm:$0xff]  ;;  %v132_v15 = vld [vmem:[%s1562_s0 + $0x78] sm:$0xff]  ;;  %22 = vst.msk [vmem:[#allocation2 + $0x18] sm:$0xff] %vm18_vm1, %v941_v38 }
   0x6   :  { %331 = vmatpush.msra.mxu0 %v166_v1  ;;  %938 = vmatpush.msra.mxu3 %v166_v1  ;;  %v145_v14 = vld [vmem:[%s1562_s0 + $0xe0] sm:$0xff]  ;;  %v120_v16 = vld [vmem:[%s1562_s0 + $0x18] sm:$0xff]  ;;  %v158_v17 = vld [vmem:[%s1562_s0 + $0x148] sm:$0xff]  ;;  %23 = vst.msk [vmem:[#allocation2 + $0x20] sm:$0xff] %vm18_vm1, %v941_v38 }
   0x7   :  { %884 = vmatmul.msk.f32.vlgmr.msra.gmra.mxu0 %vm168_vm0, %v117_v4  ;;  %922 = vmatmul.msk.f32.vlgmr.msra.gmra.mxu3 %vm168_vm0, %v155_v5  ;;  %v146_v18 = vld [vmem:[%s1562_s0 + $0xe8] sm:$0xff]  ;;  %v133_v19 = vld [vmem:[%s1562_s0 + $0x80] sm:$0xff]  ;;  %v159_v21 = vld [vmem:[%s1562_s0 + $0x150] sm:$0xff]  ;;  %24 = vst.msk [vmem:[#allocation2 + $0x28] sm:$0xff] %vm18_vm1, %v941_v38 }
   0x8   :  { %v121_v20 = vld [vmem:[%s1562_s0 + $0x20] sm:$0xff]  ;;  %v147_v22 = vld [vmem:[%s1562_s0 + $0xf0] sm:$0xff]  ;;  %v134_v23 = vld [vmem:[%s1562_s0 + $0x88] sm:$0xff]  ;;  %25 = vst.msk [vmem:[#allocation2 + $0x30] sm:$0xff] %vm18_vm1, %v941_v38 }
   0x9   :  { %v122_v24 = vld [vmem:[%s1562_s0 + $0x28] sm:$0xff]  ;;  %v160_v25 = vld [vmem:[%s1562_s0 + $0x158] sm:$0xff]  ;;  %v135_v27 = vld [vmem:[%s1562_s0 + $0x90] sm:$0xff]  ;;  %26 = vst.msk [vmem:[#allocation2 + $0x38] sm:$0xff] %vm18_vm1, %v941_v38 }
   0xa   :  { %v148_v26 = vld [vmem:[%s1562_s0 + $0xf8] sm:$0xff]  ;;  %v123_v28 = vld [vmem:[%s1562_s0 + $0x30] sm:$0xff]  ;;  %v161_v29 = vld [vmem:[%s1562_s0 + $0x160] sm:$0xff]  ;;  %27 = vst.msk [vmem:[#allocation2 + $0x40] sm:$0xff] %vm18_vm1, %v941_v38 }
   0xb   :  { %v149_v30 = vld [vmem:[%s1562_s0 + $0x100] sm:$0xff]  ;;  %v136_v31 = vld [vmem:[%s1562_s0 + $0x98] sm:$0xff]  ;;  %v162_v33 = vld [vmem:[%s1562_s0 + $0x168] sm:$0xff]  ;;  %28 = vst.msk [vmem:[#allocation2 + $0x48] sm:$0xff] %vm18_vm1, %v941_v38 }
   0xc   :  { %v124_v32 = vld [vmem:[%s1562_s0 + $0x38] sm:$0xff]  ;;  %v150_v34 = vld [vmem:[%s1562_s0 + $0x108] sm:$0xff]  ;;  %v137_v35 = vld [vmem:[%s1562_s0 + $0xa0] sm:$0xff]  ;;  %29 = vst.msk [vmem:[#allocation2 + $0x50] sm:$0xff] %vm18_vm1, %v941_v38 }
   0xd   :  { %910 = vmatmul.msk.f32.gmra.mxu2 %vm168_vm0, %v143_v6  ;;  %897 = vmatmul.msk.f32.gmra.mxu1 %vm168_vm0, %v130_v7  ;;  %v125_v36 = vld [vmem:[%s1562_s0 + $0x40] sm:$0xff]  ;;  %v163_v37 = vld [vmem:[%s1562_s0 + $0x170] sm:$0xff]  ;;  %v138_v40 = vld [vmem:[%s1562_s0 + $0xa8] sm:$0xff]  ;;  %30 = vst.msk [vmem:[#allocation2 + $0x58] sm:$0xff] %vm18_vm1, %v941_v38 }
   0xe   :  { %v151_v39 = vld [vmem:[%s1562_s0 + $0x110] sm:$0xff]  ;;  %v126_v41 = vld [vmem:[%s1562_s0 + $0x48] sm:$0xff]  ;;  %v164_v42 = vld [vmem:[%s1562_s0 + $0x178] sm:$0xff]  ;;  %32 = vst.msk [vmem:[#allocation2 + $0x68] sm:$0xff] %vm18_vm1, %v941_v38 }
   0xf   :  { %885 = vmatmul.msk.f32.gmra.mxu0 %vm168_vm0, %v118_v8  ;;  %923 = vmatmul.msk.f32.gmra.mxu3 %vm168_vm0, %v156_v9  ;;  %v152_v43 = vld [vmem:[%s1562_s0 + $0x118] sm:$0xff]  ;;  %v139_v44 = vld [vmem:[%s1562_s0 + $0xb0] sm:$0xff]  ;;  %v165_v46 = vld [vmem:[%s1562_s0 + $0x180] sm:$0xff]  ;;  %33 = vst.msk [vmem:[#allocation2 + $0x70] sm:$0xff] %vm18_vm1, %v941_v38 }
  0x10   :  { %v127_v45 = vld [vmem:[%s1562_s0 + $0x50] sm:$0xff]  ;;  %34 = vst.msk [vmem:[#allocation2 + $0x78] sm:$0xff] %vm18_vm1, %v941_v38  ;;  %v153_v47 = vld [vmem:[%s1562_s0 + $0x120] sm:$0xff]  ;;  %v140_v48 = vld [vmem:[%s1562_s0 + $0xb8] sm:$0xff] }
  0x11   :  { %35 = vst.msk [vmem:[#allocation2 + $0x80] sm:$0xff] %vm18_vm1, %v941_v38  ;;  %v128_v49 = vld [vmem:[%s1562_s0 + $0x58] sm:$0xff]  ;;  %v154_v50 = vld [vmem:[%s1562_s0 + $0x128] sm:$0xff]  ;;  %v141_v51 = vld [vmem:[%s1562_s0 + $0xc0] sm:$0xff] }
  0x12   :  { %36 = vst.msk [vmem:[#allocation2 + $0x88] sm:$0xff] %vm18_vm1, %v941_v38  ;;  %v80_v52 = vld [vmem:[#allocation2 + $0x60] sm:$0xff]  ;;  %v69_v1 = vld [vmem:[#allocation2 + $0x8] sm:$0xff] }
  0x13   :  { %37 = vst.msk [vmem:[#allocation2 + $0x90] sm:$0xff] %vm18_vm1, %v941_v38  ;;  %v68_v54 = vld [vmem:[#allocation2] sm:$0xff] }
  0x14   :  { %38 = vst.msk [vmem:[#allocation2 + $0x98] sm:$0xff] %vm18_vm1, %v941_v38  ;;  %v1267_v62 = vld [vmem:[%s1563_s2] ss:$0 sm:$0xff] }
  0x15   :  { %911 = vmatmul.msk.f32.gmra.mxu2 %vm168_vm0, %v144_v10  ;;  %898 = vmatmul.msk.f32.gmra.mxu1 %vm168_vm0, %v131_v11  ;;  %39 = vst.msk [vmem:[#allocation2 + $0xa0] sm:$0xff] %vm18_vm1, %v941_v38  ;;  %v81_v60 = vld [vmem:[#allocation2 + $0x68] sm:$0xff] }
  0x16   :  { %40 = vst.msk [vmem:[#allocation2 + $0xa8] sm:$0xff] %vm18_vm1, %v941_v38 }
  0x17   :  { %886 = vmatmul.msk.f32.gmra.mxu0 %vm168_vm0, %v119_v12  ;;  %924 = vmatmul.msk.f32.gmra.mxu3 %vm168_vm0, %v157_v13  ;;  %41 = vst.msk [vmem:[#allocation2 + $0xb0] sm:$0xff] %vm18_vm1, %v941_v38 }
  0x18   :  { %42 = vst.msk [vmem:[#allocation2 + $0xb8] sm:$0xff] %vm18_vm1, %v941_v38 }
  0x19   :  { %43 = vst.msk [vmem:[#allocation2 + $0xc0] sm:$0xff] %vm18_vm1, %v941_v38 }
  0x1a   :  { %44 = vst.msk [vmem:[#allocation2 + $0xc8] sm:$0xff] %vm18_vm1, %v941_v38 }
  0x1b   :  { %45 = vst.msk [vmem:[#allocation2 + $0xd0] sm:$0xff] %vm18_vm1, %v941_v38 }
  0x1c   :  { %46 = vst.msk [vmem:[#allocation2 + $0xd8] sm:$0xff] %vm18_vm1, %v941_v38 }
  0x1d   :  { %912 = vmatmul.msk.f32.gmra.mxu2 %vm168_vm0, %v145_v14  ;;  %899 = vmatmul.msk.f32.gmra.mxu1 %vm168_vm0, %v132_v15  ;;  %47 = vst.msk [vmem:[#allocation2 + $0xe0] sm:$0xff] %vm18_vm1, %v941_v38  ;;  %v82_v14 = vld [vmem:[#allocation2 + $0x70] sm:$0xff] }
  0x1e   :  { %48 = vst.msk [vmem:[#allocation2 + $0xe8] sm:$0xff] %vm18_vm1, %v941_v38 }
  0x1f   :  { %887 = vmatmul.msk.f32.gmra.mxu0 %vm168_vm0, %v120_v16  ;;  %925 = vmatmul.msk.f32.gmra.mxu3 %vm168_vm0, %v158_v17  ;;  %49 = vst.msk [vmem:[#allocation2 + $0xf0] sm:$0xff] %vm18_vm1, %v941_v38 }
  0x20   :  { %50 = vst.msk [vmem:[#allocation2 + $0xf8] sm:$0xff] %vm18_vm1, %v941_v38 }
  0x21   :  { %51 = vst.msk [vmem:[#allocation2 + $0x100] sm:$0xff] %vm18_vm1, %v941_v38  ;;  %v93_v58 = vld [vmem:[#allocation2 + $0xc8] sm:$0xff] }
  0x22   :  { %52 = vst.msk [vmem:[#allocation2 + $0x108] sm:$0xff] %vm18_vm1, %v941_v38  ;;  %v94_v10 = vld [vmem:[#allocation2 + $0xd0] sm:$0xff] }
  0x23   :  { %53 = vst.msk [vmem:[#allocation2 + $0x110] sm:$0xff] %vm18_vm1, %v941_v38 }
  0x24   :  { %54 = vst.msk [vmem:[#allocation2 + $0x118] sm:$0xff] %vm18_vm1, %v941_v38 }
  0x25   :  { %913 = vmatmul.msk.f32.gmra.mxu2 %vm168_vm0, %v146_v18  ;;  %900 = vmatmul.msk.f32.gmra.mxu1 %vm168_vm0, %v133_v19  ;;  %55 = vst.msk [vmem:[#allocation2 + $0x120] sm:$0xff] %vm18_vm1, %v941_v38 }
  0x26   :  { %56 = vst.msk [vmem:[#allocation2 + $0x128] sm:$0xff] %vm18_vm1, %v941_v38 }
  0x27   :  { %888 = vmatmul.msk.f32.gmra.mxu0 %vm168_vm0, %v121_v20  ;;  %926 = vmatmul.msk.f32.gmra.mxu3 %vm168_vm0, %v159_v21  ;;  %57 = vst.msk [vmem:[#allocation2 + $0x130] sm:$0xff] %vm18_vm1, %v941_v38  ;;  %v70_v21 = vld [vmem:[#allocation2 + $0x10] sm:$0xff] }
  0x28   :  { %58 = vst.msk [vmem:[#allocation2 + $0x138] sm:$0xff] %vm18_vm1, %v941_v38 }
  0x29   :  { %59 = vst.msk [vmem:[#allocation2 + $0x140] sm:$0xff] %vm18_vm1, %v941_v38 }
  0x2a   :  { %60 = vst.msk [vmem:[#allocation2 + $0x148] sm:$0xff] %vm18_vm1, %v941_v38 }
  0x2b   :  { %61 = vst.msk [vmem:[#allocation2 + $0x150] sm:$0xff] %vm18_vm1, %v941_v38 }
  0x2c   :  { %62 = vst.msk [vmem:[#allocation2 + $0x158] sm:$0xff] %vm18_vm1, %v941_v38 }
  0x2d   :  { %914 = vmatmul.msk.f32.gmra.mxu2 %vm168_vm0, %v147_v22  ;;  %901 = vmatmul.msk.f32.gmra.mxu1 %vm168_vm0, %v134_v23  ;;  %63 = vst.msk [vmem:[#allocation2 + $0x160] sm:$0xff] %vm18_vm1, %v941_v38 }
  0x2e   :  { %64 = vst.msk [vmem:[#allocation2 + $0x168] sm:$0xff] %vm18_vm1, %v941_v38  ;;  %v106_v61 = vld [vmem:[#allocation2 + $0x130] sm:$0xff] }
  0x2f   :  { %889 = vmatmul.msk.f32.gmra.mxu0 %vm168_vm0, %v122_v24  ;;  %927 = vmatmul.msk.f32.gmra.mxu3 %vm168_vm0, %v160_v25  ;;  %65 = vst.msk [vmem:[#allocation2 + $0x170] sm:$0xff] %vm18_vm1, %v941_v38  ;;  %v107_v15 = vld [vmem:[#allocation2 + $0x138] sm:$0xff] }
  0x30   :  { %66 = vst.msk [vmem:[#allocation2 + $0x178] sm:$0xff] %vm18_vm1, %v941_v38 }
  0x31   :  { %67 = vst.msk [vmem:[#allocation2 + $0x180] sm:$0xff] %vm18_vm1, %v941_v38 }
  0x35   :  { %915 = vmatmul.msk.f32.gmra.mxu2 %vm168_vm0, %v148_v26  ;;  %902 = vmatmul.msk.f32.gmra.mxu1 %vm168_vm0, %v135_v27 }
  0x37   :  { %890 = vmatmul.msk.f32.gmra.mxu0 %vm168_vm0, %v123_v28  ;;  %928 = vmatmul.msk.f32.gmra.mxu3 %vm168_vm0, %v161_v29 }
  0x3d   :  { %916 = vmatmul.msk.f32.gmra.mxu2 %vm168_vm0, %v149_v30  ;;  %903 = vmatmul.msk.f32.gmra.mxu1 %vm168_vm0, %v136_v31 }
  0x3f   :  { %891 = vmatmul.msk.f32.gmra.mxu0 %vm168_vm0, %v124_v32  ;;  %929 = vmatmul.msk.f32.gmra.mxu3 %vm168_vm0, %v162_v33 }
  0x45   :  { %917 = vmatmul.msk.f32.gmra.mxu2 %vm168_vm0, %v150_v34  ;;  %904 = vmatmul.msk.f32.gmra.mxu1 %vm168_vm0, %v137_v35  ;;  %v95_v35 = vld [vmem:[#allocation2 + $0xd8] sm:$0xff] }
  0x47   :  { %892 = vmatmul.msk.f32.gmra.mxu0 %vm168_vm0, %v125_v36  ;;  %930 = vmatmul.msk.f32.gmra.mxu3 %vm168_vm0, %v163_v37 }
  0x4d   :  { %918 = vmatmul.msk.f32.gmra.mxu2 %vm168_vm0, %v151_v39  ;;  %905 = vmatmul.msk.f32.gmra.mxu1 %vm168_vm0, %v138_v40 }
  0x4f   :  { %893 = vmatmul.msk.f32.gmra.mxu0 %vm168_vm0, %v126_v41  ;;  %931 = vmatmul.msk.f32.gmra.mxu3 %vm168_vm0, %v164_v42  ;;  %v83_v41 = vld [vmem:[#allocation2 + $0x78] sm:$0xff] }
  0x55   :  { %919 = vmatmul.msk.f32.gmra.mxu2 %vm168_vm0, %v152_v43  ;;  %906 = vmatmul.msk.f32.gmra.mxu1 %vm168_vm0, %v139_v44 }
  0x57   :  { %894 = vmatmul.msk.f32.gmra.mxu0 %vm168_vm0, %v127_v45  ;;  %932 = vmatmul.msk.f32.gmra.mxu3 %vm168_vm0, %v165_v46  ;;  %v108_v45 = vld [vmem:[#allocation2 + $0x140] sm:$0xff] }
  0x5d   :  { %920 = vmatmul.msk.f32.gmra.mxu2 %vm168_vm0, %v153_v47  ;;  %907 = vmatmul.msk.f32.gmra.mxu1 %vm168_vm0, %v140_v48 }
  0x5f   :  { %895 = vmatmul.msk.f32.gmra.mxu0 %vm168_vm0, %v128_v49  ;;  %v71_v49 = vld [vmem:[#allocation2 + $0x18] sm:$0xff] }
  0x65   :  { %921 = vmatmul.msk.f32.gmra.mxu2 %vm168_vm0, %v154_v50  ;;  %908 = vmatmul.msk.f32.gmra.mxu1 %vm168_vm0, %v141_v51 }
  0x82   :  { %v369_v53 = vpop.f32.mrf.mxu1 }
  0x83   :  { %v492_v55 = vadd.f32 %v369_v53, %v80_v52 }
  0x84   :  { %v333_v56 = vpop.f32.mrf.mxu0 }
  0x85   :  { %542 = vst.msk [vmem:[#allocation2 + $0x60] sm:$0xff] %vm18_vm1, %v492_v55  ;;  %v480_v57 = vadd.f32 %v333_v56, %v68_v54 }
  0x87   :  { %530 = vst.msk [vmem:[#allocation2] sm:$0xff] %vm18_vm1, %v480_v57 }
  0x88   :  { %v408_v59 = vpop.f32.mrf.mxu2 }
  0x89   :  { %v505_v63 = vadd.f32 %v408_v59, %v93_v58 }
  0x8a   :  { %v372_v0 = vpop.f32.mrf.mxu1  ;;  %v447_v2 = vpop.f32.mrf.mxu3 }
  0x8b   :  { %555 = vst.msk [vmem:[#allocation2 + $0xc8] sm:$0xff] %vm18_vm1, %v505_v63  ;;  %v493_v3 = vadd.f32 %v372_v0, %v81_v60  ;;  %v518_v4 = vadd.f32 %v447_v2, %v106_v61  ;;  %v96_v0 = vld [vmem:[#allocation2 + $0xe0] sm:$0xff] }
  0x8c   :  { %v594_v5 = vld [vmem:[#allocation2 + $0x60] sm:$0xff]  ;;  %v336_v6 = vpop.f32.mrf.mxu0 }
  0x8d   :  { %v647_v7 = vadd.f32 %v1267_v62, %v594_v5  ;;  %543 = vst.msk [vmem:[#allocation2 + $0x68] sm:$0xff] %vm18_vm1, %v493_v3  ;;  %v481_v8 = vadd.f32 %v336_v6, %v69_v1  ;;  %v84_v6 = vld [vmem:[#allocation2 + $0x80] sm:$0xff] }
  0x8e   :  { %v582_v9 = vld [vmem:[#allocation2] sm:$0xff]  ;;  %568 = vst.msk [vmem:[#allocation2 + $0x130] sm:$0xff] %vm18_vm1, %v518_v4 }
  0x8f   :  { %vm696_vm2 = vcmp.ge.f32.partialorder %v647_v7, 0.0  ;;  %v745_v11 = vmul.f32 0.02, %v647_v7  ;;  %v635_v12 = vadd.f32 %v1267_v62, %v582_v9  ;;  %531 = vst.msk [vmem:[#allocation2 + $0x8] sm:$0xff] %vm18_vm1, %v481_v8 }
  0x90   :  { %v411_v13 = vpop.f32.mrf.mxu2 }
  0x91   :  { %v794_v16 = vsel %vm696_vm2, %v647_v7, %v745_v11  ;;  %vm684_vm3 = vcmp.ge.f32.partialorder %v635_v12, 0.0  ;;  %v733_v17 = vmul.f32 0.02, %v635_v12  ;;  %v506_v18 = vadd.f32 %v411_v13, %v94_v10  ;;  %v109_v10 = vld [vmem:[#allocation2 + $0x148] sm:$0xff]  ;;  %v72_v13 = vld [vmem:[#allocation2 + $0x20] sm:$0xff] }
  0x92   :  { %843 = vst.msk [vmem:[%s1564_s3 + $0x60] sm:$0xff] %vm18_vm1, %v794_v16  ;;  %v607_v19 = vld [vmem:[#allocation2 + $0xc8] sm:$0xff]  ;;  %v375_v20 = vpop.f32.mrf.mxu1  ;;  %v450_v22 = vpop.f32.mrf.mxu3 }
  0x93   :  { %v660_v23 = vadd.f32 %v1267_v62, %v607_v19  ;;  %v782_v24 = vsel %vm684_vm3, %v635_v12, %v733_v17  ;;  %556 = vst.msk [vmem:[#allocation2 + $0xd0] sm:$0xff] %vm18_vm1, %v506_v18  ;;  %v494_v25 = vadd.f32 %v375_v20, %v82_v14  ;;  %v519_v26 = vadd.f32 %v450_v22, %v107_v15 }
  0x94   :  { %831 = vst.msk [vmem:[%s1564_s3] sm:$0xff] %vm18_vm1, %v782_v24  ;;  %v595_v27 = vld [vmem:[#allocation2 + $0x68] sm:$0xff]  ;;  %v339_v28 = vpop.f32.mrf.mxu0 }
  0x95   :  { %vm709_vm4 = vcmp.ge.f32.partialorder %v660_v23, 0.0  ;;  %v758_v29 = vmul.f32 0.02, %v660_v23  ;;  %v648_v30 = vadd.f32 %v1267_v62, %v595_v27  ;;  %544 = vst.msk [vmem:[#allocation2 + $0x70] sm:$0xff] %vm18_vm1, %v494_v25  ;;  %v620_v31 = vld [vmem:[#allocation2 + $0x130] sm:$0xff]  ;;  %v482_v32 = vadd.f32 %v339_v28, %v70_v21  ;;  %v97_v27 = vld [vmem:[#allocation2 + $0xe8] sm:$0xff] }
  0x96   :  { %v583_v33 = vld [vmem:[#allocation2 + $0x8] sm:$0xff]  ;;  %v673_v34 = vadd.f32 %v1267_v62, %v620_v31  ;;  %569 = vst.msk [vmem:[#allocation2 + $0x138] sm:$0xff] %vm18_vm1, %v519_v26 }
  0x97   :  { %v807_v36 = vsel %vm709_vm4, %v660_v23, %v758_v29  ;;  %vm697_vm5 = vcmp.ge.f32.partialorder %v648_v30, 0.0  ;;  %v746_v37 = vmul.f32 0.02, %v648_v30  ;;  %v636_v38 = vadd.f32 %v1267_v62, %v583_v33  ;;  %532 = vst.msk [vmem:[#allocation2 + $0x10] sm:$0xff] %vm18_vm1, %v482_v32  ;;  %v85_v31 = vld [vmem:[#allocation2 + $0x88] sm:$0xff] }
  0x98   :  { %856 = vst.msk [vmem:[%s1564_s3 + $0xc8] sm:$0xff] %vm18_vm1, %v807_v36  ;;  %vm722_vm6 = vcmp.ge.f32.partialorder %v673_v34, 0.0  ;;  %v771_v39 = vmul.f32 0.02, %v673_v34  ;;  %v414_v40 = vpop.f32.mrf.mxu2 }
  0x99   :  { %v795_v42 = vsel %vm697_vm5, %v648_v30, %v746_v37  ;;  %vm685_vm7 = vcmp.ge.f32.partialorder %v636_v38, 0.0  ;;  %v734_v43 = vmul.f32 0.02, %v636_v38  ;;  %v507_v44 = vadd.f32 %v414_v40, %v95_v35 }
  0x9a   :  { %844 = vst.msk [vmem:[%s1564_s3 + $0x68] sm:$0xff] %vm18_vm1, %v795_v42  ;;  %v608_v46 = vld [vmem:[#allocation2 + $0xd0] sm:$0xff]  ;;  %v820_v47 = vsel %vm722_vm6, %v673_v34, %v771_v39  ;;  %v378_v48 = vpop.f32.mrf.mxu1  ;;  %v453_v50 = vpop.f32.mrf.mxu3 }
  0x9b   :  { %v661_v51 = vadd.f32 %v1267_v62, %v608_v46  ;;  %v783_v52 = vsel %vm685_vm7, %v636_v38, %v734_v43  ;;  %869 = vst.msk [vmem:[%s1564_s3 + $0x130] sm:$0xff] %vm18_vm1, %v820_v47  ;;  %v495_v53 = vadd.f32 %v378_v48, %v83_v41  ;;  %v520_v56 = vadd.f32 %v453_v50, %v108_v45  ;;  %v73_v38 = vld [vmem:[#allocation2 + $0x28] sm:$0xff]  ;;  %v110_v39 = vld [vmem:[#allocation2 + $0x150] sm:$0xff] }
  0x9c   :  { %832 = vst.msk [vmem:[%s1564_s3 + $0x8] sm:$0xff] %vm18_vm1, %v783_v52  ;;  %v596_v54 = vld [vmem:[#allocation2 + $0x70] sm:$0xff]  ;;  %v342_v55 = vpop.f32.mrf.mxu0 }
  0x9d   :  { %vm710_vm8 = vcmp.ge.f32.partialorder %v661_v51, 0.0  ;;  %v759_v57 = vmul.f32 0.02, %v661_v51  ;;  %v649_v58 = vadd.f32 %v1267_v62, %v596_v54  ;;  %557 = vst.msk [vmem:[#allocation2 + $0xd8] sm:$0xff] %vm18_vm1, %v507_v44  ;;  %v621_v59 = vld [vmem:[#allocation2 + $0x138] sm:$0xff]  ;;  %v483_v60 = vadd.f32 %v342_v55, %v71_v49 }
  0x9e   :  { %v584_v61 = vld [vmem:[#allocation2 + $0x10] sm:$0xff]  ;;  %545 = vst.msk [vmem:[#allocation2 + $0x78] sm:$0xff] %vm18_vm1, %v495_v53  ;;  %v674_v63 = vadd.f32 %v1267_v62, %v621_v59 }
  0x9f   :  { %v808_v1 = vsel %vm710_vm8, %v661_v51, %v759_v57  ;;  %vm698_vm9 = vcmp.ge.f32.partialorder %v649_v58, 0.0  ;;  %v747_v2 = vmul.f32 0.02, %v649_v58  ;;  %v637_v3 = vadd.f32 %v1267_v62, %v584_v61  ;;  %533 = vst.msk [vmem:[#allocation2 + $0x18] sm:$0xff] %vm18_vm1, %v483_v60  ;;  %v86_v60 = vld [vmem:[#allocation2 + $0x90] sm:$0xff] }
  0xa0   :  { %857 = vst.msk [vmem:[%s1564_s3 + $0xd0] sm:$0xff] %vm18_vm1, %v808_v1  ;;  %vm723_vm10 = vcmp.ge.f32.partialorder %v674_v63, 0.0  ;;  %v772_v4 = vmul.f32 0.02, %v674_v63  ;;  %v417_v5 = vpop.f32.mrf.mxu2 }
  0xa1   :  { %v796_v7 = vsel %vm698_vm9, %v649_v58, %v747_v2  ;;  %vm686_vm11 = vcmp.ge.f32.partialorder %v637_v3, 0.0  ;;  %v735_v8 = vmul.f32 0.02, %v637_v3  ;;  %v508_v9 = vadd.f32 %v417_v5, %v96_v0  ;;  %570 = vst.msk [vmem:[#allocation2 + $0x140] sm:$0xff] %vm18_vm1, %v520_v56  ;;  %v98_v56 = vld [vmem:[#allocation2 + $0xf0] sm:$0xff]  ;;  %v111_v5 = vld [vmem:[#allocation2 + $0x158] sm:$0xff] }
  0xa2   :  { %845 = vst.msk [vmem:[%s1564_s3 + $0x70] sm:$0xff] %vm18_vm1, %v796_v7  ;;  %v821_v11 = vsel %vm723_vm10, %v674_v63, %v772_v4  ;;  %v381_v12 = vpop.f32.mrf.mxu1  ;;  %v456_v14 = vpop.f32.mrf.mxu3  ;;  %v74_v4 = vld [vmem:[#allocation2 + $0x30] sm:$0xff] }
  0xa3   :  { %v784_v15 = vsel %vm686_vm11, %v637_v3, %v735_v8  ;;  %870 = vst.msk [vmem:[%s1564_s3 + $0x138] sm:$0xff] %vm18_vm1, %v821_v11  ;;  %v496_v16 = vadd.f32 %v381_v12, %v84_v6  ;;  %v521_v19 = vadd.f32 %v456_v14, %v109_v10 }
  0xa4   :  { %v609_v17 = vld [vmem:[#allocation2 + $0xd8] sm:$0xff]  ;;  %833 = vst.msk [vmem:[%s1564_s3 + $0x10] sm:$0xff] %vm18_vm1, %v784_v15  ;;  %v345_v18 = vpop.f32.mrf.mxu0 }
  0xa5   :  { %v662_v20 = vadd.f32 %v1267_v62, %v609_v17  ;;  %v597_v21 = vld [vmem:[#allocation2 + $0x78] sm:$0xff]  ;;  %558 = vst.msk [vmem:[#allocation2 + $0xe0] sm:$0xff] %vm18_vm1, %v508_v9  ;;  %v484_v22 = vadd.f32 %v345_v18, %v72_v13 }
  0xa6   :  { %v650_v23 = vadd.f32 %v1267_v62, %v597_v21  ;;  %v585_v24 = vld [vmem:[#allocation2 + $0x18] sm:$0xff]  ;;  %546 = vst.msk [vmem:[#allocation2 + $0x80] sm:$0xff] %vm18_vm1, %v496_v16 }
  0xa7   :  { %vm711_vm12 = vcmp.ge.f32.partialorder %v662_v20, 0.0  ;;  %v760_v25 = vmul.f32 0.02, %v662_v20  ;;  %v638_v26 = vadd.f32 %v1267_v62, %v585_v24  ;;  %534 = vst.msk [vmem:[#allocation2 + $0x20] sm:$0xff] %vm18_vm1, %v484_v22  ;;  %v99_v21 = vld [vmem:[#allocation2 + $0xf8] sm:$0xff] }
  0xa8   :  { %vm699_vm13 = vcmp.ge.f32.partialorder %v650_v23, 0.0  ;;  %v748_v28 = vmul.f32 0.02, %v650_v23  ;;  %v622_v29 = vld [vmem:[#allocation2 + $0x140] sm:$0xff]  ;;  %v420_v30 = vpop.f32.mrf.mxu2  ;;  %571 = vst.msk [vmem:[#allocation2 + $0x148] sm:$0xff] %vm18_vm1, %v521_v19 }
  0xa9   :  { %v809_v32 = vsel %vm711_vm12, %v662_v20, %v760_v25  ;;  %vm687_vm14 = vcmp.ge.f32.partialorder %v638_v26, 0.0  ;;  %v736_v33 = vmul.f32 0.02, %v638_v26  ;;  %v675_v34 = vadd.f32 %v1267_v62, %v622_v29  ;;  %v75_v29 = vld [vmem:[#allocation2 + $0x38] sm:$0xff] }
  0xaa   :  { %858 = vst.msk [vmem:[%s1564_s3 + $0xd8] sm:$0xff] %vm18_vm1, %v809_v32  ;;  %v797_v35 = vsel %vm699_vm13, %v650_v23, %v748_v28  ;;  %v509_v36 = vadd.f32 %v420_v30, %v97_v27  ;;  %v384_v37 = vpop.f32.mrf.mxu1  ;;  %v459_v40 = vpop.f32.mrf.mxu3 }
  0xab   :  { %846 = vst.msk [vmem:[%s1564_s3 + $0x78] sm:$0xff] %vm18_vm1, %v797_v35  ;;  %v785_v41 = vsel %vm687_vm14, %v638_v26, %v736_v33  ;;  %vm724_vm15 = vcmp.ge.f32.partialorder %v675_v34, 0.0  ;;  %v773_v42 = vmul.f32 0.02, %v675_v34  ;;  %v497_v43 = vadd.f32 %v384_v37, %v85_v31  ;;  %v87_v26 = vld [vmem:[#allocation2 + $0x98] sm:$0xff] }
  0xac   :  { %v610_v44 = vld [vmem:[#allocation2 + $0xe0] sm:$0xff]  ;;  %834 = vst.msk [vmem:[%s1564_s3 + $0x18] sm:$0xff] %vm18_vm1, %v785_v41  ;;  %v348_v45 = vpop.f32.mrf.mxu0  ;;  %v522_v50 = vadd.f32 %v459_v40, %v110_v39 }
  0xad   :  { %v663_v46 = vadd.f32 %v1267_v62, %v610_v44  ;;  %v598_v47 = vld [vmem:[#allocation2 + $0x80] sm:$0xff]  ;;  %v822_v48 = vsel %vm724_vm15, %v675_v34, %v773_v42  ;;  %559 = vst.msk [vmem:[#allocation2 + $0xe8] sm:$0xff] %vm18_vm1, %v509_v36  ;;  %v485_v49 = vadd.f32 %v348_v45, %v73_v38 }
  0xae   :  { %v651_v51 = vadd.f32 %v1267_v62, %v598_v47  ;;  %871 = vst.msk [vmem:[%s1564_s3 + $0x140] sm:$0xff] %vm18_vm1, %v822_v48  ;;  %v586_v52 = vld [vmem:[#allocation2 + $0x20] sm:$0xff] }
  0xaf   :  { %vm712_vm0 = vcmp.ge.f32.partialorder %v663_v46, 0.0  ;;  %v761_v53 = vmul.f32 0.02, %v663_v46  ;;  %v639_v54 = vadd.f32 %v1267_v62, %v586_v52  ;;  %547 = vst.msk [vmem:[#allocation2 + $0x88] sm:$0xff] %vm18_vm1, %v497_v43  ;;  %v623_v55 = vld [vmem:[#allocation2 + $0x148] sm:$0xff]  ;;  %v112_v34 = vld [vmem:[#allocation2 + $0x160] sm:$0xff] }
  0xb0   :  { %vm700_vm2 = vcmp.ge.f32.partialorder %v651_v51, 0.0  ;;  %v749_v57 = vmul.f32 0.02, %v651_v51  ;;  %v676_v58 = vadd.f32 %v1267_v62, %v623_v55  ;;  %v423_v59 = vpop.f32.mrf.mxu2  ;;  %535 = vst.msk [vmem:[#allocation2 + $0x28] sm:$0xff] %vm18_vm1, %v485_v49  ;;  %v100_v49 = vld [vmem:[#allocation2 + $0x100] sm:$0xff] }
  0xb1   :  { %v810_v61 = vsel %vm712_vm0, %v663_v46, %v761_v53  ;;  %vm688_vm3 = vcmp.ge.f32.partialorder %v639_v54, 0.0  ;;  %v737_v63 = vmul.f32 0.02, %v639_v54  ;;  %572 = vst.msk [vmem:[#allocation2 + $0x150] sm:$0xff] %vm18_vm1, %v522_v50  ;;  %v510_v2 = vadd.f32 %v423_v59, %v98_v56  ;;  %v88_v53 = vld [vmem:[#allocation2 + $0xa0] sm:$0xff] }
  0xb2   :  { %859 = vst.msk [vmem:[%s1564_s3 + $0xe0] sm:$0xff] %vm18_vm1, %v810_v61  ;;  %v798_v0 = vsel %vm700_vm2, %v651_v51, %v749_v57  ;;  %vm725_vm4 = vcmp.ge.f32.partialorder %v676_v58, 0.0  ;;  %v774_v1 = vmul.f32 0.02, %v676_v58  ;;  %v387_v3 = vpop.f32.mrf.mxu1  ;;  %v462_v6 = vpop.f32.mrf.mxu3  ;;  %v76_v57 = vld [vmem:[#allocation2 + $0x40] sm:$0xff] }
  0xb3   :  { %847 = vst.msk [vmem:[%s1564_s3 + $0x80] sm:$0xff] %vm18_vm1, %v798_v0  ;;  %v786_v7 = vsel %vm688_vm3, %v639_v54, %v737_v63  ;;  %v498_v8 = vadd.f32 %v387_v3, %v86_v60  ;;  %v523_v14 = vadd.f32 %v462_v6, %v111_v5  ;;  %v113_v63 = vld [vmem:[#allocation2 + $0x168] sm:$0xff] }
  0xb4   :  { %v611_v9 = vld [vmem:[#allocation2 + $0xe8] sm:$0xff]  ;;  %835 = vst.msk [vmem:[%s1564_s3 + $0x20] sm:$0xff] %vm18_vm1, %v786_v7  ;;  %v823_v10 = vsel %vm725_vm4, %v676_v58, %v774_v1  ;;  %v351_v11 = vpop.f32.mrf.mxu0 }
  0xb5   :  { %v664_v12 = vadd.f32 %v1267_v62, %v611_v9  ;;  %872 = vst.msk [vmem:[%s1564_s3 + $0x148] sm:$0xff] %vm18_vm1, %v823_v10  ;;  %v486_v13 = vadd.f32 %v351_v11, %v74_v4  ;;  %v101_v6 = vld [vmem:[#allocation2 + $0x108] sm:$0xff] }
  0xb6   :  { %v599_v15 = vld [vmem:[#allocation2 + $0x88] sm:$0xff]  ;;  %560 = vst.msk [vmem:[#allocation2 + $0xf0] sm:$0xff] %vm18_vm1, %v510_v2 }
  0xb7   :  { %vm713_vm5 = vcmp.ge.f32.partialorder %v664_v12, 0.0  ;;  %v762_v16 = vmul.f32 0.02, %v664_v12  ;;  %v652_v17 = vadd.f32 %v1267_v62, %v599_v15  ;;  %v587_v18 = vld [vmem:[#allocation2 + $0x28] sm:$0xff]  ;;  %548 = vst.msk [vmem:[#allocation2 + $0x90] sm:$0xff] %vm18_vm1, %v498_v8 }
  0xb8   :  { %v640_v19 = vadd.f32 %v1267_v62, %v587_v18  ;;  %v624_v20 = vld [vmem:[#allocation2 + $0x150] sm:$0xff]  ;;  %v426_v22 = vpop.f32.mrf.mxu2  ;;  %536 = vst.msk [vmem:[#allocation2 + $0x30] sm:$0xff] %vm18_vm1, %v486_v13 }
  0xb9   :  { %v811_v23 = vsel %vm713_vm5, %v664_v12, %v762_v16  ;;  %vm701_vm6 = vcmp.ge.f32.partialorder %v652_v17, 0.0  ;;  %v750_v24 = vmul.f32 0.02, %v652_v17  ;;  %v677_v25 = vadd.f32 %v1267_v62, %v624_v20  ;;  %573 = vst.msk [vmem:[#allocation2 + $0x158] sm:$0xff] %vm18_vm1, %v523_v14 }
  0xba   :  { %860 = vst.msk [vmem:[%s1564_s3 + $0xe8] sm:$0xff] %vm18_vm1, %v811_v23  ;;  %vm689_vm7 = vcmp.ge.f32.partialorder %v640_v19, 0.0  ;;  %v738_v27 = vmul.f32 0.02, %v640_v19  ;;  %v390_v28 = vpop.f32.mrf.mxu1  ;;  %v465_v30 = vpop.f32.mrf.mxu3  ;;  %v511_v33 = vadd.f32 %v426_v22, %v99_v21  ;;  %v77_v21 = vld [vmem:[#allocation2 + $0x48] sm:$0xff] }
  0xbb   :  { %v799_v31 = vsel %vm701_vm6, %v652_v17, %v750_v24  ;;  %vm726_vm8 = vcmp.ge.f32.partialorder %v677_v25, 0.0  ;;  %v775_v32 = vmul.f32 0.02, %v677_v25  ;;  %v499_v36 = vadd.f32 %v390_v28, %v87_v26  ;;  %v89_v17 = vld [vmem:[#allocation2 + $0xa8] sm:$0xff] }
  0xbc   :  { %848 = vst.msk [vmem:[%s1564_s3 + $0x88] sm:$0xff] %vm18_vm1, %v799_v31  ;;  %v787_v35 = vsel %vm689_vm7, %v640_v19, %v738_v27  ;;  %v354_v37 = vpop.f32.mrf.mxu0  ;;  %v524_v43 = vadd.f32 %v465_v30, %v112_v34  ;;  %v102_v34 = vld [vmem:[#allocation2 + $0x110] sm:$0xff] }
  0xbd   :  { %v612_v38 = vld [vmem:[#allocation2 + $0xf0] sm:$0xff]  ;;  %836 = vst.msk [vmem:[%s1564_s3 + $0x28] sm:$0xff] %vm18_vm1, %v787_v35  ;;  %v824_v39 = vsel %vm726_vm8, %v677_v25, %v775_v32  ;;  %v487_v40 = vadd.f32 %v354_v37, %v75_v29 }
  0xbe   :  { %v665_v41 = vadd.f32 %v1267_v62, %v612_v38  ;;  %v600_v42 = vld [vmem:[#allocation2 + $0x90] sm:$0xff]  ;;  %873 = vst.msk [vmem:[%s1564_s3 + $0x150] sm:$0xff] %vm18_vm1, %v824_v39 }
  0xbf   :  { %v653_v44 = vadd.f32 %v1267_v62, %v600_v42  ;;  %561 = vst.msk [vmem:[#allocation2 + $0xf8] sm:$0xff] %vm18_vm1, %v511_v33  ;;  %v588_v45 = vld [vmem:[#allocation2 + $0x30] sm:$0xff] }
  0xc0   :  { %vm714_vm9 = vcmp.ge.f32.partialorder %v665_v41, 0.0  ;;  %v763_v46 = vmul.f32 0.02, %v665_v41  ;;  %v641_v47 = vadd.f32 %v1267_v62, %v588_v45  ;;  %549 = vst.msk [vmem:[#allocation2 + $0x98] sm:$0xff] %vm18_vm1, %v499_v36  ;;  %v625_v48 = vld [vmem:[#allocation2 + $0x158] sm:$0xff]  ;;  %v429_v50 = vpop.f32.mrf.mxu2  ;;  %v114_v25 = vld [vmem:[#allocation2 + $0x170] sm:$0xff] }
  0xc1   :  { %vm702_vm10 = vcmp.ge.f32.partialorder %v653_v44, 0.0  ;;  %v751_v51 = vmul.f32 0.02, %v653_v44  ;;  %v678_v52 = vadd.f32 %v1267_v62, %v625_v48  ;;  %537 = vst.msk [vmem:[#allocation2 + $0x38] sm:$0xff] %vm18_vm1, %v487_v40  ;;  %v512_v61 = vadd.f32 %v429_v50, %v100_v49  ;;  %v90_v48 = vld [vmem:[#allocation2 + $0xb0] sm:$0xff] }
  0xc2   :  { %v812_v54 = vsel %vm714_vm9, %v665_v41, %v763_v46  ;;  %vm690_vm11 = vcmp.ge.f32.partialorder %v641_v47, 0.0  ;;  %v739_v55 = vmul.f32 0.02, %v641_v47  ;;  %v393_v56 = vpop.f32.mrf.mxu1  ;;  %574 = vst.msk [vmem:[#allocation2 + $0x160] sm:$0xff] %vm18_vm1, %v524_v43  ;;  %v468_v58 = vpop.f32.mrf.mxu3 }
  0xc3   :  { %861 = vst.msk [vmem:[%s1564_s3 + $0xf0] sm:$0xff] %vm18_vm1, %v812_v54  ;;  %v800_v59 = vsel %vm702_vm10, %v653_v44, %v751_v51  ;;  %vm727_vm12 = vcmp.ge.f32.partialorder %v678_v52, 0.0  ;;  %v776_v60 = vmul.f32 0.02, %v678_v52  ;;  %v500_v1 = vadd.f32 %v393_v56, %v88_v53  ;;  %v78_v53 = vld [vmem:[#allocation2 + $0x50] sm:$0xff] }
  0xc4   :  { %849 = vst.msk [vmem:[%s1564_s3 + $0x90] sm:$0xff] %vm18_vm1, %v800_v59  ;;  %v788_v0 = vsel %vm690_vm11, %v641_v47, %v739_v55  ;;  %v357_v2 = vpop.f32.mrf.mxu0  ;;  %v525_v7 = vadd.f32 %v468_v58, %v113_v63 }
  0xc5   :  { %837 = vst.msk [vmem:[%s1564_s3 + $0x30] sm:$0xff] %vm18_vm1, %v788_v0  ;;  %v825_v3 = vsel %vm727_vm12, %v678_v52, %v776_v60  ;;  %v488_v4 = vadd.f32 %v357_v2, %v76_v57  ;;  %v103_v0 = vld [vmem:[#allocation2 + $0x118] sm:$0xff] }
  0xc6   :  { %v613_v5 = vld [vmem:[#allocation2 + $0xf8] sm:$0xff]  ;;  %874 = vst.msk [vmem:[%s1564_s3 + $0x158] sm:$0xff] %vm18_vm1, %v825_v3 }
  0xc7   :  { %v666_v8 = vadd.f32 %v1267_v62, %v613_v5  ;;  %v601_v9 = vld [vmem:[#allocation2 + $0x98] sm:$0xff]  ;;  %562 = vst.msk [vmem:[#allocation2 + $0x100] sm:$0xff] %vm18_vm1, %v512_v61 }
  0xc8   :  { %v654_v10 = vadd.f32 %v1267_v62, %v601_v9  ;;  %v589_v11 = vld [vmem:[#allocation2 + $0x38] sm:$0xff]  ;;  %550 = vst.msk [vmem:[#allocation2 + $0xa0] sm:$0xff] %vm18_vm1, %v500_v1  ;;  %v432_v12 = vpop.f32.mrf.mxu2 }
  0xc9   :  { %vm715_vm13 = vcmp.ge.f32.partialorder %v666_v8, 0.0  ;;  %v764_v13 = vmul.f32 0.02, %v666_v8  ;;  %v642_v14 = vadd.f32 %v1267_v62, %v589_v11  ;;  %v626_v15 = vld [vmem:[#allocation2 + $0x160] sm:$0xff]  ;;  %v513_v16 = vadd.f32 %v432_v12, %v101_v6  ;;  %538 = vst.msk [vmem:[#allocation2 + $0x40] sm:$0xff] %vm18_vm1, %v488_v4  ;;  %v115_v61 = vld [vmem:[#allocation2 + $0x178] sm:$0xff] }
  0xca   :  { %vm703_vm14 = vcmp.ge.f32.partialorder %v654_v10, 0.0  ;;  %v752_v18 = vmul.f32 0.02, %v654_v10  ;;  %v679_v19 = vadd.f32 %v1267_v62, %v626_v15  ;;  %v396_v20 = vpop.f32.mrf.mxu1  ;;  %575 = vst.msk [vmem:[#allocation2 + $0x168] sm:$0xff] %vm18_vm1, %v525_v7  ;;  %v471_v22 = vpop.f32.mrf.mxu3 }
  0xcb   :  { %v813_v23 = vsel %vm715_vm13, %v666_v8, %v764_v13  ;;  %vm691_vm15 = vcmp.ge.f32.partialorder %v642_v14, 0.0  ;;  %v740_v24 = vmul.f32 0.02, %v642_v14  ;;  %563 = vst.msk [vmem:[#allocation2 + $0x108] sm:$0xff] %vm18_vm1, %v513_v16  ;;  %v501_v28 = vadd.f32 %v396_v20, %v89_v17 }
  0xcc   :  { %862 = vst.msk [vmem:[%s1564_s3 + $0xf8] sm:$0xff] %vm18_vm1, %v813_v23  ;;  %v801_v26 = vsel %vm703_vm14, %v654_v10, %v752_v18  ;;  %vm728_vm0 = vcmp.ge.f32.partialorder %v679_v19, 0.0  ;;  %v777_v27 = vmul.f32 0.02, %v679_v19  ;;  %v360_v29 = vpop.f32.mrf.mxu0  ;;  %v526_v35 = vadd.f32 %v471_v22, %v114_v25  ;;  %v79_v18 = vld [vmem:[#allocation2 + $0x58] sm:$0xff]  ;;  %v116_v25 = vld [vmem:[#allocation2 + $0x180] sm:$0xff] }
  0xcd   :  { %850 = vst.msk [vmem:[%s1564_s3 + $0x98] sm:$0xff] %vm18_vm1, %v801_v26  ;;  %v789_v30 = vsel %vm691_vm15, %v642_v14, %v740_v24  ;;  %v489_v31 = vadd.f32 %v360_v29, %v77_v21  ;;  %v91_v14 = vld [vmem:[#allocation2 + $0xb8] sm:$0xff] }
  0xce   :  { %v614_v32 = vld [vmem:[#allocation2 + $0x100] sm:$0xff]  ;;  %838 = vst.msk [vmem:[%s1564_s3 + $0x38] sm:$0xff] %vm18_vm1, %v789_v30  ;;  %v826_v33 = vsel %vm728_vm0, %v679_v19, %v777_v27 }
  0xcf   :  { %v667_v36 = vadd.f32 %v1267_v62, %v614_v32  ;;  %v602_v37 = vld [vmem:[#allocation2 + $0xa0] sm:$0xff]  ;;  %875 = vst.msk [vmem:[%s1564_s3 + $0x160] sm:$0xff] %vm18_vm1, %v826_v33 }
  0xd0   :  { %v655_v38 = vadd.f32 %v1267_v62, %v602_v37  ;;  %v590_v39 = vld [vmem:[#allocation2 + $0x40] sm:$0xff]  ;;  %551 = vst.msk [vmem:[#allocation2 + $0xa8] sm:$0xff] %vm18_vm1, %v501_v28  ;;  %v435_v40 = vpop.f32.mrf.mxu2 }
  0xd1   :  { %vm716_vm2 = vcmp.ge.f32.partialorder %v667_v36, 0.0  ;;  %v765_v41 = vmul.f32 0.02, %v667_v36  ;;  %v643_v42 = vadd.f32 %v1267_v62, %v590_v39  ;;  %v627_v43 = vld [vmem:[#allocation2 + $0x168] sm:$0xff]  ;;  %v514_v44 = vadd.f32 %v435_v40, %v102_v34  ;;  %539 = vst.msk [vmem:[#allocation2 + $0x48] sm:$0xff] %vm18_vm1, %v489_v31  ;;  %v104_v28 = vld [vmem:[#allocation2 + $0x120] sm:$0xff] }
  0xd2   :  { %vm704_vm3 = vcmp.ge.f32.partialorder %v655_v38, 0.0  ;;  %v753_v45 = vmul.f32 0.02, %v655_v38  ;;  %v615_v46 = vld [vmem:[#allocation2 + $0x108] sm:$0xff]  ;;  %v680_v47 = vadd.f32 %v1267_v62, %v627_v43  ;;  %v399_v49 = vpop.f32.mrf.mxu1  ;;  %576 = vst.msk [vmem:[#allocation2 + $0x170] sm:$0xff] %vm18_vm1, %v526_v35  ;;  %v474_v54 = vpop.f32.mrf.mxu3  ;;  %v92_v33 = vld [vmem:[#allocation2 + $0xc0] sm:$0xff] }
  0xd3   :  { %v814_v50 = vsel %vm716_vm2, %v667_v36, %v765_v41  ;;  %v668_v51 = vadd.f32 %v1267_v62, %v615_v46  ;;  %vm692_vm4 = vcmp.ge.f32.partialorder %v643_v42, 0.0  ;;  %v741_v52 = vmul.f32 0.02, %v643_v42  ;;  %564 = vst.msk [vmem:[#allocation2 + $0x110] sm:$0xff] %vm18_vm1, %v514_v44 }
  0xd4   :  { %863 = vst.msk [vmem:[%s1564_s3 + $0x100] sm:$0xff] %vm18_vm1, %v814_v50  ;;  %v802_v55 = vsel %vm704_vm3, %v655_v38, %v753_v45  ;;  %vm729_vm5 = vcmp.ge.f32.partialorder %v680_v47, 0.0  ;;  %v778_v56 = vmul.f32 0.02, %v680_v47  ;;  %v363_v57 = vpop.f32.mrf.mxu0  ;;  %v502_v60 = vadd.f32 %v399_v49, %v90_v48 }
  0xd5   :  { %851 = vst.msk [vmem:[%s1564_s3 + $0xa0] sm:$0xff] %vm18_vm1, %v802_v55  ;;  %vm717_vm6 = vcmp.ge.f32.partialorder %v668_v51, 0.0  ;;  %v766_v58 = vmul.f32 0.02, %v668_v51  ;;  %v790_v59 = vsel %vm692_vm4, %v643_v42, %v741_v52  ;;  %v490_v1 = vadd.f32 %v363_v57, %v78_v53 }
  0xd6   :  { %839 = vst.msk [vmem:[%s1564_s3 + $0x40] sm:$0xff] %vm18_vm1, %v790_v59  ;;  %v827_v63 = vsel %vm729_vm5, %v680_v47, %v778_v56  ;;  %v527_v7 = vadd.f32 %v474_v54, %v115_v61 }
  0xd7   :  { %v815_v2 = vsel %vm717_vm6, %v668_v51, %v766_v58  ;;  %v603_v3 = vld [vmem:[#allocation2 + $0xa8] sm:$0xff]  ;;  %876 = vst.msk [vmem:[%s1564_s3 + $0x168] sm:$0xff] %vm18_vm1, %v827_v63 }
  0xd8   :  { %864 = vst.msk [vmem:[%s1564_s3 + $0x108] sm:$0xff] %vm18_vm1, %v815_v2  ;;  %v656_v4 = vadd.f32 %v1267_v62, %v603_v3  ;;  %v591_v5 = vld [vmem:[#allocation2 + $0x48] sm:$0xff]  ;;  %v438_v6 = vpop.f32.mrf.mxu2 }
  0xd9   :  { %v644_v8 = vadd.f32 %v1267_v62, %v591_v5  ;;  %552 = vst.msk [vmem:[#allocation2 + $0xb0] sm:$0xff] %vm18_vm1, %v502_v60  ;;  %v628_v9 = vld [vmem:[#allocation2 + $0x170] sm:$0xff]  ;;  %v515_v10 = vadd.f32 %v438_v6, %v103_v0  ;;  %v105_v51 = vld [vmem:[#allocation2 + $0x128] sm:$0xff] }
  0xda   :  { %vm705_vm7 = vcmp.ge.f32.partialorder %v656_v4, 0.0  ;;  %v754_v11 = vmul.f32 0.02, %v656_v4  ;;  %v616_v12 = vld [vmem:[#allocation2 + $0x110] sm:$0xff]  ;;  %v681_v13 = vadd.f32 %v1267_v62, %v628_v9  ;;  %540 = vst.msk [vmem:[#allocation2 + $0x50] sm:$0xff] %vm18_vm1, %v490_v1  ;;  %v402_v15 = vpop.f32.mrf.mxu1  ;;  %v477_v26 = vpop.f32.mrf.mxu3 }
  0xdb   :  { %v669_v16 = vadd.f32 %v1267_v62, %v616_v12  ;;  %vm693_vm8 = vcmp.ge.f32.partialorder %v644_v8, 0.0  ;;  %v742_v17 = vmul.f32 0.02, %v644_v8  ;;  %565 = vst.msk [vmem:[#allocation2 + $0x118] sm:$0xff] %vm18_vm1, %v515_v10  ;;  %v503_v24 = vadd.f32 %v402_v15, %v91_v14 }
  0xdc   :  { %v803_v19 = vsel %vm705_vm7, %v656_v4, %v754_v11  ;;  %vm730_vm9 = vcmp.ge.f32.partialorder %v681_v13, 0.0  ;;  %v779_v20 = vmul.f32 0.02, %v681_v13  ;;  %577 = vst.msk [vmem:[#allocation2 + $0x178] sm:$0xff] %vm18_vm1, %v527_v7  ;;  %v366_v21 = vpop.f32.mrf.mxu0  ;;  %v528_v34 = vadd.f32 %v477_v26, %v116_v25 }
  0xdd   :  { %852 = vst.msk [vmem:[%s1564_s3 + $0xa8] sm:$0xff] %vm18_vm1, %v803_v19  ;;  %vm718_vm10 = vcmp.ge.f32.partialorder %v669_v16, 0.0  ;;  %v767_v22 = vmul.f32 0.02, %v669_v16  ;;  %v791_v23 = vsel %vm693_vm8, %v644_v8, %v742_v17  ;;  %v491_v29 = vadd.f32 %v366_v21, %v79_v18 }
  0xde   :  { %840 = vst.msk [vmem:[%s1564_s3 + $0x48] sm:$0xff] %vm18_vm1, %v791_v23  ;;  %v828_v27 = vsel %vm730_vm9, %v681_v13, %v779_v20 }
  0xdf   :  { %v816_v30 = vsel %vm718_vm10, %v669_v16, %v767_v22  ;;  %877 = vst.msk [vmem:[%s1564_s3 + $0x170] sm:$0xff] %vm18_vm1, %v828_v27 }
  0xe0   :  { %865 = vst.msk [vmem:[%s1564_s3 + $0x110] sm:$0xff] %vm18_vm1, %v816_v30  ;;  %v604_v31 = vld [vmem:[#allocation2 + $0xb0] sm:$0xff]  ;;  %v441_v32 = vpop.f32.mrf.mxu2 }
  0xe1   :  { %v657_v35 = vadd.f32 %v1267_v62, %v604_v31  ;;  %v592_v36 = vld [vmem:[#allocation2 + $0x50] sm:$0xff]  ;;  %553 = vst.msk [vmem:[#allocation2 + $0xb8] sm:$0xff] %vm18_vm1, %v503_v24  ;;  %v516_v37 = vadd.f32 %v441_v32, %v104_v28 }
  0xe2   :  { %v617_v38 = vld [vmem:[#allocation2 + $0x118] sm:$0xff]  ;;  %v645_v39 = vadd.f32 %v1267_v62, %v592_v36  ;;  %541 = vst.msk [vmem:[#allocation2 + $0x58] sm:$0xff] %vm18_vm1, %v491_v29  ;;  %v405_v40 = vpop.f32.mrf.mxu1 }
  0xe3   :  { %vm706_vm11 = vcmp.ge.f32.partialorder %v657_v35, 0.0  ;;  %v755_v41 = vmul.f32 0.02, %v657_v35  ;;  %v670_v42 = vadd.f32 %v1267_v62, %v617_v38  ;;  %v629_v43 = vld [vmem:[#allocation2 + $0x178] sm:$0xff]  ;;  %566 = vst.msk [vmem:[#allocation2 + $0x120] sm:$0xff] %vm18_vm1, %v516_v37  ;;  %v504_v44 = vadd.f32 %v405_v40, %v92_v33 }
  0xe4   :  { %vm694_vm12 = vcmp.ge.f32.partialorder %v645_v39, 0.0  ;;  %v743_v45 = vmul.f32 0.02, %v645_v39  ;;  %v682_v46 = vadd.f32 %v1267_v62, %v629_v43  ;;  %578 = vst.msk [vmem:[#allocation2 + $0x180] sm:$0xff] %vm18_vm1, %v528_v34 }
  0xe5   :  { %v804_v47 = vsel %vm706_vm11, %v657_v35, %v755_v41  ;;  %vm719_vm13 = vcmp.ge.f32.partialorder %v670_v42, 0.0  ;;  %v768_v48 = vmul.f32 0.02, %v670_v42  ;;  %554 = vst.msk [vmem:[#allocation2 + $0xc0] sm:$0xff] %vm18_vm1, %v504_v44 }
  0xe6   :  { %853 = vst.msk [vmem:[%s1564_s3 + $0xb0] sm:$0xff] %vm18_vm1, %v804_v47  ;;  %v792_v49 = vsel %vm694_vm12, %v645_v39, %v743_v45  ;;  %vm731_vm14 = vcmp.ge.f32.partialorder %v682_v46, 0.0  ;;  %v780_v50 = vmul.f32 0.02, %v682_v46 }
  0xe7   :  { %v817_v52 = vsel %vm719_vm13, %v670_v42, %v768_v48  ;;  %841 = vst.msk [vmem:[%s1564_s3 + $0x50] sm:$0xff] %vm18_vm1, %v792_v49 }
  0xe8   :  { %866 = vst.msk [vmem:[%s1564_s3 + $0x118] sm:$0xff] %vm18_vm1, %v817_v52  ;;  %v605_v53 = vld [vmem:[#allocation2 + $0xb8] sm:$0xff]  ;;  %v829_v54 = vsel %vm731_vm14, %v682_v46, %v780_v50  ;;  %v444_v55 = vpop.f32.mrf.mxu2 }
  0xe9   :  { %v658_v56 = vadd.f32 %v1267_v62, %v605_v53  ;;  %878 = vst.msk [vmem:[%s1564_s3 + $0x178] sm:$0xff] %vm18_vm1, %v829_v54  ;;  %v593_v57 = vld [vmem:[#allocation2 + $0x58] sm:$0xff]  ;;  %v517_v58 = vadd.f32 %v444_v55, %v105_v51 }
  0xea   :  { %v618_v59 = vld [vmem:[#allocation2 + $0x120] sm:$0xff]  ;;  %v646_v60 = vadd.f32 %v1267_v62, %v593_v57 }
  0xeb   :  { %vm707_vm15 = vcmp.ge.f32.partialorder %v658_v56, 0.0  ;;  %v756_v61 = vmul.f32 0.02, %v658_v56  ;;  %v671_v63 = vadd.f32 %v1267_v62, %v618_v59  ;;  %v630_v0 = vld [vmem:[#allocation2 + $0x180] sm:$0xff]  ;;  %567 = vst.msk [vmem:[#allocation2 + $0x128] sm:$0xff] %vm18_vm1, %v517_v58 }
  0xec   :  { %vm695_vm0 = vcmp.ge.f32.partialorder %v646_v60, 0.0  ;;  %v744_v1 = vmul.f32 0.02, %v646_v60  ;;  %v606_v2 = vld [vmem:[#allocation2 + $0xc0] sm:$0xff]  ;;  %v683_v3 = vadd.f32 %v1267_v62, %v630_v0 }
  0xed   :  { %v805_v4 = vsel %vm707_vm15, %v658_v56, %v756_v61  ;;  %vm720_vm2 = vcmp.ge.f32.partialorder %v671_v63, 0.0  ;;  %v769_v5 = vmul.f32 0.02, %v671_v63  ;;  %v659_v6 = vadd.f32 %v1267_v62, %v606_v2 }
  0xee   :  { %854 = vst.msk [vmem:[%s1564_s3 + $0xb8] sm:$0xff] %vm18_vm1, %v805_v4  ;;  %v793_v7 = vsel %vm695_vm0, %v646_v60, %v744_v1  ;;  %vm732_vm3 = vcmp.ge.f32.partialorder %v683_v3, 0.0  ;;  %v781_v8 = vmul.f32 0.02, %v683_v3 }
  0xef   :  { %v818_v9 = vsel %vm720_vm2, %v671_v63, %v769_v5  ;;  %842 = vst.msk [vmem:[%s1564_s3 + $0x58] sm:$0xff] %vm18_vm1, %v793_v7  ;;  %vm708_vm4 = vcmp.ge.f32.partialorder %v659_v6, 0.0  ;;  %v757_v10 = vmul.f32 0.02, %v659_v6 }
  0xf0   :  { %867 = vst.msk [vmem:[%s1564_s3 + $0x120] sm:$0xff] %vm18_vm1, %v818_v9  ;;  %v830_v11 = vsel %vm732_vm3, %v683_v3, %v781_v8 }
  0xf1   :  { %v806_v12 = vsel %vm708_vm4, %v659_v6, %v757_v10  ;;  %879 = vst.msk [vmem:[%s1564_s3 + $0x180] sm:$0xff] %vm18_vm1, %v830_v11 }
  0xf2   :  { %855 = vst.msk [vmem:[%s1564_s3 + $0xc0] sm:$0xff] %vm18_vm1, %v806_v12  ;;  %v619_v13 = vld [vmem:[#allocation2 + $0x128] sm:$0xff] }
  0xf3   :  { %v672_v14 = vadd.f32 %v1267_v62, %v619_v13 }
  0xf5   :  { %vm721_vm5 = vcmp.ge.f32.partialorder %v672_v14, 0.0  ;;  %v770_v15 = vmul.f32 0.02, %v672_v14 }
  0xf7   :  { %v819_v16 = vsel %vm721_vm5, %v672_v14, %v770_v15 }
  0xf8   :  { %868 = vst.msk [vmem:[%s1564_s3 + $0x128] sm:$0xff] %vm18_vm1, %v819_v16 }

// kernel: discriminator_forward.5
= control target key start
LH: loop header
LB: loop body
LE: loop exit
PB: predicated region body
PF: predicated region fallthrough
CT: control target
= control target key end

     0   :  { %s1654_s1 = inlined_call_operand.vmem [shape: f32[1024,128], index: 1, kind: input, shape index: {}]   ;;  %s1655_s0 = inlined_call_operand.vmem [shape: f32[98,1024], index: 0, kind: input, shape index: {}]   ;;  %s1656_s2 = inlined_call_operand.vmem [shape: f32[1,128], index: 2, kind: input, shape index: {}]   ;;  %s1657_s3 = inlined_call_operand.vmem [shape: f32[98,128], index: 3, kind: output, shape index: {}]  }
   0x1   :  { %v163_v0 = vld [vmem:[%s1654_s1 + $0x78] sm:$0xff]  ;;  %v162_v2 = vld [vmem:[%s1654_s1 + $0x70] sm:$0xff]  ;;  %v161_v6 = vld [vmem:[%s1654_s1 + $0x68] sm:$0xff] }
   0x2   :  { %v195_v1 = vld [vmem:[%s1654_s1 + $0x178] sm:$0xff]  ;;  %276 = vmatpush.msra.mxu0 %v163_v0  ;;  %v194_v4 = vld [vmem:[%s1654_s1 + $0x170] sm:$0xff]  ;;  %v193_v8 = vld [vmem:[%s1654_s1 + $0x168] sm:$0xff] }
   0x3   :  { %388 = vmatpush.msra.mxu2 %v195_v1  ;;  %v179_v3 = vld [vmem:[%s1654_s1 + $0xf8] sm:$0xff]  ;;  %v178_v7 = vld [vmem:[%s1654_s1 + $0xf0] sm:$0xff]  ;;  %v177_v10 = vld [vmem:[%s1654_s1 + $0xe8] sm:$0xff] }
   0x4   :  { %v211_v5 = vld [vmem:[%s1654_s1 + $0x1f8] sm:$0xff]  ;;  %332 = vmatpush.msra.mxu1 %v179_v3  ;;  %277 = vmatpush.msra.mxu0 %v162_v2  ;;  %v210_v9 = vld [vmem:[%s1654_s1 + $0x1f0] sm:$0xff]  ;;  %v160_v11 = vld [vmem:[%s1654_s1 + $0x60] sm:$0xff] }
   0x5   :  { %444 = vmatpush.msra.mxu3 %v211_v5  ;;  %389 = vmatpush.msra.mxu2 %v194_v4  ;;  %v192_v12 = vld [vmem:[%s1654_s1 + $0x160] sm:$0xff]  ;;  %v209_v13 = vld [vmem:[%s1654_s1 + $0x1e8] sm:$0xff]  ;;  %v159_v16 = vld [vmem:[%s1654_s1 + $0x58] sm:$0xff] }
   0x6   :  { %333 = vmatpush.msra.mxu1 %v178_v7  ;;  %278 = vmatpush.msra.mxu0 %v161_v6  ;;  %v176_v14 = vld [vmem:[%s1654_s1 + $0xe0] sm:$0xff]  ;;  %v191_v17 = vld [vmem:[%s1654_s1 + $0x158] sm:$0xff]  ;;  %v158_v20 = vld [vmem:[%s1654_s1 + $0x50] sm:$0xff] }
   0x7   :  { %445 = vmatpush.msra.mxu3 %v210_v9  ;;  %390 = vmatpush.msra.mxu2 %v193_v8  ;;  %v208_v15 = vld [vmem:[%s1654_s1 + $0x1e0] sm:$0xff]  ;;  %v175_v18 = vld [vmem:[%s1654_s1 + $0xd8] sm:$0xff]  ;;  %v190_v21 = vld [vmem:[%s1654_s1 + $0x150] sm:$0xff] }
   0x8   :  { %334 = vmatpush.msra.mxu1 %v177_v10  ;;  %279 = vmatpush.msra.mxu0 %v160_v11  ;;  %v207_v19 = vld [vmem:[%s1654_s1 + $0x1d8] sm:$0xff]  ;;  %v174_v22 = vld [vmem:[%s1654_s1 + $0xd0] sm:$0xff]  ;;  %v157_v24 = vld [vmem:[%s1654_s1 + $0x48] sm:$0xff] }
   0x9   :  { %446 = vmatpush.msra.mxu3 %v209_v13  ;;  %391 = vmatpush.msra.mxu2 %v192_v12  ;;  %v206_v23 = vld [vmem:[%s1654_s1 + $0x1d0] sm:$0xff]  ;;  %v189_v25 = vld [vmem:[%s1654_s1 + $0x148] sm:$0xff]  ;;  %v156_v28 = vld [vmem:[%s1654_s1 + $0x40] sm:$0xff] }
   0xa   :  { %335 = vmatpush.msra.mxu1 %v176_v14  ;;  %280 = vmatpush.msra.mxu0 %v159_v16  ;;  %v173_v26 = vld [vmem:[%s1654_s1 + $0xc8] sm:$0xff]  ;;  %v188_v29 = vld [vmem:[%s1654_s1 + $0x140] sm:$0xff]  ;;  %v155_v32 = vld [vmem:[%s1654_s1 + $0x38] sm:$0xff] }
   0xb   :  { %447 = vmatpush.msra.mxu3 %v208_v15  ;;  %392 = vmatpush.msra.mxu2 %v191_v17  ;;  %v205_v27 = vld [vmem:[%s1654_s1 + $0x1c8] sm:$0xff]  ;;  %v172_v30 = vld [vmem:[%s1654_s1 + $0xc0] sm:$0xff]  ;;  %v187_v33 = vld [vmem:[%s1654_s1 + $0x138] sm:$0xff] }
   0xc   :  { %336 = vmatpush.msra.mxu1 %v175_v18  ;;  %281 = vmatpush.msra.mxu0 %v158_v20  ;;  %v204_v31 = vld [vmem:[%s1654_s1 + $0x1c0] sm:$0xff]  ;;  %v171_v34 = vld [vmem:[%s1654_s1 + $0xb8] sm:$0xff]  ;;  %v154_v36 = vld [vmem:[%s1654_s1 + $0x30] sm:$0xff] }
   0xd   :  { %448 = vmatpush.msra.mxu3 %v207_v19  ;;  %393 = vmatpush.msra.mxu2 %v190_v21  ;;  %v203_v35 = vld [vmem:[%s1654_s1 + $0x1b8] sm:$0xff]  ;;  %v186_v37 = vld [vmem:[%s1654_s1 + $0x130] sm:$0xff]  ;;  %v153_v40 = vld [vmem:[%s1654_s1 + $0x28] sm:$0xff] }
   0xe   :  { %337 = vmatpush.msra.mxu1 %v174_v22  ;;  %282 = vmatpush.msra.mxu0 %v157_v24  ;;  %v170_v38 = vld [vmem:[%s1654_s1 + $0xb0] sm:$0xff]  ;;  %v185_v41 = vld [vmem:[%s1654_s1 + $0x128] sm:$0xff]  ;;  %v152_v44 = vld [vmem:[%s1654_s1 + $0x20] sm:$0xff] }
   0xf   :  { %449 = vmatpush.msra.mxu3 %v206_v23  ;;  %394 = vmatpush.msra.mxu2 %v189_v25  ;;  %v202_v39 = vld [vmem:[%s1654_s1 + $0x1b0] sm:$0xff]  ;;  %v169_v42 = vld [vmem:[%s1654_s1 + $0xa8] sm:$0xff]  ;;  %v184_v45 = vld [vmem:[%s1654_s1 + $0x120] sm:$0xff] }
  0x10   :  { %338 = vmatpush.msra.mxu1 %v173_v26  ;;  %283 = vmatpush.msra.mxu0 %v156_v28  ;;  %v201_v43 = vld [vmem:[%s1654_s1 + $0x1a8] sm:$0xff]  ;;  %v168_v46 = vld [vmem:[%s1654_s1 + $0xa0] sm:$0xff]  ;;  %v151_v48 = vld [vmem:[%s1654_s1 + $0x18] sm:$0xff] }
  0x11   :  { %450 = vmatpush.msra.mxu3 %v205_v27  ;;  %395 = vmatpush.msra.mxu2 %v188_v29  ;;  %v200_v47 = vld [vmem:[%s1654_s1 + $0x1a0] sm:$0xff]  ;;  %v183_v49 = vld [vmem:[%s1654_s1 + $0x118] sm:$0xff]  ;;  %v150_v52 = vld [vmem:[%s1654_s1 + $0x10] sm:$0xff] }
  0x12   :  { %339 = vmatpush.msra.mxu1 %v172_v30  ;;  %284 = vmatpush.msra.mxu0 %v155_v32  ;;  %v167_v50 = vld [vmem:[%s1654_s1 + $0x98] sm:$0xff]  ;;  %v182_v53 = vld [vmem:[%s1654_s1 + $0x110] sm:$0xff]  ;;  %v149_v56 = vld [vmem:[%s1654_s1 + $0x8] sm:$0xff] }
  0x13   :  { %451 = vmatpush.msra.mxu3 %v204_v31  ;;  %396 = vmatpush.msra.mxu2 %v187_v33  ;;  %v199_v51 = vld [vmem:[%s1654_s1 + $0x198] sm:$0xff]  ;;  %v166_v54 = vld [vmem:[%s1654_s1 + $0x90] sm:$0xff]  ;;  %v181_v57 = vld [vmem:[%s1654_s1 + $0x108] sm:$0xff] }
  0x14   :  { %340 = vmatpush.msra.mxu1 %v171_v34  ;;  %285 = vmatpush.msra.mxu0 %v154_v36  ;;  %v198_v55 = vld [vmem:[%s1654_s1 + $0x190] sm:$0xff]  ;;  %v165_v58 = vld [vmem:[%s1654_s1 + $0x88] sm:$0xff]  ;;  %v148_v60 = vld [vmem:[%s1654_s1] sm:$0xff] }
  0x15   :  { %452 = vmatpush.msra.mxu3 %v203_v35  ;;  %397 = vmatpush.msra.mxu2 %v186_v37  ;;  %v197_v59 = vld [vmem:[%s1654_s1 + $0x188] sm:$0xff]  ;;  %v180_v61 = vld [vmem:[%s1654_s1 + $0x100] sm:$0xff]  ;;  %v46_v63 = vld [vmem:[%s1655_s0 + $0x10] sm:$0xff] }
  0x16   :  { %341 = vmatpush.msra.mxu1 %v170_v38  ;;  %286 = vmatpush.msra.mxu0 %v153_v40  ;;  %v44_v62 = vld [vmem:[%s1655_s0] sm:$0xff]  ;;  %v259_v0 = vld [vmem:[%s1654_s1 + $0x378] sm:$0xff]  ;;  %v45_v3 = vld [vmem:[%s1655_s0 + $0x8] sm:$0xff] }
  0x17   :  { %453 = vmatpush.msra.mxu3 %v202_v39  ;;  %398 = vmatpush.msra.mxu2 %v185_v41  ;;  %v164_v1 = vld [vmem:[%s1654_s1 + $0x80] sm:$0xff]  ;;  %v47_v4 = vld [vmem:[%s1655_s0 + $0x18] sm:$0xff]  ;;  %v258_v8 = vld [vmem:[%s1654_s1 + $0x370] sm:$0xff] }
  0x18   :  { %342 = vmatpush.msra.mxu1 %v169_v42  ;;  %287 = vmatpush.msra.mxu0 %v152_v44  ;;  %v196_v2 = vld [vmem:[%s1654_s1 + $0x180] sm:$0xff]  ;;  %v227_v5 = vld [vmem:[%s1654_s1 + $0x278] sm:$0xff]  ;;  %v226_v9 = vld [vmem:[%s1654_s1 + $0x270] sm:$0xff] }
  0x19   :  { %454 = vmatpush.msra.mxu3 %v201_v43  ;;  %399 = vmatpush.msra.mxu2 %v184_v45  ;;  %v275_v6 = vld [vmem:[%s1654_s1 + $0x3f8] sm:$0xff]  ;;  %v274_v10 = vld [vmem:[%s1654_s1 + $0x3f0] sm:$0xff]  ;;  %v257_v12 = vld [vmem:[%s1654_s1 + $0x368] sm:$0xff] }
  0x1a   :  { %343 = vmatpush.msra.mxu1 %v168_v46  ;;  %288 = vmatpush.msra.mxu0 %v151_v48  ;;  %v243_v7 = vld [vmem:[%s1654_s1 + $0x2f8] sm:$0xff]  ;;  %v242_v11 = vld [vmem:[%s1654_s1 + $0x2f0] sm:$0xff]  ;;  %v225_v13 = vld [vmem:[%s1654_s1 + $0x268] sm:$0xff] }
  0x1b   :  { %455 = vmatpush.msra.mxu3 %v200_v47  ;;  %400 = vmatpush.msra.mxu2 %v183_v49  ;;  %v52_v14 = vld [vmem:[%s1655_s0 + $0x40] sm:$0xff]  ;;  %v54_v15 = vld [vmem:[%s1655_s0 + $0x50] sm:$0xff]  ;;  %v273_v16 = vld [vmem:[%s1654_s1 + $0x3e8] sm:$0xff] }
  0x1c   :  { %344 = vmatpush.msra.mxu1 %v167_v50  ;;  %289 = vmatpush.msra.mxu0 %v150_v52  ;;  %v241_v17 = vld [vmem:[%s1654_s1 + $0x2e8] sm:$0xff]  ;;  %v256_v19 = vld [vmem:[%s1654_s1 + $0x360] sm:$0xff]  ;;  %v55_v20 = vld [vmem:[%s1655_s0 + $0x58] sm:$0xff] }
  0x1d   :  { %456 = vmatpush.msra.mxu3 %v199_v51  ;;  %401 = vmatpush.msra.mxu2 %v182_v53  ;;  %v53_v18 = vld [vmem:[%s1655_s0 + $0x48] sm:$0xff]  ;;  %v224_v21 = vld [vmem:[%s1654_s1 + $0x260] sm:$0xff]  ;;  %v255_v24 = vld [vmem:[%s1654_s1 + $0x358] sm:$0xff] }
  0x1e   :  { %345 = vmatpush.msra.mxu1 %v166_v54  ;;  %290 = vmatpush.msra.mxu0 %v149_v56  ;;  %v272_v22 = vld [vmem:[%s1654_s1 + $0x3e0] sm:$0xff]  ;;  %v223_v25 = vld [vmem:[%s1654_s1 + $0x258] sm:$0xff]  ;;  %v254_v28 = vld [vmem:[%s1654_s1 + $0x350] sm:$0xff] }
  0x1f   :  { %457 = vmatpush.msra.mxu3 %v198_v55  ;;  %402 = vmatpush.msra.mxu2 %v181_v57  ;;  %v240_v23 = vld [vmem:[%s1654_s1 + $0x2e0] sm:$0xff]  ;;  %v271_v26 = vld [vmem:[%s1654_s1 + $0x3d8] sm:$0xff]  ;;  %v222_v29 = vld [vmem:[%s1654_s1 + $0x250] sm:$0xff] }
  0x20   :  { %346 = vmatpush.msra.mxu1 %v165_v58  ;;  %291 = vmatpush.msra.mxu0 %v148_v60  ;;  %v239_v27 = vld [vmem:[%s1654_s1 + $0x2d8] sm:$0xff]  ;;  %v60_v30 = vld [vmem:[%s1655_s0 + $0x80] sm:$0xff]  ;;  %v62_v31 = vld [vmem:[%s1655_s0 + $0x90] sm:$0xff] }
  0x21   :  { %458 = vmatpush.msra.mxu3 %v197_v59  ;;  %403 = vmatpush.msra.mxu2 %v180_v61  ;;  %v270_v32 = vld [vmem:[%s1654_s1 + $0x3d0] sm:$0xff]  ;;  %v61_v34 = vld [vmem:[%s1655_s0 + $0x88] sm:$0xff]  ;;  %v63_v36 = vld [vmem:[%s1655_s0 + $0x98] sm:$0xff] }
  0x22   :  { %292 = vmatmul.f32.vlgmr.msra.gmra.mxu0 %v44_v62  ;;  %404 = vmatmul.f32.vlgmr.msra.gmra.mxu2 %v46_v63  ;;  %v238_v33 = vld [vmem:[%s1654_s1 + $0x2d0] sm:$0xff]  ;;  %v253_v35 = vld [vmem:[%s1654_s1 + $0x348] sm:$0xff]  ;;  %v252_v40 = vld [vmem:[%s1654_s1 + $0x340] sm:$0xff] }
  0x23   :  { %612 = vmatpush.msrb.mxu2 %v259_v0  ;;  %347 = vmatpush.msra.mxu1 %v164_v1  ;;  %v221_v37 = vld [vmem:[%s1654_s1 + $0x248] sm:$0xff]  ;;  %v220_v41 = vld [vmem:[%s1654_s1 + $0x240] sm:$0xff]  ;;  %v251_v44 = vld [vmem:[%s1654_s1 + $0x338] sm:$0xff] }
  0x24   :  { %459 = vmatpush.msra.mxu3 %v196_v2  ;;  %348 = vmatmul.f32.vlgmr.msra.gmra.mxu1 %v45_v3  ;;  %v269_v38 = vld [vmem:[%s1654_s1 + $0x3c8] sm:$0xff]  ;;  %v268_v42 = vld [vmem:[%s1654_s1 + $0x3c0] sm:$0xff]  ;;  %v219_v45 = vld [vmem:[%s1654_s1 + $0x238] sm:$0xff] }
  0x25   :  { %460 = vmatmul.f32.vlgmr.msra.gmra.mxu3 %v47_v4  ;;  %500 = vmatpush.msrb.mxu0 %v227_v5  ;;  %v237_v39 = vld [vmem:[%s1654_s1 + $0x2c8] sm:$0xff]  ;;  %v236_v43 = vld [vmem:[%s1654_s1 + $0x2c0] sm:$0xff]  ;;  %v70_v47 = vld [vmem:[%s1655_s0 + $0xd0] sm:$0xff] }
  0x26   :  { %668 = vmatpush.msrb.mxu3 %v275_v6  ;;  %556 = vmatpush.msrb.mxu1 %v243_v7  ;;  %v68_v46 = vld [vmem:[%s1655_s0 + $0xc0] sm:$0xff]  ;;  %v267_v48 = vld [vmem:[%s1654_s1 + $0x3b8] sm:$0xff]  ;;  %v69_v49 = vld [vmem:[%s1655_s0 + $0xc8] sm:$0xff] }
  0x27   :  { %613 = vmatpush.msrb.mxu2 %v258_v8  ;;  %501 = vmatpush.msrb.mxu0 %v226_v9  ;;  %v71_v50 = vld [vmem:[%s1655_s0 + $0xd8] sm:$0xff]  ;;  %v250_v52 = vld [vmem:[%s1654_s1 + $0x330] sm:$0xff]  ;;  %v76_v56 = vld [vmem:[%s1655_s0 + $0x100] sm:$0xff] }
  0x28   :  { %669 = vmatpush.msrb.mxu3 %v274_v10  ;;  %557 = vmatpush.msrb.mxu1 %v242_v11  ;;  %v235_v51 = vld [vmem:[%s1654_s1 + $0x2b8] sm:$0xff]  ;;  %v218_v53 = vld [vmem:[%s1654_s1 + $0x230] sm:$0xff]  ;;  %v77_v58 = vld [vmem:[%s1655_s0 + $0x108] sm:$0xff] }
  0x29   :  { %614 = vmatpush.msrb.mxu2 %v257_v12  ;;  %502 = vmatpush.msrb.mxu0 %v225_v13  ;;  %v266_v54 = vld [vmem:[%s1654_s1 + $0x3b0] sm:$0xff]  ;;  %v79_v59 = vld [vmem:[%s1655_s0 + $0x118] sm:$0xff]  ;;  %v249_v60 = vld [vmem:[%s1654_s1 + $0x328] sm:$0xff] }
  0x2a   :  { %295 = vmatmul.f32.gmra.mxu0 %v52_v14  ;;  %407 = vmatmul.f32.gmra.mxu2 %v54_v15  ;;  %v234_v55 = vld [vmem:[%s1654_s1 + $0x2b0] sm:$0xff]  ;;  %v217_v61 = vld [vmem:[%s1654_s1 + $0x228] sm:$0xff]  ;;  %v84_v0 = vld [vmem:[%s1655_s0 + $0x140] sm:$0xff] }
  0x2b   :  { %670 = vmatpush.msrb.mxu3 %v273_v16  ;;  %558 = vmatpush.msrb.mxu1 %v241_v17  ;;  %v78_v57 = vld [vmem:[%s1655_s0 + $0x110] sm:$0xff]  ;;  %v265_v62 = vld [vmem:[%s1654_s1 + $0x3a8] sm:$0xff]  ;;  %v87_v3 = vld [vmem:[%s1655_s0 + $0x158] sm:$0xff] }
  0x2c   :  { %351 = vmatmul.f32.gmra.mxu1 %v53_v18  ;;  %615 = vmatpush.msrb.mxu2 %v256_v19  ;;  %v233_v63 = vld [vmem:[%s1654_s1 + $0x2a8] sm:$0xff]  ;;  %v86_v1 = vld [vmem:[%s1655_s0 + $0x150] sm:$0xff]  ;;  %v248_v4 = vld [vmem:[%s1654_s1 + $0x320] sm:$0xff] }
  0x2d   :  { %463 = vmatmul.f32.gmra.mxu3 %v55_v20  ;;  %503 = vmatpush.msrb.mxu0 %v224_v21  ;;  %v85_v2 = vld [vmem:[%s1655_s0 + $0x148] sm:$0xff]  ;;  %v216_v5 = vld [vmem:[%s1654_s1 + $0x220] sm:$0xff]  ;;  %v247_v8 = vld [vmem:[%s1654_s1 + $0x318] sm:$0xff] }
  0x2e   :  { %671 = vmatpush.msrb.mxu3 %v272_v22  ;;  %559 = vmatpush.msrb.mxu1 %v240_v23  ;;  %v264_v6 = vld [vmem:[%s1654_s1 + $0x3a0] sm:$0xff]  ;;  %v94_v10 = vld [vmem:[%s1655_s0 + $0x190] sm:$0xff]  ;;  %v93_v11 = vld [vmem:[%s1655_s0 + $0x188] sm:$0xff] }
  0x2f   :  { %616 = vmatpush.msrb.mxu2 %v255_v24  ;;  %504 = vmatpush.msrb.mxu0 %v223_v25  ;;  %v232_v7 = vld [vmem:[%s1654_s1 + $0x2a0] sm:$0xff]  ;;  %v95_v12 = vld [vmem:[%s1655_s0 + $0x198] sm:$0xff]  ;;  %v246_v16 = vld [vmem:[%s1654_s1 + $0x310] sm:$0xff] }
  0x30   :  { %672 = vmatpush.msrb.mxu3 %v271_v26  ;;  %560 = vmatpush.msrb.mxu1 %v239_v27  ;;  %v92_v9 = vld [vmem:[%s1655_s0 + $0x180] sm:$0xff]  ;;  %v215_v13 = vld [vmem:[%s1654_s1 + $0x218] sm:$0xff]  ;;  %v214_v17 = vld [vmem:[%s1654_s1 + $0x210] sm:$0xff] }
  0x31   :  { %617 = vmatpush.msrb.mxu2 %v254_v28  ;;  %505 = vmatpush.msrb.mxu0 %v222_v29  ;;  %v263_v14 = vld [vmem:[%s1654_s1 + $0x398] sm:$0xff]  ;;  %v262_v18 = vld [vmem:[%s1654_s1 + $0x390] sm:$0xff]  ;;  %v100_v19 = vld [vmem:[%s1655_s0 + $0x1c0] sm:$0xff] }
  0x32   :  { %298 = vmatmul.f32.gmra.mxu0 %v60_v30  ;;  %410 = vmatmul.f32.gmra.mxu2 %v62_v31  ;;  %v231_v15 = vld [vmem:[%s1654_s1 + $0x298] sm:$0xff]  ;;  %v102_v20 = vld [vmem:[%s1655_s0 + $0x1d0] sm:$0xff]  ;;  %v101_v21 = vld [vmem:[%s1655_s0 + $0x1c8] sm:$0xff] }
  0x33   :  { %673 = vmatpush.msrb.mxu3 %v270_v32  ;;  %561 = vmatpush.msrb.mxu1 %v238_v33  ;;  %v103_v22 = vld [vmem:[%s1655_s0 + $0x1d8] sm:$0xff]  ;;  %v230_v23 = vld [vmem:[%s1654_s1 + $0x290] sm:$0xff]  ;;  %v245_v24 = vld [vmem:[%s1654_s1 + $0x308] sm:$0xff] }
  0x34   :  { %354 = vmatmul.f32.gmra.mxu1 %v61_v34  ;;  %618 = vmatpush.msrb.mxu2 %v253_v35  ;;  %v213_v25 = vld [vmem:[%s1654_s1 + $0x208] sm:$0xff]  ;;  %v108_v28 = vld [vmem:[%s1655_s0 + $0x200] sm:$0xff]  ;;  %v110_v29 = vld [vmem:[%s1655_s0 + $0x210] sm:$0xff] }
  0x35   :  { %466 = vmatmul.f32.gmra.mxu3 %v63_v36  ;;  %506 = vmatpush.msrb.mxu0 %v221_v37  ;;  %v261_v26 = vld [vmem:[%s1654_s1 + $0x388] sm:$0xff]  ;;  %v111_v31 = vld [vmem:[%s1655_s0 + $0x218] sm:$0xff]  ;;  %v244_v32 = vld [vmem:[%s1654_s1 + $0x300] sm:$0xff] }
  0x36   :  { %674 = vmatpush.msrb.mxu3 %v269_v38  ;;  %562 = vmatpush.msrb.mxu1 %v237_v39  ;;  %v229_v27 = vld [vmem:[%s1654_s1 + $0x288] sm:$0xff]  ;;  %v212_v33 = vld [vmem:[%s1654_s1 + $0x200] sm:$0xff]  ;;  %v118_v37 = vld [vmem:[%s1655_s0 + $0x250] sm:$0xff] }
  0x37   :  { %619 = vmatpush.msrb.mxu2 %v252_v40  ;;  %507 = vmatpush.msrb.mxu0 %v220_v41  ;;  %v109_v30 = vld [vmem:[%s1655_s0 + $0x208] sm:$0xff]  ;;  %v260_v34 = vld [vmem:[%s1654_s1 + $0x380] sm:$0xff]  ;;  %v119_v39 = vld [vmem:[%s1655_s0 + $0x258] sm:$0xff] }
  0x38   :  { %675 = vmatpush.msrb.mxu3 %v268_v42  ;;  %563 = vmatpush.msrb.mxu1 %v236_v43  ;;  %v228_v35 = vld [vmem:[%s1654_s1 + $0x280] sm:$0xff]  ;;  %v117_v38 = vld [vmem:[%s1655_s0 + $0x248] sm:$0xff]  ;;  %v126_v41 = vld [vmem:[%s1655_s0 + $0x290] sm:$0xff] }
  0x39   :  { %620 = vmatpush.msrb.mxu2 %v251_v44  ;;  %508 = vmatpush.msrb.mxu0 %v219_v45  ;;  %v116_v36 = vld [vmem:[%s1655_s0 + $0x240] sm:$0xff]  ;;  %v125_v42 = vld [vmem:[%s1655_s0 + $0x288] sm:$0xff]  ;;  %v127_v43 = vld [vmem:[%s1655_s0 + $0x298] sm:$0xff] }
  0x3a   :  { %301 = vmatmul.f32.gmra.mxu0 %v68_v46  ;;  %413 = vmatmul.f32.gmra.mxu2 %v70_v47  ;;  %v124_v40 = vld [vmem:[%s1655_s0 + $0x280] sm:$0xff]  ;;  %v134_v45 = vld [vmem:[%s1655_s0 + $0x2d0] sm:$0xff]  ;;  %v133_v46 = vld [vmem:[%s1655_s0 + $0x2c8] sm:$0xff] }
  0x3b   :  { %676 = vmatpush.msrb.mxu3 %v267_v48  ;;  %564 = vmatpush.msrb.mxu1 %v235_v51  ;;  %v132_v44 = vld [vmem:[%s1655_s0 + $0x2c0] sm:$0xff]  ;;  %v135_v47 = vld [vmem:[%s1655_s0 + $0x2d8] sm:$0xff] }
  0x3c   :  { %357 = vmatmul.f32.gmra.mxu1 %v69_v49  ;;  %621 = vmatpush.msrb.mxu2 %v250_v52  ;;  %v140_v48 = vld [vmem:[%s1655_s0 + $0x300] sm:$0x3]  ;;  %v142_v49 = vld [vmem:[%s1655_s0 + $0x310] sm:$0x3]  ;;  %v143_v51 = vld [vmem:[%s1655_s0 + $0x318] sm:$0x3] }
  0x3d   :  { %469 = vmatmul.f32.gmra.mxu3 %v71_v50  ;;  %509 = vmatpush.msrb.mxu0 %v218_v53  ;;  %v141_v50 = vld [vmem:[%s1655_s0 + $0x308] sm:$0x3]  ;;  %v48_v52 = vld [vmem:[%s1655_s0 + $0x20] sm:$0xff]  ;;  %v50_v53 = vld [vmem:[%s1655_s0 + $0x30] sm:$0xff] }
  0x3e   :  { %677 = vmatpush.msrb.mxu3 %v266_v54  ;;  %565 = vmatpush.msrb.mxu1 %v234_v55  ;;  %v49_v54 = vld [vmem:[%s1655_s0 + $0x28] sm:$0xff]  ;;  %v51_v55 = vld [vmem:[%s1655_s0 + $0x38] sm:$0xff] }
  0x3f   :  { %622 = vmatpush.msrb.mxu2 %v249_v60  ;;  %510 = vmatpush.msrb.mxu0 %v217_v61  ;;  %v64_v60 = vld [vmem:[%s1655_s0 + $0xa0] sm:$0xff]  ;;  %v66_v61 = vld [vmem:[%s1655_s0 + $0xb0] sm:$0xff] }
  0x40   :  { %678 = vmatpush.msrb.mxu3 %v265_v62  ;;  %566 = vmatpush.msrb.mxu1 %v233_v63  ;;  %v65_v62 = vld [vmem:[%s1655_s0 + $0xa8] sm:$0xff]  ;;  %v67_v63 = vld [vmem:[%s1655_s0 + $0xb8] sm:$0xff] }
  0x41   :  { %623 = vmatpush.msrb.mxu2 %v248_v4  ;;  %511 = vmatpush.msrb.mxu0 %v216_v5  ;;  %v73_v4 = vld [vmem:[%s1655_s0 + $0xe8] sm:$0xff]  ;;  %v75_v5 = vld [vmem:[%s1655_s0 + $0xf8] sm:$0xff] }
  0x42   :  { %304 = vmatmul.f32.gmra.mxu0 %v76_v56  ;;  %416 = vmatmul.f32.gmra.mxu2 %v78_v57  ;;  %v56_v56 = vld [vmem:[%s1655_s0 + $0x60] sm:$0xff]  ;;  %v58_v57 = vld [vmem:[%s1655_s0 + $0x70] sm:$0xff] }
  0x43   :  { %679 = vmatpush.msrb.mxu3 %v264_v6  ;;  %567 = vmatpush.msrb.mxu1 %v232_v7 }
  0x44   :  { %360 = vmatmul.f32.gmra.mxu1 %v77_v58  ;;  %624 = vmatpush.msrb.mxu2 %v247_v8  ;;  %v57_v58 = vld [vmem:[%s1655_s0 + $0x68] sm:$0xff] }
  0x45   :  { %472 = vmatmul.f32.gmra.mxu3 %v79_v59  ;;  %512 = vmatpush.msrb.mxu0 %v215_v13  ;;  %v59_v59 = vld [vmem:[%s1655_s0 + $0x78] sm:$0xff] }
  0x46   :  { %680 = vmatpush.msrb.mxu3 %v263_v14  ;;  %568 = vmatpush.msrb.mxu1 %v231_v15  ;;  %v81_v15 = vld [vmem:[%s1655_s0 + $0x128] sm:$0xff] }
  0x47   :  { %625 = vmatpush.msrb.mxu2 %v246_v16  ;;  %513 = vmatpush.msrb.mxu0 %v214_v17  ;;  %v83_v16 = vld [vmem:[%s1655_s0 + $0x138] sm:$0xff] }
  0x48   :  { %681 = vmatpush.msrb.mxu3 %v262_v18  ;;  %569 = vmatpush.msrb.mxu1 %v230_v23 }
  0x49   :  { %626 = vmatpush.msrb.mxu2 %v245_v24  ;;  %514 = vmatpush.msrb.mxu0 %v213_v25 }
  0x4a   :  { %307 = vmatmul.f32.gmra.mxu0 %v84_v0  ;;  %419 = vmatmul.f32.gmra.mxu2 %v86_v1  ;;  %v72_v1 = vld [vmem:[%s1655_s0 + $0xe0] sm:$0xff] }
  0x4b   :  { %682 = vmatpush.msrb.mxu3 %v261_v26  ;;  %570 = vmatpush.msrb.mxu1 %v229_v27  ;;  %v89_v26 = vld [vmem:[%s1655_s0 + $0x168] sm:$0xff] }
  0x4c   :  { %363 = vmatmul.f32.gmra.mxu1 %v85_v2  ;;  %627 = vmatpush.msrb.mxu2 %v244_v32  ;;  %v74_v2 = vld [vmem:[%s1655_s0 + $0xf0] sm:$0xff]  ;;  %v96_v32 = vld [vmem:[%s1655_s0 + $0x1a0] sm:$0xff] }
  0x4d   :  { %475 = vmatmul.f32.gmra.mxu3 %v87_v3  ;;  %515 = vmatpush.msrb.mxu0 %v212_v33  ;;  %v98_v33 = vld [vmem:[%s1655_s0 + $0x1b0] sm:$0xff] }
  0x4e   :  { %683 = vmatpush.msrb.mxu3 %v260_v34  ;;  %571 = vmatpush.msrb.mxu1 %v228_v35 }
  0x52   :  { %310 = vmatmul.f32.gmra.mxu0 %v92_v9  ;;  %422 = vmatmul.f32.gmra.mxu2 %v94_v10  ;;  %v80_v10 = vld [vmem:[%s1655_s0 + $0x120] sm:$0xff] }
  0x54   :  { %366 = vmatmul.f32.gmra.mxu1 %v93_v11  ;;  %v82_v11 = vld [vmem:[%s1655_s0 + $0x130] sm:$0xff] }
  0x55   :  { %478 = vmatmul.f32.gmra.mxu3 %v95_v12 }
  0x5a   :  { %313 = vmatmul.f32.gmra.mxu0 %v100_v19  ;;  %425 = vmatmul.f32.gmra.mxu2 %v102_v20 }
  0x5c   :  { %369 = vmatmul.f32.gmra.mxu1 %v101_v21  ;;  %v88_v21 = vld [vmem:[%s1655_s0 + $0x160] sm:$0xff] }
  0x5d   :  { %481 = vmatmul.f32.gmra.mxu3 %v103_v22  ;;  %v90_v22 = vld [vmem:[%s1655_s0 + $0x170] sm:$0xff] }
  0x62   :  { %316 = vmatmul.f32.gmra.mxu0 %v108_v28  ;;  %428 = vmatmul.f32.gmra.mxu2 %v110_v29  ;;  %v91_v28 = vld [vmem:[%s1655_s0 + $0x178] sm:$0xff] }
  0x64   :  { %372 = vmatmul.f32.gmra.mxu1 %v109_v30 }
  0x65   :  { %484 = vmatmul.f32.gmra.mxu3 %v111_v31 }
  0x6a   :  { %319 = vmatmul.f32.gmra.mxu0 %v116_v36  ;;  %431 = vmatmul.f32.gmra.mxu2 %v118_v37  ;;  %v97_v37 = vld [vmem:[%s1655_s0 + $0x1a8] sm:$0xff] }
  0x6c   :  { %375 = vmatmul.f32.gmra.mxu1 %v117_v38 }
  0x6d   :  { %487 = vmatmul.f32.gmra.mxu3 %v119_v39  ;;  %v99_v39 = vld [vmem:[%s1655_s0 + $0x1b8] sm:$0xff] }
  0x72   :  { %322 = vmatmul.f32.gmra.mxu0 %v124_v40  ;;  %434 = vmatmul.f32.gmra.mxu2 %v126_v41 }
  0x74   :  { %378 = vmatmul.f32.gmra.mxu1 %v125_v42 }
  0x75   :  { %490 = vmatmul.f32.gmra.mxu3 %v127_v43  ;;  %v104_v43 = vld [vmem:[%s1655_s0 + $0x1e0] sm:$0xff] }
  0x7a   :  { %325 = vmatmul.f32.gmra.mxu0 %v132_v44  ;;  %437 = vmatmul.f32.gmra.mxu2 %v134_v45  ;;  %v106_v44 = vld [vmem:[%s1655_s0 + $0x1f0] sm:$0xff] }
  0x7c   :  { %381 = vmatmul.f32.gmra.mxu1 %v133_v46 }
  0x7d   :  { %493 = vmatmul.f32.gmra.mxu3 %v135_v47 }
  0x82   :  { %328 = vmatmul.f32.gmra.mxu0 %v140_v48  ;;  %440 = vmatmul.f32.gmra.mxu2 %v142_v49  ;;  %v105_v48 = vld [vmem:[%s1655_s0 + $0x1e8] sm:$0xff] }
  0x84   :  { %384 = vmatmul.f32.gmra.mxu1 %v141_v50  ;;  %v107_v50 = vld [vmem:[%s1655_s0 + $0x1f8] sm:$0xff] }
  0x85   :  { %496 = vmatmul.f32.gmra.mxu3 %v143_v51 }
  0x8a   :  { %516 = vmatmul.f32.vlgmr.msrb.gmra.mxu0 %v48_v52  ;;  %628 = vmatmul.f32.vlgmr.msrb.gmra.mxu2 %v50_v53 }
  0x8c   :  { %572 = vmatmul.f32.vlgmr.msrb.gmra.mxu1 %v49_v54  ;;  %v112_v54 = vld [vmem:[%s1655_s0 + $0x220] sm:$0xff] }
  0x8d   :  { %684 = vmatmul.f32.vlgmr.msrb.gmra.mxu3 %v51_v55  ;;  %v114_v55 = vld [vmem:[%s1655_s0 + $0x230] sm:$0xff] }
  0x92   :  { %519 = vmatmul.f32.gmra.mxu0 %v56_v56  ;;  %631 = vmatmul.f32.gmra.mxu2 %v58_v57 }
  0x94   :  { %575 = vmatmul.f32.gmra.mxu1 %v57_v58 }
  0x95   :  { %687 = vmatmul.f32.gmra.mxu3 %v59_v59  ;;  %v113_v59 = vld [vmem:[%s1655_s0 + $0x228] sm:$0xff] }
  0x9a   :  { %522 = vmatmul.f32.gmra.mxu0 %v64_v60  ;;  %634 = vmatmul.f32.gmra.mxu2 %v66_v61  ;;  %v115_v61 = vld [vmem:[%s1655_s0 + $0x238] sm:$0xff] }
  0x9c   :  { %578 = vmatmul.f32.gmra.mxu1 %v65_v62 }
  0x9d   :  { %690 = vmatmul.f32.gmra.mxu3 %v67_v63 }
  0x9f   :  { %v293_v0 = vpop.f32.mrf.mxu0 }
  0xa1   :  { %v349_v3 = vpop.f32.mrf.mxu1 }
  0xa2   :  { %525 = vmatmul.f32.gmra.mxu0 %v72_v1  ;;  %637 = vmatmul.f32.gmra.mxu2 %v74_v2  ;;  %v350_v6 = vadd.f32 %v349_v3, %v293_v0  ;;  %v120_v1 = vld [vmem:[%s1655_s0 + $0x260] sm:$0xff]  ;;  %v122_v2 = vld [vmem:[%s1655_s0 + $0x270] sm:$0xff] }
  0xa4   :  { %581 = vmatmul.f32.gmra.mxu1 %v73_v4 }
  0xa5   :  { %693 = vmatmul.f32.gmra.mxu3 %v75_v5  ;;  %v405_v7 = vpop.f32.mrf.mxu2 }
  0xa6   :  { %v406_v8 = vadd.f32 %v405_v7, %v350_v6  ;;  %v121_v6 = vld [vmem:[%s1655_s0 + $0x268] sm:$0xff] }
  0xa7   :  { %v296_v9 = vpop.f32.mrf.mxu0 }
  0xa8   :  { %v461_v12 = vpop.f32.mrf.mxu3 }
  0xa9   :  { %v1456_v13 = vadd.f32 %v461_v12, %v406_v8  ;;  %v352_v14 = vpop.f32.mrf.mxu1  ;;  %v123_v8 = vld [vmem:[%s1655_s0 + $0x278] sm:$0xff]  ;;  %v128_v12 = vld [vmem:[%s1655_s0 + $0x2a0] sm:$0xff] }
  0xaa   :  { %528 = vmatmul.f32.gmra.mxu0 %v80_v10  ;;  %640 = vmatmul.f32.gmra.mxu2 %v82_v11  ;;  %v353_v17 = vadd.f32 %v352_v14, %v296_v9  ;;  %v130_v14 = vld [vmem:[%s1655_s0 + $0x2b0] sm:$0xff] }
  0xac   :  { %584 = vmatmul.f32.gmra.mxu1 %v81_v15 }
  0xad   :  { %696 = vmatmul.f32.gmra.mxu3 %v83_v16  ;;  %v408_v18 = vpop.f32.mrf.mxu2 }
  0xae   :  { %v409_v19 = vadd.f32 %v408_v18, %v353_v17  ;;  %v129_v18 = vld [vmem:[%s1655_s0 + $0x2a8] sm:$0xff] }
  0xaf   :  { %v299_v20 = vpop.f32.mrf.mxu0 }
  0xb0   :  { %v464_v23 = vpop.f32.mrf.mxu3 }
  0xb1   :  { %v1470_v24 = vadd.f32 %v464_v23, %v409_v19  ;;  %v355_v25 = vpop.f32.mrf.mxu1 }
  0xb2   :  { %v356_v27 = vadd.f32 %v355_v25, %v299_v20  ;;  %531 = vmatmul.f32.gmra.mxu0 %v88_v21  ;;  %643 = vmatmul.f32.gmra.mxu2 %v90_v22  ;;  %v131_v20 = vld [vmem:[%s1655_s0 + $0x2b8] sm:$0xff]  ;;  %v136_v25 = vld [vmem:[%s1655_s0 + $0x2e0] sm:$0xff] }
  0xb4   :  { %587 = vmatmul.f32.gmra.mxu1 %v89_v26  ;;  %v138_v26 = vld [vmem:[%s1655_s0 + $0x2f0] sm:$0xff] }
  0xb5   :  { %699 = vmatmul.f32.gmra.mxu3 %v91_v28  ;;  %v411_v29 = vpop.f32.mrf.mxu2 }
  0xb6   :  { %v412_v30 = vadd.f32 %v411_v29, %v356_v27 }
  0xb7   :  { %v302_v31 = vpop.f32.mrf.mxu0 }
  0xb8   :  { %v467_v34 = vpop.f32.mrf.mxu3 }
  0xb9   :  { %v1484_v35 = vadd.f32 %v467_v34, %v412_v30  ;;  %v358_v36 = vpop.f32.mrf.mxu1  ;;  %v137_v30 = vld [vmem:[%s1655_s0 + $0x2e8] sm:$0xff] }
  0xba   :  { %v359_v38 = vadd.f32 %v358_v36, %v302_v31  ;;  %534 = vmatmul.f32.gmra.mxu0 %v96_v32  ;;  %646 = vmatmul.f32.gmra.mxu2 %v98_v33  ;;  %v139_v32 = vld [vmem:[%s1655_s0 + $0x2f8] sm:$0xff] }
  0xbc   :  { %590 = vmatmul.f32.gmra.mxu1 %v97_v37  ;;  %v144_v37 = vld [vmem:[%s1655_s0 + $0x320] sm:$0x3] }
  0xbd   :  { %702 = vmatmul.f32.gmra.mxu3 %v99_v39  ;;  %v414_v40 = vpop.f32.mrf.mxu2 }
  0xbe   :  { %v415_v41 = vadd.f32 %v414_v40, %v359_v38  ;;  %v146_v38 = vld [vmem:[%s1655_s0 + $0x330] sm:$0x3] }
  0xbf   :  { %v305_v42 = vpop.f32.mrf.mxu0 }
  0xc0   :  { %v470_v45 = vpop.f32.mrf.mxu3 }
  0xc1   :  { %v1498_v46 = vadd.f32 %v470_v45, %v415_v41  ;;  %v361_v47 = vpop.f32.mrf.mxu1 }
  0xc2   :  { %v362_v49 = vadd.f32 %v361_v47, %v305_v42  ;;  %537 = vmatmul.f32.gmra.mxu0 %v104_v43  ;;  %649 = vmatmul.f32.gmra.mxu2 %v106_v44  ;;  %v145_v42 = vld [vmem:[%s1655_s0 + $0x328] sm:$0x3]  ;;  %v147_v44 = vld [vmem:[%s1655_s0 + $0x338] sm:$0x3] }
  0xc4   :  { %593 = vmatmul.f32.gmra.mxu1 %v105_v48 }
  0xc5   :  { %705 = vmatmul.f32.gmra.mxu3 %v107_v50  ;;  %v417_v51 = vpop.f32.mrf.mxu2 }
  0xc6   :  { %v418_v52 = vadd.f32 %v417_v51, %v362_v49 }
  0xc7   :  { %v308_v53 = vpop.f32.mrf.mxu0 }
  0xc8   :  { %v473_v56 = vpop.f32.mrf.mxu3 }
  0xc9   :  { %v1512_v57 = vadd.f32 %v473_v56, %v418_v52  ;;  %v364_v58 = vpop.f32.mrf.mxu1  ;;  %v841_v52 = vmov 0.0  }
  0xca   :  { %v365_v60 = vadd.f32 %v364_v58, %v308_v53  ;;  %540 = vmatmul.f32.gmra.mxu0 %v112_v54  ;;  %652 = vmatmul.f32.gmra.mxu2 %v114_v55  ;;  %30 = vst [vmem:[#allocation2 + $0x40] sm:$0x3] %v841_v52 }
  0xcc   :  { %596 = vmatmul.f32.gmra.mxu1 %v113_v59 }
  0xcd   :  { %708 = vmatmul.f32.gmra.mxu3 %v115_v61  ;;  %v420_v62 = vpop.f32.mrf.mxu2 }
  0xce   :  { %v421_v63 = vadd.f32 %v420_v62, %v365_v60 }
  0xcf   :  { %v311_v0 = vpop.f32.mrf.mxu0 }
  0xd0   :  { %v476_v3 = vpop.f32.mrf.mxu3 }
  0xd1   :  { %v1526_v4 = vadd.f32 %v476_v3, %v421_v63  ;;  %v367_v5 = vpop.f32.mrf.mxu1 }
  0xd2   :  { %v368_v7 = vadd.f32 %v367_v5, %v311_v0  ;;  %543 = vmatmul.f32.gmra.mxu0 %v120_v1  ;;  %655 = vmatmul.f32.gmra.mxu2 %v122_v2 }
  0xd4   :  { %599 = vmatmul.f32.gmra.mxu1 %v121_v6 }
  0xd5   :  { %711 = vmatmul.f32.gmra.mxu3 %v123_v8  ;;  %v423_v9 = vpop.f32.mrf.mxu2 }
  0xd6   :  { %v424_v10 = vadd.f32 %v423_v9, %v368_v7 }
  0xd7   :  { %v314_v11 = vpop.f32.mrf.mxu0 }
  0xd8   :  { %v479_v15 = vpop.f32.mrf.mxu3 }
  0xd9   :  { %v1540_v16 = vadd.f32 %v479_v15, %v424_v10  ;;  %v370_v17 = vpop.f32.mrf.mxu1 }
  0xda   :  { %v371_v19 = vadd.f32 %v370_v17, %v314_v11  ;;  %546 = vmatmul.f32.gmra.mxu0 %v128_v12  ;;  %658 = vmatmul.f32.gmra.mxu2 %v130_v14 }
  0xdc   :  { %602 = vmatmul.f32.gmra.mxu1 %v129_v18 }
  0xdd   :  { %714 = vmatmul.f32.gmra.mxu3 %v131_v20  ;;  %v426_v21 = vpop.f32.mrf.mxu2 }
  0xde   :  { %v427_v22 = vadd.f32 %v426_v21, %v371_v19 }
  0xdf   :  { %v317_v23 = vpop.f32.mrf.mxu0 }
  0xe0   :  { %v482_v27 = vpop.f32.mrf.mxu3 }
  0xe1   :  { %v1554_v28 = vadd.f32 %v482_v27, %v427_v22  ;;  %v373_v29 = vpop.f32.mrf.mxu1  ;;  %v1589_v22 = vld [vmem:[%s1656_s2] ss:$0 sm:$0xff] }
  0xe2   :  { %v374_v31 = vadd.f32 %v373_v29, %v317_v23  ;;  %549 = vmatmul.f32.gmra.mxu0 %v136_v25  ;;  %661 = vmatmul.f32.gmra.mxu2 %v138_v26 }
  0xe4   :  { %605 = vmatmul.f32.gmra.mxu1 %v137_v30 }
  0xe5   :  { %717 = vmatmul.f32.gmra.mxu3 %v139_v32  ;;  %v429_v33 = vpop.f32.mrf.mxu2 }
  0xe6   :  { %v430_v34 = vadd.f32 %v429_v33, %v374_v31 }
  0xe7   :  { %v320_v36 = vpop.f32.mrf.mxu0 }
  0xe8   :  { %v485_v39 = vpop.f32.mrf.mxu3 }
  0xe9   :  { %v1568_v40 = vadd.f32 %v485_v39, %v430_v34  ;;  %v376_v41 = vpop.f32.mrf.mxu1 }
  0xea   :  { %v377_v43 = vadd.f32 %v376_v41, %v320_v36  ;;  %552 = vmatmul.f32.gmra.mxu0 %v144_v37  ;;  %664 = vmatmul.f32.gmra.mxu2 %v146_v38 }
  0xec   :  { %608 = vmatmul.f32.gmra.mxu1 %v145_v42 }
  0xed   :  { %720 = vmatmul.f32.gmra.mxu3 %v147_v44  ;;  %v432_v45 = vpop.f32.mrf.mxu2 }
  0xee   :  { %v433_v47 = vadd.f32 %v432_v45, %v377_v43 }
  0xef   :  { %v323_v48 = vpop.f32.mrf.mxu0 }
  0xf0   :  { %v488_v49 = vpop.f32.mrf.mxu3 }
  0xf1   :  { %v1576_v50 = vadd.f32 %v488_v49, %v433_v47  ;;  %v379_v51 = vpop.f32.mrf.mxu1 }
  0xf2   :  { %v380_v53 = vadd.f32 %v379_v51, %v323_v48 }
  0xf5   :  { %v435_v54 = vpop.f32.mrf.mxu2 }
  0xf6   :  { %v436_v55 = vadd.f32 %v435_v54, %v380_v53 }
  0xf7   :  { %v326_v56 = vpop.f32.mrf.mxu0 }
  0xf8   :  { %v491_v58 = vpop.f32.mrf.mxu3 }
  0xf9   :  { %v1578_v59 = vadd.f32 %v491_v58, %v436_v55  ;;  %v382_v60 = vpop.f32.mrf.mxu1 }
  0xfa   :  { %v383_v61 = vadd.f32 %v382_v60, %v326_v56 }
  0xfd   :  { %v438_v62 = vpop.f32.mrf.mxu2 }
  0xfe   :  { %v439_v63 = vadd.f32 %v438_v62, %v383_v61 }
  0xff   :  { %v329_v0 = vpop.f32.mrf.mxu0 }
 0x100   :  { %v494_v1 = vpop.f32.mrf.mxu3 }
 0x101   :  { %v1580_v2 = vadd.f32 %v494_v1, %v439_v63  ;;  %v385_v3 = vpop.f32.mrf.mxu1 }
 0x102   :  { %v386_v5 = vadd.f32 %v385_v3, %v329_v0 }
 0x105   :  { %v441_v6 = vpop.f32.mrf.mxu2 }
 0x106   :  { %v442_v7 = vadd.f32 %v441_v6, %v386_v5 }
 0x107   :  { %v517_v8 = vpop.f32.mrf.mxu0 }
 0x108   :  { %v497_v9 = vpop.f32.mrf.mxu3  ;;  %v518_v10 = vadd.f32 %v517_v8, %v1456_v13 }
 0x109   :  { %v1583_v11 = vadd.f32 %v497_v9, %v442_v7  ;;  %v573_v12 = vpop.f32.mrf.mxu1 }
 0x10a   :  { %v574_v14 = vadd.f32 %v573_v12, %v518_v10 }
 0x10d   :  { %v629_v15 = vpop.f32.mrf.mxu2 }
 0x10e   :  { %v630_v17 = vadd.f32 %v629_v15, %v574_v14 }
 0x10f   :  { %v520_v18 = vpop.f32.mrf.mxu0 }
 0x110   :  { %v521_v19 = vadd.f32 %v520_v18, %v1470_v24  ;;  %v685_v20 = vpop.f32.mrf.mxu3 }
 0x111   :  { %v686_v21 = vadd.f32 %v685_v20, %v630_v17  ;;  %v576_v23 = vpop.f32.mrf.mxu1 }
 0x112   :  { %v577_v25 = vadd.f32 %v576_v23, %v521_v19 }
 0x113   :  { %v770_v13 = vadd.f32 %v1589_v22, %v686_v21 }
 0x115   :  { %v632_v26 = vpop.f32.mrf.mxu2  ;;  %vm783_vm0 = vcmp.ge.f32.partialorder %v770_v13, 0.0  ;;  %v796_v29 = vmul.f32 0.02, %v770_v13 }
 0x116   :  { %v633_v27 = vadd.f32 %v632_v26, %v577_v25 }
 0x117   :  { %v523_v30 = vpop.f32.mrf.mxu0  ;;  %v809_v24 = vsel %vm783_vm0, %v770_v13, %v796_v29 }
 0x118   :  { %v524_v31 = vadd.f32 %v523_v30, %v1484_v35  ;;  %v688_v32 = vpop.f32.mrf.mxu3  ;;  %822 = vst [vmem:[%s1657_s3] sm:$0xff] %v809_v24 }
 0x119   :  { %v689_v33 = vadd.f32 %v688_v32, %v633_v27  ;;  %v579_v34 = vpop.f32.mrf.mxu1 }
 0x11a   :  { %v580_v36 = vadd.f32 %v579_v34, %v524_v31 }
 0x11b   :  { %v771_v37 = vadd.f32 %v1589_v22, %v689_v33 }
 0x11d   :  { %v635_v38 = vpop.f32.mrf.mxu2  ;;  %vm784_vm1 = vcmp.ge.f32.partialorder %v771_v37, 0.0  ;;  %v797_v41 = vmul.f32 0.02, %v771_v37 }
 0x11e   :  { %v636_v39 = vadd.f32 %v635_v38, %v580_v36 }
 0x11f   :  { %v526_v42 = vpop.f32.mrf.mxu0  ;;  %v810_v35 = vsel %vm784_vm1, %v771_v37, %v797_v41 }
 0x120   :  { %v527_v43 = vadd.f32 %v526_v42, %v1498_v46  ;;  %v691_v44 = vpop.f32.mrf.mxu3  ;;  %823 = vst [vmem:[%s1657_s3 + $0x8] sm:$0xff] %v810_v35 }
 0x121   :  { %v692_v45 = vadd.f32 %v691_v44, %v636_v39  ;;  %v582_v47 = vpop.f32.mrf.mxu1 }
 0x122   :  { %v583_v48 = vadd.f32 %v582_v47, %v527_v43 }
 0x123   :  { %v772_v49 = vadd.f32 %v1589_v22, %v692_v45 }
 0x125   :  { %v638_v51 = vpop.f32.mrf.mxu2  ;;  %vm785_vm2 = vcmp.ge.f32.partialorder %v772_v49, 0.0  ;;  %v798_v53 = vmul.f32 0.02, %v772_v49 }
 0x126   :  { %v639_v52 = vadd.f32 %v638_v51, %v583_v48 }
 0x127   :  { %v529_v54 = vpop.f32.mrf.mxu0  ;;  %v811_v46 = vsel %vm785_vm2, %v772_v49, %v798_v53 }
 0x128   :  { %v530_v55 = vadd.f32 %v529_v54, %v1512_v57  ;;  %v694_v56 = vpop.f32.mrf.mxu3  ;;  %824 = vst [vmem:[%s1657_s3 + $0x10] sm:$0xff] %v811_v46 }
 0x129   :  { %v695_v58 = vadd.f32 %v694_v56, %v639_v52  ;;  %v585_v60 = vpop.f32.mrf.mxu1 }
 0x12a   :  { %v586_v61 = vadd.f32 %v585_v60, %v530_v55 }
 0x12b   :  { %v773_v62 = vadd.f32 %v1589_v22, %v695_v58 }
 0x12d   :  { %v641_v63 = vpop.f32.mrf.mxu2  ;;  %vm786_vm3 = vcmp.ge.f32.partialorder %v773_v62, 0.0  ;;  %v799_v1 = vmul.f32 0.02, %v773_v62 }
 0x12e   :  { %v642_v0 = vadd.f32 %v641_v63, %v586_v61 }
 0x12f   :  { %v532_v3 = vpop.f32.mrf.mxu0  ;;  %v812_v57 = vsel %vm786_vm3, %v773_v62, %v799_v1 }
 0x130   :  { %v533_v5 = vadd.f32 %v532_v3, %v1526_v4  ;;  %v697_v6 = vpop.f32.mrf.mxu3  ;;  %825 = vst [vmem:[%s1657_s3 + $0x18] sm:$0xff] %v812_v57 }
 0x131   :  { %v698_v7 = vadd.f32 %v697_v6, %v642_v0  ;;  %v588_v8 = vpop.f32.mrf.mxu1 }
 0x132   :  { %v589_v9 = vadd.f32 %v588_v8, %v533_v5 }
 0x133   :  { %v774_v10 = vadd.f32 %v1589_v22, %v698_v7 }
 0x135   :  { %v644_v12 = vpop.f32.mrf.mxu2  ;;  %vm787_vm4 = vcmp.ge.f32.partialorder %v774_v10, 0.0  ;;  %v800_v15 = vmul.f32 0.02, %v774_v10 }
 0x136   :  { %v645_v14 = vadd.f32 %v644_v12, %v589_v9 }
 0x137   :  { %v535_v17 = vpop.f32.mrf.mxu0  ;;  %v813_v4 = vsel %vm787_vm4, %v774_v10, %v800_v15 }
 0x138   :  { %v536_v18 = vadd.f32 %v535_v17, %v1540_v16  ;;  %v700_v19 = vpop.f32.mrf.mxu3  ;;  %826 = vst [vmem:[%s1657_s3 + $0x20] sm:$0xff] %v813_v4 }
 0x139   :  { %v701_v20 = vadd.f32 %v700_v19, %v645_v14  ;;  %v591_v21 = vpop.f32.mrf.mxu1 }
 0x13a   :  { %v592_v23 = vadd.f32 %v591_v21, %v536_v18 }
 0x13b   :  { %v775_v25 = vadd.f32 %v1589_v22, %v701_v20 }
 0x13d   :  { %v647_v13 = vpop.f32.mrf.mxu2  ;;  %vm788_vm5 = vcmp.ge.f32.partialorder %v775_v25, 0.0  ;;  %v801_v27 = vmul.f32 0.02, %v775_v25 }
 0x13e   :  { %v648_v26 = vadd.f32 %v647_v13, %v592_v23 }
 0x13f   :  { %v538_v29 = vpop.f32.mrf.mxu0  ;;  %v814_v16 = vsel %vm788_vm5, %v775_v25, %v801_v27 }
 0x140   :  { %v539_v30 = vadd.f32 %v538_v29, %v1554_v28  ;;  %v703_v31 = vpop.f32.mrf.mxu3  ;;  %827 = vst [vmem:[%s1657_s3 + $0x28] sm:$0xff] %v814_v16 }
 0x141   :  { %v704_v32 = vadd.f32 %v703_v31, %v648_v26  ;;  %v594_v24 = vpop.f32.mrf.mxu1 }
 0x142   :  { %v595_v33 = vadd.f32 %v594_v24, %v539_v30 }
 0x143   :  { %v776_v34 = vadd.f32 %v1589_v22, %v704_v32  ;;  %v43_v32 = vld [vmem:[#allocation2 + $0x40] sm:$0x3] }
 0x145   :  { %v650_v36 = vpop.f32.mrf.mxu2  ;;  %vm789_vm6 = vcmp.ge.f32.partialorder %v776_v34, 0.0  ;;  %v802_v38 = vmul.f32 0.02, %v776_v34 }
 0x146   :  { %v651_v37 = vadd.f32 %v650_v36, %v595_v33 }
 0x147   :  { %v541_v39 = vpop.f32.mrf.mxu0  ;;  %v815_v28 = vsel %vm789_vm6, %v776_v34, %v802_v38 }
 0x148   :  { %v542_v41 = vadd.f32 %v541_v39, %v1568_v40  ;;  %v706_v42 = vpop.f32.mrf.mxu3  ;;  %828 = vst [vmem:[%s1657_s3 + $0x30] sm:$0xff] %v815_v28 }
 0x149   :  { %v707_v43 = vadd.f32 %v706_v42, %v651_v37  ;;  %v597_v44 = vpop.f32.mrf.mxu1 }
 0x14a   :  { %v598_v35 = vadd.f32 %v597_v44, %v542_v41 }
 0x14b   :  { %v777_v45 = vadd.f32 %v1589_v22, %v707_v43 }
 0x14d   :  { %v653_v47 = vpop.f32.mrf.mxu2  ;;  %vm790_vm7 = vcmp.ge.f32.partialorder %v777_v45, 0.0  ;;  %v803_v49 = vmul.f32 0.02, %v777_v45 }
 0x14e   :  { %v654_v48 = vadd.f32 %v653_v47, %v598_v35 }
 0x14f   :  { %v544_v51 = vpop.f32.mrf.mxu0  ;;  %v816_v40 = vsel %vm790_vm7, %v777_v45, %v803_v49 }
 0x150   :  { %v545_v52 = vadd.f32 %v544_v51, %v1576_v50  ;;  %v709_v53 = vpop.f32.mrf.mxu3  ;;  %829 = vst [vmem:[%s1657_s3 + $0x38] sm:$0xff] %v816_v40 }
 0x151   :  { %v710_v54 = vadd.f32 %v709_v53, %v654_v48  ;;  %v600_v55 = vpop.f32.mrf.mxu1 }
 0x152   :  { %v601_v56 = vadd.f32 %v600_v55, %v545_v52 }
 0x153   :  { %v778_v46 = vadd.f32 %v1589_v22, %v710_v54 }
 0x155   :  { %v656_v58 = vpop.f32.mrf.mxu2  ;;  %vm791_vm8 = vcmp.ge.f32.partialorder %v778_v46, 0.0  ;;  %v804_v61 = vmul.f32 0.02, %v778_v46 }
 0x156   :  { %v657_v60 = vadd.f32 %v656_v58, %v601_v56 }
 0x157   :  { %v547_v62 = vpop.f32.mrf.mxu0  ;;  %v817_v50 = vsel %vm791_vm8, %v778_v46, %v804_v61 }
 0x158   :  { %v548_v63 = vadd.f32 %v547_v62, %v1578_v59  ;;  %v712_v0 = vpop.f32.mrf.mxu3  ;;  %830 = vst [vmem:[%s1657_s3 + $0x40] sm:$0xff] %v817_v50 }
 0x159   :  { %v713_v1 = vadd.f32 %v712_v0, %v657_v60  ;;  %v603_v3 = vpop.f32.mrf.mxu1 }
 0x15a   :  { %v604_v5 = vadd.f32 %v603_v3, %v548_v63 }
 0x15b   :  { %v779_v6 = vadd.f32 %v1589_v22, %v713_v1 }
 0x15d   :  { %v659_v57 = vpop.f32.mrf.mxu2  ;;  %vm792_vm9 = vcmp.ge.f32.partialorder %v779_v6, 0.0  ;;  %v805_v8 = vmul.f32 0.02, %v779_v6 }
 0x15e   :  { %v660_v7 = vadd.f32 %v659_v57, %v604_v5 }
 0x15f   :  { %v550_v9 = vpop.f32.mrf.mxu0  ;;  %v818_v59 = vsel %vm792_vm9, %v779_v6, %v805_v8 }
 0x160   :  { %v551_v10 = vadd.f32 %v550_v9, %v1580_v2  ;;  %v715_v12 = vpop.f32.mrf.mxu3  ;;  %831 = vst [vmem:[%s1657_s3 + $0x48] sm:$0xff] %v818_v59 }
 0x161   :  { %v716_v14 = vadd.f32 %v715_v12, %v660_v7  ;;  %v606_v15 = vpop.f32.mrf.mxu1 }
 0x162   :  { %v607_v17 = vadd.f32 %v606_v15, %v551_v10 }
 0x163   :  { %v780_v18 = vadd.f32 %v1589_v22, %v716_v14 }
 0x165   :  { %v662_v19 = vpop.f32.mrf.mxu2  ;;  %vm793_vm10 = vcmp.ge.f32.partialorder %v780_v18, 0.0  ;;  %v806_v20 = vmul.f32 0.02, %v780_v18 }
 0x166   :  { %v663_v4 = vadd.f32 %v662_v19, %v607_v17 }
 0x167   :  { %v553_v21 = vpop.f32.mrf.mxu0  ;;  %v819_v2 = vsel %vm793_vm10, %v780_v18, %v806_v20 }
 0x168   :  { %v554_v23 = vadd.f32 %v553_v21, %v1583_v11  ;;  %v718_v25 = vpop.f32.mrf.mxu3  ;;  %832 = vst [vmem:[%s1657_s3 + $0x50] sm:$0xff] %v819_v2 }
 0x169   :  { %v719_v13 = vadd.f32 %v718_v25, %v663_v4  ;;  %v609_v26 = vpop.f32.mrf.mxu1 }
 0x16a   :  { %v610_v27 = vadd.f32 %v609_v26, %v554_v23 }
 0x16b   :  { %v781_v29 = vadd.f32 %v1589_v22, %v719_v13 }
 0x16d   :  { %v665_v30 = vpop.f32.mrf.mxu2  ;;  %vm794_vm11 = vcmp.ge.f32.partialorder %v781_v29, 0.0  ;;  %v807_v16 = vmul.f32 0.02, %v781_v29 }
 0x16e   :  { %v666_v31 = vadd.f32 %v665_v30, %v610_v27 }
 0x16f   :  { %v820_v33 = vsel %vm794_vm11, %v781_v29, %v807_v16 }
 0x170   :  { %v721_v24 = vpop.f32.mrf.mxu3  ;;  %833 = vst [vmem:[%s1657_s3 + $0x58] sm:$0xff] %v820_v33 }
 0x171   :  { %v722_v34 = vadd.f32 %v721_v24, %v666_v31 }
 0x173   :  { %v736_v11 = vadd.f32 %v722_v34, %v43_v32 }
 0x175   :  { %749 = vst [vmem:[#allocation2 + $0x40] sm:$0x3] %v736_v11 }
 0x17c   :  { %v765_v36 = vld [vmem:[#allocation2 + $0x40] sm:$0x3] }
 0x17d   :  { %v782_v37 = vadd.f32 %v1589_v22, %v765_v36 }
 0x17f   :  { %vm795_vm12 = vcmp.ge.f32.partialorder %v782_v37, 0.0  ;;  %v808_v38 = vmul.f32 0.02, %v782_v37 }
 0x181   :  { %v821_v39 = vsel %vm795_vm12, %v782_v37, %v808_v38 }
 0x182   :  { %834 = vst [vmem:[%s1657_s3 + $0x60] sm:$0x3] %v821_v39 }

// kernel: discriminator_forward.6
= control target key start
LH: loop header
LB: loop body
LE: loop exit
PB: predicated region body
PF: predicated region fallthrough
CT: control target
= control target key end

     0   :  { %s2401_s12 = smov 0   ;;  %s3496_s0 = inlined_call_operand.vmem [shape: f32[2,6272], index: 0, kind: input, shape index: {}]   ;;  %s3497_s1 = inlined_call_operand.vmem [shape: f32[6272,1024], index: 1, kind: input, shape index: {}]   ;;  %s3498_s2 = inlined_call_operand.vmem [shape: f32[1,1024], index: 2, kind: input, shape index: {}]   ;;  %s3499_s3 = inlined_call_operand.vmem [shape: f32[2,1024], index: 3, kind: output, shape index: {}]  }
   0x1 LB: > { %s2407_s13 = sadd.s32 4294967295, %s2378_s12   ;;  %p2340_p0 = scmp.ge.s32.totalorder %s2378_s12, 1  ;;  %s2378_s12 = sphi %s2401_s12, %s13_s12  }
   0x2   : > { %p145_p1 = scmp.lt.s32.totalorder %s2378_s12, 8 }
   0x4   : > { %p146_p2 = pnand %p2340_p0, %p145_p1 }
   0x5   : > { %s170_s14 = smul.u32 (!%p146_p2), 7, %s2407_s13  ;;  %p2344_p5 = scmp.ne.s32.totalorder (!%p146_p2), %s2407_s13, 0 }
   0x6   : > { %149 = sbr.rel (%p146_p2) target bundleno = 726 (0x2d6), region = 32 }
   0x7   : > { %s176_s15 = smul.u32 (!%p146_p2), 112, %s2407_s13  ;;  %p171_p3 = scmp.lt.s32.totalorder (!%p146_p2), %s170_s14, 48 }
   0x9   : > { %p177_p4 = scmp.lt.s32.totalorder (!%p146_p2), %s176_s15, 783 }
   0xb   : > { %s3501_s14 = smov (!%p171_p3, %s170_s14), 48  ;;  %s3503_s15 = smov (!%p177_p4, %s176_s15), 783 }
   0xc   : > { %s2341_s16 = sshll.u32 %s3501_s14, 1  ;;  %s2348_s20 = sshll.u32 %s3503_s15, 6 }
   0xd   : > { %s2416_s19 = scalar_lea.vmem %s3496_s0, %s2341_s16  ;;  %s2421_s23 = scalar_lea.vmem %s3497_s1, %s2348_s20 }
   0xe   : > { %186 = sbr.rel (%p2344_p5) target bundleno = 22 (0x16), region = 36 }
  0x13   : > { %v2380_v0 = vmov 0.0  }
  0x14   : > { %187 = vst [vmem:[#allocation2] sm:$0xff] %v2380_v0 }
  0x15   : > { %188 = vst [vmem:[#allocation2 + $0x8] sm:$0xff] %v2380_v0 }
  0x16 PF: > { %v313_v1 = vld [vmem:[%s2421_s23 + $0x3c0] sm:$0xff]  ;;  %vm2242_vm0 = vcmask 1041408   ;;  %vm2244_vm1 = vcmask 1045508   ;;  %vm2246_vm2 = vcmask 1043456   ;;  %p2345_p6 = scmp.ne.s32.totalorder %s2407_s13, 6 }
  0x17   : > { %v569_v2 = vld [vmem:[%s2421_s23 + $0xbc0] sm:$0xff]  ;;  %1108 = vmatpush.msra.mxu0 %v313_v1 }
  0x18   : > { %v305_v3 = vld [vmem:[%s2421_s23 + $0x380] sm:$0xff]  ;;  %1148 = vmatpush.msra.mxu2 %v569_v2 }
  0x19   : > { %v441_v4 = vld [vmem:[%s2421_s23 + $0x7c0] sm:$0xff]  ;;  %1109 = vmatpush.msra.mxu0 %v305_v3 }
  0x1a   : > { %v561_v5 = vld [vmem:[%s2421_s23 + $0xb80] sm:$0xff]  ;;  %1128 = vmatpush.msra.mxu1 %v441_v4 }
  0x1b   : > { %v697_v6 = vld [vmem:[%s2421_s23 + $0xfc0] sm:$0xff]  ;;  %1149 = vmatpush.msra.mxu2 %v561_v5 }
  0x1c   : > { %1168 = vmatpush.msra.mxu3 %v697_v6  ;;  %v297_v7 = vld [vmem:[%s2421_s23 + $0x340] sm:$0xff]  ;;  %v314_v6 = vld [vmem:[%s2421_s23 + $0x3c8] sm:$0xff] }
  0x1d   : > { %v433_v8 = vld [vmem:[%s2421_s23 + $0x780] sm:$0xff]  ;;  %1110 = vmatpush.msra.mxu0 %v297_v7 }
  0x1e   : > { %v553_v9 = vld [vmem:[%s2421_s23 + $0xb40] sm:$0xff]  ;;  %1129 = vmatpush.msra.mxu1 %v433_v8 }
  0x1f   : > { %v689_v10 = vld [vmem:[%s2421_s23 + $0xf80] sm:$0xff]  ;;  %1150 = vmatpush.msra.mxu2 %v553_v9 }
  0x20   : > { %v425_v11 = vld [vmem:[%s2421_s23 + $0x740] sm:$0xff]  ;;  %1169 = vmatpush.msra.mxu3 %v689_v10  ;;  %v306_v10 = vld [vmem:[%s2421_s23 + $0x388] sm:$0xff] }
  0x21   : > { %v289_v12 = vld [vmem:[%s2421_s23 + $0x300] sm:$0xff]  ;;  %1130 = vmatpush.msra.mxu1 %v425_v11 }
  0x22   : > { %v545_v13 = vld [vmem:[%s2421_s23 + $0xb00] sm:$0xff]  ;;  %1111 = vmatpush.msra.mxu0 %v289_v12 }
  0x23   : > { %v681_v14 = vld [vmem:[%s2421_s23 + $0xf40] sm:$0xff]  ;;  %1151 = vmatpush.msra.mxu2 %v545_v13 }
  0x24   : > { %v417_v15 = vld [vmem:[%s2421_s23 + $0x700] sm:$0xff]  ;;  %1170 = vmatpush.msra.mxu3 %v681_v14  ;;  %v298_v14 = vld [vmem:[%s2421_s23 + $0x348] sm:$0xff] }
  0x25   : > { %v673_v16 = vld [vmem:[%s2421_s23 + $0xf00] sm:$0xff]  ;;  %1131 = vmatpush.msra.mxu1 %v417_v15 }
  0x26   : > { %v281_v17 = vld [vmem:[%s2421_s23 + $0x2c0] sm:$0xff]  ;;  %1171 = vmatpush.msra.mxu3 %v673_v16 }
  0x27   : > { %v537_v18 = vld [vmem:[%s2421_s23 + $0xac0] sm:$0xff]  ;;  %1112 = vmatpush.msra.mxu0 %v281_v17 }
  0x28   : > { %v409_v19 = vld [vmem:[%s2421_s23 + $0x6c0] sm:$0xff]  ;;  %1152 = vmatpush.msra.mxu2 %v537_v18  ;;  %v290_v18 = vld [vmem:[%s2421_s23 + $0x308] sm:$0xff] }
  0x29   : > { %v665_v20 = vld [vmem:[%s2421_s23 + $0xec0] sm:$0xff]  ;;  %1132 = vmatpush.msra.mxu1 %v409_v19 }
  0x2a   : > { %v273_v21 = vld [vmem:[%s2421_s23 + $0x280] sm:$0xff]  ;;  %1172 = vmatpush.msra.mxu3 %v665_v20 }
  0x2b   : > { %v529_v22 = vld [vmem:[%s2421_s23 + $0xa80] sm:$0xff]  ;;  %1113 = vmatpush.msra.mxu0 %v273_v21 }
  0x2c   : > { %v401_v23 = vld [vmem:[%s2421_s23 + $0x680] sm:$0xff]  ;;  %1153 = vmatpush.msra.mxu2 %v529_v22  ;;  %v282_v22 = vld [vmem:[%s2421_s23 + $0x2c8] sm:$0xff] }
  0x2d   : > { %v657_v24 = vld [vmem:[%s2421_s23 + $0xe80] sm:$0xff]  ;;  %1133 = vmatpush.msra.mxu1 %v401_v23 }
  0x2e   : > { %v265_v25 = vld [vmem:[%s2421_s23 + $0x240] sm:$0xff]  ;;  %1173 = vmatpush.msra.mxu3 %v657_v24 }
  0x2f   : > { %v521_v26 = vld [vmem:[%s2421_s23 + $0xa40] sm:$0xff]  ;;  %1114 = vmatpush.msra.mxu0 %v265_v25 }
  0x30   : > { %v393_v27 = vld [vmem:[%s2421_s23 + $0x640] sm:$0xff]  ;;  %1154 = vmatpush.msra.mxu2 %v521_v26 }
  0x31   : > { %v649_v28 = vld [vmem:[%s2421_s23 + $0xe40] sm:$0xff]  ;;  %1134 = vmatpush.msra.mxu1 %v393_v27  ;;  %v274_v27 = vld [vmem:[%s2421_s23 + $0x288] sm:$0xff] }
  0x32   : > { %v257_v29 = vld [vmem:[%s2421_s23 + $0x200] sm:$0xff]  ;;  %1174 = vmatpush.msra.mxu3 %v649_v28 }
  0x33   : > { %v513_v30 = vld [vmem:[%s2421_s23 + $0xa00] sm:$0xff]  ;;  %1115 = vmatpush.msra.mxu0 %v257_v29 }
  0x34   : > { %v385_v31 = vld [vmem:[%s2421_s23 + $0x600] sm:$0xff]  ;;  %1155 = vmatpush.msra.mxu2 %v513_v30 }
  0x35   : > { %v641_v32 = vld [vmem:[%s2421_s23 + $0xe00] sm:$0xff]  ;;  %1135 = vmatpush.msra.mxu1 %v385_v31  ;;  %v266_v31 = vld [vmem:[%s2421_s23 + $0x248] sm:$0xff] }
  0x36   : > { %v249_v33 = vld [vmem:[%s2421_s23 + $0x1c0] sm:$0xff]  ;;  %1175 = vmatpush.msra.mxu3 %v641_v32 }
  0x37   : > { %v505_v34 = vld [vmem:[%s2421_s23 + $0x9c0] sm:$0xff]  ;;  %1116 = vmatpush.msra.mxu0 %v249_v33 }
  0x38   : > { %v377_v35 = vld [vmem:[%s2421_s23 + $0x5c0] sm:$0xff]  ;;  %1156 = vmatpush.msra.mxu2 %v505_v34 }
  0x39   : > { %v633_v36 = vld [vmem:[%s2421_s23 + $0xdc0] sm:$0xff]  ;;  %1136 = vmatpush.msra.mxu1 %v377_v35  ;;  %v258_v35 = vld [vmem:[%s2421_s23 + $0x208] sm:$0xff] }
  0x3a   : > { %v241_v37 = vld [vmem:[%s2421_s23 + $0x180] sm:$0xff]  ;;  %1176 = vmatpush.msra.mxu3 %v633_v36  ;;  %v192_v36 = vld [vmem:[%s2416_s19 + $0x8] sm:$0x3f] }
  0x3b   : > { %v497_v38 = vld [vmem:[%s2421_s23 + $0x980] sm:$0xff]  ;;  %1117 = vmatpush.msra.mxu0 %v241_v37  ;;  %1093 = vst [vmem:[#allocation1 + $0x20] ss:$4 sm:$0xff] %v192_v36  ;;  %v386_v36 = vld [vmem:[%s2421_s23 + $0x608] sm:$0xff] }
  0x3c   : > { %v369_v39 = vld [vmem:[%s2421_s23 + $0x580] sm:$0xff]  ;;  %1157 = vmatpush.msra.mxu2 %v497_v38 }
  0x3d   : > { %v625_v40 = vld [vmem:[%s2421_s23 + $0xd80] sm:$0xff]  ;;  %1137 = vmatpush.msra.mxu1 %v369_v39 }
  0x3e   : > { %v233_v41 = vld [vmem:[%s2421_s23 + $0x140] sm:$0xff]  ;;  %1177 = vmatpush.msra.mxu3 %v625_v40  ;;  %v250_v40 = vld [vmem:[%s2421_s23 + $0x1c8] sm:$0xff] }
  0x3f   : > { %v489_v42 = vld [vmem:[%s2421_s23 + $0x940] sm:$0xff]  ;;  %1118 = vmatpush.msra.mxu0 %v233_v41 }
  0x40   : > { %v361_v43 = vld [vmem:[%s2421_s23 + $0x540] sm:$0xff]  ;;  %1158 = vmatpush.msra.mxu2 %v489_v42 }
  0x41   : > { %v617_v44 = vld [vmem:[%s2421_s23 + $0xd40] sm:$0xff]  ;;  %1138 = vmatpush.msra.mxu1 %v361_v43 }
  0x42   : > { %v225_v45 = vld [vmem:[%s2421_s23 + $0x100] sm:$0xff]  ;;  %1178 = vmatpush.msra.mxu3 %v617_v44  ;;  %v242_v44 = vld [vmem:[%s2421_s23 + $0x188] sm:$0xff] }
  0x43   : > { %v481_v46 = vld [vmem:[%s2421_s23 + $0x900] sm:$0xff]  ;;  %1119 = vmatpush.msra.mxu0 %v225_v45 }
  0x44   : > { %v353_v47 = vld [vmem:[%s2421_s23 + $0x500] sm:$0xff]  ;;  %1159 = vmatpush.msra.mxu2 %v481_v46 }
  0x45   : > { %v609_v48 = vld [vmem:[%s2421_s23 + $0xd00] sm:$0xff]  ;;  %1139 = vmatpush.msra.mxu1 %v353_v47 }
  0x46   : > { %v217_v49 = vld [vmem:[%s2421_s23 + $0xc0] sm:$0xff]  ;;  %1179 = vmatpush.msra.mxu3 %v609_v48  ;;  %v234_v48 = vld [vmem:[%s2421_s23 + $0x148] sm:$0xff] }
  0x47   : > { %v473_v50 = vld [vmem:[%s2421_s23 + $0x8c0] sm:$0xff]  ;;  %1120 = vmatpush.msra.mxu0 %v217_v49 }
  0x48   : > { %v345_v51 = vld [vmem:[%s2421_s23 + $0x4c0] sm:$0xff]  ;;  %1160 = vmatpush.msra.mxu2 %v473_v50 }
  0x49   : > { %v601_v52 = vld [vmem:[%s2421_s23 + $0xcc0] sm:$0xff]  ;;  %1140 = vmatpush.msra.mxu1 %v345_v51 }
  0x4a   : > { %v209_v53 = vld [vmem:[%s2421_s23 + $0x80] sm:$0xff]  ;;  %1180 = vmatpush.msra.mxu3 %v601_v52  ;;  %v226_v52 = vld [vmem:[%s2421_s23 + $0x108] sm:$0xff] }
  0x4b   : > { %v465_v54 = vld [vmem:[%s2421_s23 + $0x880] sm:$0xff]  ;;  %1121 = vmatpush.msra.mxu0 %v209_v53 }
  0x4c   : > { %v337_v55 = vld [vmem:[%s2421_s23 + $0x480] sm:$0xff]  ;;  %1161 = vmatpush.msra.mxu2 %v465_v54 }
  0x4d   : > { %v593_v56 = vld [vmem:[%s2421_s23 + $0xc80] sm:$0xff]  ;;  %1141 = vmatpush.msra.mxu1 %v337_v55 }
  0x4e   : > { %v201_v57 = vld [vmem:[%s2421_s23 + $0x40] sm:$0xff]  ;;  %1181 = vmatpush.msra.mxu3 %v593_v56  ;;  %v218_v56 = vld [vmem:[%s2421_s23 + $0xc8] sm:$0xff] }
  0x4f   : > { %v457_v58 = vld [vmem:[%s2421_s23 + $0x840] sm:$0xff]  ;;  %1122 = vmatpush.msra.mxu0 %v201_v57 }
  0x50   : > { %v329_v59 = vld [vmem:[%s2421_s23 + $0x440] sm:$0xff]  ;;  %1162 = vmatpush.msra.mxu2 %v457_v58 }
  0x51   : > { %v585_v60 = vld [vmem:[%s2421_s23 + $0xc40] sm:$0xff]  ;;  %1142 = vmatpush.msra.mxu1 %v329_v59 }
  0x52   : > { %v193_v61 = vld [vmem:[%s2421_s23] sm:$0xff]  ;;  %1182 = vmatpush.msra.mxu3 %v585_v60  ;;  %v210_v60 = vld [vmem:[%s2421_s23 + $0x88] sm:$0xff] }
  0x53   : > { %v449_v62 = vld [vmem:[%s2421_s23 + $0x800] sm:$0xff]  ;;  %1123 = vmatpush.msra.mxu0 %v193_v61 }
  0x54   : > { %v825_v63 = vld [vmem:[%s2421_s23 + $0x13c0] sm:$0xff]  ;;  %1163 = vmatpush.msra.mxu2 %v449_v62 }
  0x55   : > { %v1081_v0 = vld [vmem:[%s2421_s23 + $0x1bc0] sm:$0xff]  ;;  %1188 = vmatpush.msrb.mxu0 %v825_v63 }
  0x56   : > { %v321_v1 = vld [vmem:[%s2421_s23 + $0x400] sm:$0xff]  ;;  %1228 = vmatpush.msrb.mxu2 %v1081_v0 }
  0x57   : > { %v577_v2 = vld [vmem:[%s2421_s23 + $0xc00] sm:$0xff]  ;;  %1143 = vmatpush.msra.mxu1 %v321_v1  ;;  %v202_v1 = vld [vmem:[%s2421_s23 + $0x48] sm:$0xff] }
  0x58   : > { %v817_v3 = vld [vmem:[%s2421_s23 + $0x1380] sm:$0xff]  ;;  %1183 = vmatpush.msra.mxu3 %v577_v2 }
  0x59   : > { %v953_v4 = vld [vmem:[%s2421_s23 + $0x17c0] sm:$0xff]  ;;  %1189 = vmatpush.msrb.mxu0 %v817_v3 }
  0x5a   : > { %v1073_v5 = vld [vmem:[%s2421_s23 + $0x1b80] sm:$0xff]  ;;  %1208 = vmatpush.msrb.mxu1 %v953_v4  ;;  %1248 = vmatpush.msrb.mxu3 %v314_v6  ;;  %v442_v4 = vld [vmem:[%s2421_s23 + $0x7c8] sm:$0xff] }
  0x5b   : > { %v809_v7 = vld [vmem:[%s2421_s23 + $0x1340] sm:$0xff]  ;;  %1229 = vmatpush.msrb.mxu2 %v1073_v5  ;;  %v698_v5 = vld [vmem:[%s2421_s23 + $0xfc8] sm:$0xff] }
  0x5c   : > { %v945_v8 = vld [vmem:[%s2421_s23 + $0x1780] sm:$0xff]  ;;  %1190 = vmatpush.msrb.mxu0 %v809_v7  ;;  %1249 = vmatpush.msrb.mxu3 %v306_v10  ;;  %v194_v7 = vld [vmem:[%s2421_s23 + $0x8] sm:$0xff] }
  0x5d   : > { %v1065_v9 = vld [vmem:[%s2421_s23 + $0x1b40] sm:$0xff]  ;;  %1209 = vmatpush.msrb.mxu1 %v945_v8  ;;  %v570_v10 = vld [vmem:[%s2421_s23 + $0xbc8] sm:$0xff] }
  0x5e   : > { %v801_v11 = vld [vmem:[%s2421_s23 + $0x1300] sm:$0xff]  ;;  %1230 = vmatpush.msrb.mxu2 %v1065_v9  ;;  %1250 = vmatpush.msrb.mxu3 %v298_v14  ;;  %v434_v9 = vld [vmem:[%s2421_s23 + $0x788] sm:$0xff] }
  0x5f   : > { %v937_v12 = vld [vmem:[%s2421_s23 + $0x1740] sm:$0xff]  ;;  %1191 = vmatpush.msrb.mxu0 %v801_v11  ;;  %v690_v11 = vld [vmem:[%s2421_s23 + $0xf88] sm:$0xff] }
  0x60   : > { %v1057_v13 = vld [vmem:[%s2421_s23 + $0x1b00] sm:$0xff]  ;;  %1210 = vmatpush.msrb.mxu1 %v937_v12  ;;  %1251 = vmatpush.msrb.mxu3 %v290_v18  ;;  %v826_v12 = vld [vmem:[%s2421_s23 + $0x13c8] sm:$0xff] }
  0x61   : > { %v793_v15 = vld [vmem:[%s2421_s23 + $0x12c0] sm:$0xff]  ;;  %1231 = vmatpush.msrb.mxu2 %v1057_v13  ;;  %v426_v13 = vld [vmem:[%s2421_s23 + $0x748] sm:$0xff] }
  0x62   : > { %v929_v16 = vld [vmem:[%s2421_s23 + $0x1700] sm:$0xff]  ;;  %1192 = vmatpush.msrb.mxu0 %v793_v15  ;;  %1252 = vmatpush.msrb.mxu3 %v282_v22  ;;  %v562_v14 = vld [vmem:[%s2421_s23 + $0xb88] sm:$0xff] }
  0x63   : > { %v1049_v17 = vld [vmem:[%s2421_s23 + $0x1ac0] sm:$0xff]  ;;  %1211 = vmatpush.msrb.mxu1 %v929_v16  ;;  %v682_v15 = vld [vmem:[%s2421_s23 + $0xf48] sm:$0xff] }
  0x64   : > { %v785_v19 = vld [vmem:[%s2421_s23 + $0x1280] sm:$0xff]  ;;  %1232 = vmatpush.msrb.mxu2 %v1049_v17  ;;  %1253 = vmatpush.msrb.mxu3 %v274_v27  ;;  %v818_v16 = vld [vmem:[%s2421_s23 + $0x1388] sm:$0xff]  ;;  %v2576_v17 = vld.sshfl [vmem:[#allocation1 + $0x30] sm:$0xff pattern:$0x73625140] }
  0x65   : > { %v921_v20 = vld [vmem:[%s2421_s23 + $0x16c0] sm:$0xff]  ;;  %1193 = vmatpush.msrb.mxu0 %v785_v19  ;;  %v418_v18 = vld [vmem:[%s2421_s23 + $0x708] sm:$0xff] }
  0x66   : > { %v1041_v21 = vld [vmem:[%s2421_s23 + $0x1a80] sm:$0xff]  ;;  %1212 = vmatpush.msrb.mxu1 %v921_v20  ;;  %1254 = vmatpush.msrb.mxu3 %v266_v31  ;;  %v554_v19 = vld [vmem:[%s2421_s23 + $0xb48] sm:$0xff] }
  0x67   : > { %v191_v23 = vld [vmem:[%s2416_s19] sm:$0xff]  ;;  %1233 = vmatpush.msrb.mxu2 %v1041_v21  ;;  %v674_v20 = vld [vmem:[%s2421_s23 + $0xf08] sm:$0xff] }
  0x68   : > { %v777_v24 = vld [vmem:[%s2421_s23 + $0x1240] sm:$0xff]  ;;  %1091 = vst [vmem:[#allocation1] ss:$4 sm:$0xff] %v191_v23  ;;  %1255 = vmatpush.msrb.mxu3 %v258_v35  ;;  %v810_v21 = vld [vmem:[%s2421_s23 + $0x1348] sm:$0xff] }
  0x69   : > { %v913_v25 = vld [vmem:[%s2421_s23 + $0x1680] sm:$0xff]  ;;  %1194 = vmatpush.msrb.mxu0 %v777_v24  ;;  %v410_v23 = vld [vmem:[%s2421_s23 + $0x6c8] sm:$0xff] }
  0x6a   : > { %v1033_v26 = vld [vmem:[%s2421_s23 + $0x1a40] sm:$0xff]  ;;  %1213 = vmatpush.msrb.mxu1 %v913_v25  ;;  %1256 = vmatpush.msrb.mxu3 %v250_v40  ;;  %v546_v24 = vld [vmem:[%s2421_s23 + $0xb08] sm:$0xff] }
  0x6b   : > { %v769_v28 = vld [vmem:[%s2421_s23 + $0x1200] sm:$0xff]  ;;  %1234 = vmatpush.msrb.mxu2 %v1033_v26  ;;  %v666_v25 = vld [vmem:[%s2421_s23 + $0xec8] sm:$0xff] }
  0x6c   : > { %v905_v29 = vld [vmem:[%s2421_s23 + $0x1640] sm:$0xff]  ;;  %1195 = vmatpush.msrb.mxu0 %v769_v28  ;;  %1257 = vmatpush.msrb.mxu3 %v242_v44  ;;  %v802_v26 = vld [vmem:[%s2421_s23 + $0x1308] sm:$0xff] }
  0x6d   : > { %v1025_v30 = vld [vmem:[%s2421_s23 + $0x1a00] sm:$0xff]  ;;  %1214 = vmatpush.msrb.mxu1 %v905_v29  ;;  %v2590_v27 = vld.sshfl [vmem:[#allocation1 + $0x28] sm:$0xff pattern:$0x73625140] }
  0x6e   : > { %v761_v32 = vld [vmem:[%s2421_s23 + $0x11c0] sm:$0xff]  ;;  %1235 = vmatpush.msrb.mxu2 %v1025_v30  ;;  %1258 = vmatpush.msrb.mxu3 %v234_v48  ;;  %v402_v28 = vld [vmem:[%s2421_s23 + $0x688] sm:$0xff] }
  0x6f   : > { %v897_v33 = vld [vmem:[%s2421_s23 + $0x1600] sm:$0xff]  ;;  %1196 = vmatpush.msrb.mxu0 %v761_v32  ;;  %v2548_v61 = vld.sshfl [vmem:[#allocation1 + $0x10] sm:$0xff pattern:$0x73625140]  ;;  %v538_v29 = vld [vmem:[%s2421_s23 + $0xac8] sm:$0xff] }
  0x70   : > { %v1017_v34 = vld [vmem:[%s2421_s23 + $0x19c0] sm:$0xff]  ;;  %1215 = vmatpush.msrb.mxu1 %v897_v33  ;;  %1259 = vmatpush.msrb.mxu3 %v226_v52  ;;  %v2557_v3 = vld.sshfl [vmem:[#allocation1 + $0x18] sm:$0xff pattern:$0x73625140]  ;;  %v658_v30 = vld [vmem:[%s2421_s23 + $0xe88] sm:$0xff] }
  0x71   : > { %v753_v37 = vld [vmem:[%s2421_s23 + $0x1180] sm:$0xff]  ;;  %1236 = vmatpush.msrb.mxu2 %v1017_v34  ;;  %v2564_v8 = vld.sshfl [vmem:[#allocation1 + $0x8] sm:$0xff pattern:$0x73625140]  ;;  %1184 = vmatmul.f32.vlgmr.msra.gmra.mxu3 %v2557_v3 }
  0x72   : > { %v889_v38 = vld [vmem:[%s2421_s23 + $0x15c0] sm:$0xff]  ;;  %1197 = vmatpush.msrb.mxu0 %v753_v37  ;;  %1260 = vmatpush.msrb.mxu3 %v218_v56  ;;  %v794_v31 = vld [vmem:[%s2421_s23 + $0x12c8] sm:$0xff] }
  0x73   : > { %v1009_v39 = vld [vmem:[%s2421_s23 + $0x1980] sm:$0xff]  ;;  %1216 = vmatpush.msrb.mxu1 %v889_v38  ;;  %1164 = vmatmul.f32.vlgmr.msra.gmra.mxu2 %v2548_v61  ;;  %v394_v32 = vld [vmem:[%s2421_s23 + $0x648] sm:$0xff] }
  0x74   : > { %v745_v41 = vld [vmem:[%s2421_s23 + $0x1140] sm:$0xff]  ;;  %1237 = vmatpush.msrb.mxu2 %v1009_v39  ;;  %1261 = vmatpush.msrb.mxu3 %v210_v60  ;;  %v530_v33 = vld [vmem:[%s2421_s23 + $0xa88] sm:$0xff] }
  0x75   : > { %v881_v42 = vld [vmem:[%s2421_s23 + $0x1580] sm:$0xff]  ;;  %1198 = vmatpush.msrb.mxu0 %v745_v41  ;;  %1144 = vmatmul.f32.vlgmr.msra.gmra.mxu1 %v2564_v8  ;;  %v650_v34 = vld [vmem:[%s2421_s23 + $0xe48] sm:$0xff] }
  0x76   : > { %v1001_v43 = vld [vmem:[%s2421_s23 + $0x1940] sm:$0xff]  ;;  %1217 = vmatpush.msrb.mxu1 %v881_v42  ;;  %1262 = vmatpush.msrb.mxu3 %v202_v1  ;;  %v786_v35 = vld [vmem:[%s2421_s23 + $0x1288] sm:$0xff] }
  0x77   : > { %v737_v45 = vld [vmem:[%s2421_s23 + $0x1100] sm:$0xff]  ;;  %1238 = vmatpush.msrb.mxu2 %v1001_v43  ;;  %v522_v37 = vld [vmem:[%s2421_s23 + $0xa48] sm:$0xff] }
  0x78   : > { %v873_v46 = vld [vmem:[%s2421_s23 + $0x1540] sm:$0xff]  ;;  %1199 = vmatpush.msrb.mxu0 %v737_v45  ;;  %1263 = vmatpush.msrb.mxu3 %v194_v7  ;;  %v642_v38 = vld [vmem:[%s2421_s23 + $0xe08] sm:$0xff] }
  0x79   : > { %v993_v47 = vld [vmem:[%s2421_s23 + $0x1900] sm:$0xff]  ;;  %1218 = vmatpush.msrb.mxu1 %v873_v46  ;;  %v778_v39 = vld [vmem:[%s2421_s23 + $0x1248] sm:$0xff] }
  0x7a   : > { %v729_v49 = vld [vmem:[%s2421_s23 + $0x10c0] sm:$0xff]  ;;  %1239 = vmatpush.msrb.mxu2 %v993_v47  ;;  %1328 = vmatpush.msra.mxu3 %v826_v12  ;;  %v378_v40 = vld [vmem:[%s2421_s23 + $0x5c8] sm:$0xff] }
  0x7b   : > { %v865_v50 = vld [vmem:[%s2421_s23 + $0x1500] sm:$0xff]  ;;  %1200 = vmatpush.msrb.mxu0 %v729_v49  ;;  %v514_v41 = vld [vmem:[%s2421_s23 + $0xa08] sm:$0xff] }
  0x7c   : > { %v985_v51 = vld [vmem:[%s2421_s23 + $0x18c0] sm:$0xff]  ;;  %1219 = vmatpush.msrb.mxu1 %v865_v50  ;;  %1329 = vmatpush.msra.mxu3 %v818_v16  ;;  %v634_v42 = vld [vmem:[%s2421_s23 + $0xdc8] sm:$0xff] }
  0x7d   : > { %v721_v53 = vld [vmem:[%s2421_s23 + $0x1080] sm:$0xff]  ;;  %1240 = vmatpush.msrb.mxu2 %v985_v51  ;;  %v770_v43 = vld [vmem:[%s2421_s23 + $0x1208] sm:$0xff] }
  0x7e   : > { %v857_v54 = vld [vmem:[%s2421_s23 + $0x14c0] sm:$0xff]  ;;  %1201 = vmatpush.msrb.mxu0 %v721_v53  ;;  %1330 = vmatpush.msra.mxu3 %v810_v21  ;;  %v370_v44 = vld [vmem:[%s2421_s23 + $0x588] sm:$0xff] }
  0x7f   : > { %v977_v55 = vld [vmem:[%s2421_s23 + $0x1880] sm:$0xff]  ;;  %1220 = vmatpush.msrb.mxu1 %v857_v54  ;;  %v506_v45 = vld [vmem:[%s2421_s23 + $0x9c8] sm:$0xff] }
  0x80   : > { %v713_v57 = vld [vmem:[%s2421_s23 + $0x1040] sm:$0xff]  ;;  %1241 = vmatpush.msrb.mxu2 %v977_v55  ;;  %1331 = vmatpush.msra.mxu3 %v802_v26  ;;  %v626_v46 = vld [vmem:[%s2421_s23 + $0xd88] sm:$0xff] }
  0x81   : > { %v849_v58 = vld [vmem:[%s2421_s23 + $0x1480] sm:$0xff]  ;;  %1202 = vmatpush.msrb.mxu0 %v713_v57  ;;  %v762_v47 = vld [vmem:[%s2421_s23 + $0x11c8] sm:$0xff] }
  0x82   : > { %v969_v59 = vld [vmem:[%s2421_s23 + $0x1840] sm:$0xff]  ;;  %1221 = vmatpush.msrb.mxu1 %v849_v58  ;;  %1332 = vmatpush.msra.mxu3 %v794_v31  ;;  %v362_v48 = vld [vmem:[%s2421_s23 + $0x548] sm:$0xff] }
  0x83   : > { %v705_v62 = vld [vmem:[%s2421_s23 + $0x1000] sm:$0xff]  ;;  %1242 = vmatpush.msrb.mxu2 %v969_v59  ;;  %v498_v49 = vld [vmem:[%s2421_s23 + $0x988] sm:$0xff] }
  0x84   : > { %v841_v63 = vld [vmem:[%s2421_s23 + $0x1440] sm:$0xff]  ;;  %1203 = vmatpush.msrb.mxu0 %v705_v62  ;;  %1333 = vmatpush.msra.mxu3 %v786_v35  ;;  %v618_v50 = vld [vmem:[%s2421_s23 + $0xd48] sm:$0xff] }
  0x85   : > { %v961_v0 = vld [vmem:[%s2421_s23 + $0x1800] sm:$0xff]  ;;  %1222 = vmatpush.msrb.mxu1 %v841_v63  ;;  %v754_v51 = vld [vmem:[%s2421_s23 + $0x1188] sm:$0xff] }
  0x86   : > { %v2554_v2 = vld.sshfl [vmem:[#allocation1] sm:$0xff pattern:$0x73625140]  ;;  %1243 = vmatpush.msrb.mxu2 %v961_v0  ;;  %1334 = vmatpush.msra.mxu3 %v778_v39  ;;  %v354_v52 = vld [vmem:[%s2421_s23 + $0x508] sm:$0xff] }
  0x87   : > { %v833_v6 = vld [vmem:[%s2421_s23 + $0x1400] sm:$0xff]  ;;  %1124 = vmatmul.f32.vlgmr.msra.gmra.mxu0 %v2554_v2  ;;  %1244 = vmatmul.f32.vlgmr.msrb.gmra.mxu2 %v2576_v17  ;;  %v490_v53 = vld [vmem:[%s2421_s23 + $0x948] sm:$0xff] }
  0x88   : > { %1268 = vmatpush.msra.mxu0 %v442_v4  ;;  %1308 = vmatpush.msra.mxu2 %v698_v5  ;;  %v2582_v22 = vld.sshfl [vmem:[#allocation1 + $0x20] sm:$0xff pattern:$0x73625140]  ;;  %v610_v54 = vld [vmem:[%s2421_s23 + $0xd08] sm:$0xff] }
  0x89   : > { %1223 = vmatpush.msrb.mxu1 %v833_v6  ;;  %1335 = vmatpush.msra.mxu3 %v770_v43  ;;  %v746_v55 = vld [vmem:[%s2421_s23 + $0x1148] sm:$0xff] }
  0x8a   : > { %1269 = vmatpush.msra.mxu0 %v434_v9  ;;  %1309 = vmatpush.msra.mxu2 %v690_v11  ;;  %v346_v56 = vld [vmem:[%s2421_s23 + $0x4c8] sm:$0xff] }
  0x8b   : > { %1288 = vmatpush.msra.mxu1 %v570_v10  ;;  %1336 = vmatpush.msra.mxu3 %v762_v47  ;;  %v482_v57 = vld [vmem:[%s2421_s23 + $0x908] sm:$0xff] }
  0x8c   : > { %1270 = vmatpush.msra.mxu0 %v426_v13  ;;  %1310 = vmatpush.msra.mxu2 %v682_v15  ;;  %v602_v58 = vld [vmem:[%s2421_s23 + $0xcc8] sm:$0xff]  ;;  %v315_v13 = vld [vmem:[%s2421_s23 + $0x3d0] sm:$0xff] }
  0x8d   : > { %1289 = vmatpush.msra.mxu1 %v562_v14  ;;  %1337 = vmatpush.msra.mxu3 %v754_v51  ;;  %v738_v59 = vld [vmem:[%s2421_s23 + $0x1108] sm:$0xff] }
  0x8e   : > { %1271 = vmatpush.msra.mxu0 %v418_v18  ;;  %1311 = vmatpush.msra.mxu2 %v674_v20  ;;  %v338_v60 = vld [vmem:[%s2421_s23 + $0x488] sm:$0xff]  ;;  %v443_v20 = vld [vmem:[%s2421_s23 + $0x7d0] sm:$0xff] }
  0x8f   : > { %1290 = vmatpush.msra.mxu1 %v554_v19  ;;  %1204 = vmatmul.f32.vlgmr.msrb.gmra.mxu0 %v2582_v22  ;;  %v474_v62 = vld [vmem:[%s2421_s23 + $0x8c8] sm:$0xff]  ;;  %v307_v19 = vld [vmem:[%s2421_s23 + $0x390] sm:$0xff] }
  0x90   : > { %1272 = vmatpush.msra.mxu0 %v410_v23  ;;  %1312 = vmatpush.msra.mxu2 %v666_v25  ;;  %v594_v63 = vld [vmem:[%s2421_s23 + $0xc88] sm:$0xff]  ;;  %v435_v25 = vld [vmem:[%s2421_s23 + $0x790] sm:$0xff] }
  0x91   : > { %1291 = vmatpush.msra.mxu1 %v546_v24  ;;  %1338 = vmatpush.msra.mxu3 %v746_v55  ;;  %v730_v0 = vld [vmem:[%s2421_s23 + $0x10c8] sm:$0xff]  ;;  %v299_v24 = vld [vmem:[%s2421_s23 + $0x350] sm:$0xff] }
  0x92   : > { %1224 = vmatmul.f32.vlgmr.msrb.gmra.mxu1 %v2590_v27  ;;  %1273 = vmatpush.msra.mxu0 %v402_v28  ;;  %v330_v1 = vld [vmem:[%s2421_s23 + $0x448] sm:$0xff] }
  0x93   : > { %1292 = vmatpush.msra.mxu1 %v538_v29  ;;  %1313 = vmatpush.msra.mxu2 %v658_v30  ;;  %v466_v4 = vld [vmem:[%s2421_s23 + $0x888] sm:$0xff]  ;;  %v291_v29 = vld [vmem:[%s2421_s23 + $0x310] sm:$0xff] }
  0x94   : > { %1274 = vmatpush.msra.mxu0 %v394_v32  ;;  %1339 = vmatpush.msra.mxu3 %v738_v59  ;;  %v586_v5 = vld [vmem:[%s2421_s23 + $0xc48] sm:$0xff]  ;;  %v427_v30 = vld [vmem:[%s2421_s23 + $0x750] sm:$0xff] }
  0x95   : > { %1293 = vmatpush.msra.mxu1 %v530_v33  ;;  %1314 = vmatpush.msra.mxu2 %v650_v34  ;;  %v722_v6 = vld [vmem:[%s2421_s23 + $0x1088] sm:$0xff]  ;;  %v283_v33 = vld [vmem:[%s2421_s23 + $0x2d0] sm:$0xff] }
  0x96   : > { %1275 = vmatpush.msra.mxu0 %v386_v36  ;;  %v322_v7 = vld [vmem:[%s2421_s23 + $0x408] sm:$0xff]  ;;  %1340 = vmatpush.msra.mxu3 %v730_v0  ;;  %v419_v34 = vld [vmem:[%s2421_s23 + $0x710] sm:$0xff] }
  0x97   : > { %1294 = vmatpush.msra.mxu1 %v522_v37  ;;  %1315 = vmatpush.msra.mxu2 %v642_v38  ;;  %v458_v9 = vld [vmem:[%s2421_s23 + $0x848] sm:$0xff]  ;;  %v275_v37 = vld [vmem:[%s2421_s23 + $0x290] sm:$0xff] }
  0x98   : > { %1276 = vmatpush.msra.mxu0 %v378_v40  ;;  %v578_v10 = vld [vmem:[%s2421_s23 + $0xc08] sm:$0xff]  ;;  %1341 = vmatpush.msra.mxu3 %v722_v6  ;;  %v411_v38 = vld [vmem:[%s2421_s23 + $0x6d0] sm:$0xff] }
  0x99   : > { %1295 = vmatpush.msra.mxu1 %v514_v41  ;;  %1316 = vmatpush.msra.mxu2 %v634_v42  ;;  %v714_v11 = vld [vmem:[%s2421_s23 + $0x1048] sm:$0xff]  ;;  %v267_v41 = vld [vmem:[%s2421_s23 + $0x250] sm:$0xff] }
  0x9a   : > { %1277 = vmatpush.msra.mxu0 %v370_v44  ;;  %v954_v12 = vld [vmem:[%s2421_s23 + $0x17c8] sm:$0xff]  ;;  %1342 = vmatpush.msra.mxu3 %v714_v11  ;;  %v403_v42 = vld [vmem:[%s2421_s23 + $0x690] sm:$0xff] }
  0x9b   : > { %1296 = vmatpush.msra.mxu1 %v506_v45  ;;  %1317 = vmatpush.msra.mxu2 %v626_v46  ;;  %v450_v14 = vld [vmem:[%s2421_s23 + $0x808] sm:$0xff]  ;;  %v259_v45 = vld [vmem:[%s2421_s23 + $0x210] sm:$0xff] }
  0x9c   : > { %1278 = vmatpush.msra.mxu0 %v362_v48  ;;  %v706_v15 = vld [vmem:[%s2421_s23 + $0x1008] sm:$0xff]  ;;  %1264 = vmatmul.f32.vlgmr.msrb.gmra.mxu3 %v2554_v2  ;;  %v395_v46 = vld [vmem:[%s2421_s23 + $0x650] sm:$0xff] }
  0x9d   : > { %1297 = vmatpush.msra.mxu1 %v498_v49  ;;  %1318 = vmatpush.msra.mxu2 %v618_v50  ;;  %v946_v16 = vld [vmem:[%s2421_s23 + $0x1788] sm:$0xff]  ;;  %v251_v49 = vld [vmem:[%s2421_s23 + $0x1d0] sm:$0xff] }
  0x9e   : > { %1279 = vmatpush.msra.mxu0 %v354_v52  ;;  %v1082_v18 = vld [vmem:[%s2421_s23 + $0x1bc8] sm:$0xff]  ;;  %1343 = vmatpush.msra.mxu3 %v706_v15  ;;  %v387_v50 = vld [vmem:[%s2421_s23 + $0x610] sm:$0xff] }
  0x9f   : > { %1298 = vmatpush.msra.mxu1 %v490_v53  ;;  %1319 = vmatpush.msra.mxu2 %v610_v54  ;;  %v938_v21 = vld [vmem:[%s2421_s23 + $0x1748] sm:$0xff]  ;;  %v243_v53 = vld [vmem:[%s2421_s23 + $0x190] sm:$0xff] }
  0xa0   : > { %1280 = vmatpush.msra.mxu0 %v346_v56  ;;  %v1074_v23 = vld [vmem:[%s2421_s23 + $0x1b88] sm:$0xff]  ;;  %1408 = vmatpush.msrb.mxu3 %v443_v20  ;;  %v379_v54 = vld [vmem:[%s2421_s23 + $0x5d0] sm:$0xff] }
  0xa1   : > { %1299 = vmatpush.msra.mxu1 %v482_v57  ;;  %1320 = vmatpush.msra.mxu2 %v602_v58  ;;  %v930_v26 = vld [vmem:[%s2421_s23 + $0x1708] sm:$0xff]  ;;  %v235_v57 = vld [vmem:[%s2421_s23 + $0x150] sm:$0xff] }
  0xa2   : > { %1281 = vmatpush.msra.mxu0 %v338_v60  ;;  %v1066_v28 = vld [vmem:[%s2421_s23 + $0x1b48] sm:$0xff]  ;;  %1409 = vmatpush.msrb.mxu3 %v435_v25  ;;  %v371_v58 = vld [vmem:[%s2421_s23 + $0x590] sm:$0xff] }
  0xa3   : > { %1300 = vmatpush.msra.mxu1 %v474_v62  ;;  %1321 = vmatpush.msra.mxu2 %v594_v63  ;;  %v922_v31 = vld [vmem:[%s2421_s23 + $0x16c8] sm:$0xff]  ;;  %v227_v62 = vld [vmem:[%s2421_s23 + $0x110] sm:$0xff] }
  0xa4   : > { %1282 = vmatpush.msra.mxu0 %v330_v1  ;;  %v1058_v32 = vld [vmem:[%s2421_s23 + $0x1b08] sm:$0xff]  ;;  %1410 = vmatpush.msrb.mxu3 %v427_v30  ;;  %v363_v63 = vld [vmem:[%s2421_s23 + $0x550] sm:$0xff] }
  0xa5   : > { %1301 = vmatpush.msra.mxu1 %v466_v4  ;;  %1322 = vmatpush.msra.mxu2 %v586_v5  ;;  %v914_v35 = vld [vmem:[%s2421_s23 + $0x1688] sm:$0xff]  ;;  %v219_v4 = vld [vmem:[%s2421_s23 + $0xd0] sm:$0xff] }
  0xa6   : > { %1283 = vmatpush.msra.mxu0 %v322_v7  ;;  %1344 = vmatmul.f32.vlgmr.msra.gmra.mxu3 %v2582_v22  ;;  %v1050_v36 = vld [vmem:[%s2421_s23 + $0x1ac8] sm:$0xff]  ;;  %v355_v5 = vld [vmem:[%s2421_s23 + $0x510] sm:$0xff] }
  0xa7   : > { %1302 = vmatpush.msra.mxu1 %v458_v9  ;;  %1323 = vmatpush.msra.mxu2 %v578_v10  ;;  %v906_v39 = vld [vmem:[%s2421_s23 + $0x1648] sm:$0xff]  ;;  %v211_v9 = vld [vmem:[%s2421_s23 + $0x90] sm:$0xff] }
  0xa8   : > { %1348 = vmatpush.msrb.mxu0 %v954_v12  ;;  %1324 = vmatmul.f32.vlgmr.msra.gmra.mxu2 %v2557_v3  ;;  %v1042_v40 = vld [vmem:[%s2421_s23 + $0x1a88] sm:$0xff]  ;;  %v347_v10 = vld [vmem:[%s2421_s23 + $0x4d0] sm:$0xff] }
  0xa9   : > { %1388 = vmatpush.msrb.mxu2 %v315_v13  ;;  %1303 = vmatpush.msra.mxu1 %v450_v14  ;;  %v898_v43 = vld [vmem:[%s2421_s23 + $0x1608] sm:$0xff]  ;;  %v203_v13 = vld [vmem:[%s2421_s23 + $0x50] sm:$0xff] }
  0xaa   : > { %1349 = vmatpush.msrb.mxu0 %v946_v16  ;;  %1411 = vmatpush.msrb.mxu3 %v419_v34  ;;  %v1034_v44 = vld [vmem:[%s2421_s23 + $0x1a48] sm:$0xff]  ;;  %v339_v14 = vld [vmem:[%s2421_s23 + $0x490] sm:$0xff] }
  0xab   : > { %1368 = vmatpush.msrb.mxu1 %v1082_v18  ;;  %1389 = vmatpush.msrb.mxu2 %v307_v19  ;;  %v890_v47 = vld [vmem:[%s2421_s23 + $0x15c8] sm:$0xff]  ;;  %v195_v18 = vld [vmem:[%s2421_s23 + $0x10] sm:$0xff] }
  0xac   : > { %1350 = vmatpush.msrb.mxu0 %v938_v21  ;;  %1304 = vmatmul.f32.vlgmr.msra.gmra.mxu1 %v2548_v61  ;;  %v1026_v48 = vld [vmem:[%s2421_s23 + $0x1a08] sm:$0xff]  ;;  %v331_v19 = vld [vmem:[%s2421_s23 + $0x450] sm:$0xff] }
  0xad   : > { %1369 = vmatpush.msrb.mxu1 %v1074_v23  ;;  %1390 = vmatpush.msrb.mxu2 %v299_v24  ;;  %v882_v51 = vld [vmem:[%s2421_s23 + $0x1588] sm:$0xff]  ;;  %v827_v20 = vld [vmem:[%s2421_s23 + $0x13d0] sm:$0xff] }
  0xae   : > { %1351 = vmatpush.msrb.mxu0 %v930_v26  ;;  %1412 = vmatpush.msrb.mxu3 %v411_v38  ;;  %v1018_v52 = vld [vmem:[%s2421_s23 + $0x19c8] sm:$0xff]  ;;  %v571_v21 = vld [vmem:[%s2421_s23 + $0xbd0] sm:$0xff] }
  0xaf   : > { %1370 = vmatpush.msrb.mxu1 %v1066_v28  ;;  %1391 = vmatpush.msrb.mxu2 %v291_v29  ;;  %v874_v55 = vld [vmem:[%s2421_s23 + $0x1548] sm:$0xff]  ;;  %v323_v24 = vld [vmem:[%s2421_s23 + $0x410] sm:$0xff] }
  0xb0   : > { %1284 = vmatmul.f32.vlgmr.msra.gmra.mxu0 %v2564_v8  ;;  %1413 = vmatpush.msrb.mxu3 %v403_v42  ;;  %v1010_v56 = vld [vmem:[%s2421_s23 + $0x1988] sm:$0xff]  ;;  %v563_v25 = vld [vmem:[%s2421_s23 + $0xb90] sm:$0xff] }
  0xb1   : > { %1352 = vmatpush.msrb.mxu0 %v922_v31  ;;  %1371 = vmatpush.msrb.mxu1 %v1058_v32  ;;  %v866_v59 = vld [vmem:[%s2421_s23 + $0x1508] sm:$0xff]  ;;  %v699_v26 = vld [vmem:[%s2421_s23 + $0xfd0] sm:$0xff] }
  0xb2   : > { %1392 = vmatpush.msrb.mxu2 %v283_v33  ;;  %1414 = vmatpush.msrb.mxu3 %v395_v46  ;;  %v1002_v60 = vld [vmem:[%s2421_s23 + $0x1948] sm:$0xff]  ;;  %v819_v28 = vld [vmem:[%s2421_s23 + $0x1390] sm:$0xff] }
  0xb3   : > { %1353 = vmatpush.msrb.mxu0 %v914_v35  ;;  %1372 = vmatpush.msrb.mxu1 %v1050_v36  ;;  %v858_v0 = vld [vmem:[%s2421_s23 + $0x14c8] sm:$0xff]  ;;  %v955_v29 = vld [vmem:[%s2421_s23 + $0x17d0] sm:$0xff] }
  0xb4   : > { %1393 = vmatpush.msrb.mxu2 %v275_v37  ;;  %1415 = vmatpush.msrb.mxu3 %v387_v50  ;;  %v994_v1 = vld [vmem:[%s2421_s23 + $0x1908] sm:$0xff]  ;;  %v555_v30 = vld [vmem:[%s2421_s23 + $0xb50] sm:$0xff] }
  0xb5   : > { %1354 = vmatpush.msrb.mxu0 %v906_v39  ;;  %1373 = vmatpush.msrb.mxu1 %v1042_v40  ;;  %v850_v6 = vld [vmem:[%s2421_s23 + $0x1488] sm:$0xff]  ;;  %v691_v31 = vld [vmem:[%s2421_s23 + $0xf90] sm:$0xff] }
  0xb6   : > { %1394 = vmatpush.msrb.mxu2 %v267_v41  ;;  %1416 = vmatpush.msrb.mxu3 %v379_v54  ;;  %v986_v7 = vld [vmem:[%s2421_s23 + $0x18c8] sm:$0xff]  ;;  %v811_v32 = vld [vmem:[%s2421_s23 + $0x1350] sm:$0xff] }
  0xb7   : > { %1355 = vmatpush.msrb.mxu0 %v898_v43  ;;  %1374 = vmatpush.msrb.mxu1 %v1034_v44  ;;  %v842_v11 = vld [vmem:[%s2421_s23 + $0x1448] sm:$0xff]  ;;  %v947_v33 = vld [vmem:[%s2421_s23 + $0x1790] sm:$0xff] }
  0xb8   : > { %1395 = vmatpush.msrb.mxu2 %v259_v45  ;;  %1417 = vmatpush.msrb.mxu3 %v371_v58  ;;  %v978_v12 = vld [vmem:[%s2421_s23 + $0x1888] sm:$0xff]  ;;  %v547_v34 = vld [vmem:[%s2421_s23 + $0xb10] sm:$0xff] }
  0xb9   : > { %1356 = vmatpush.msrb.mxu0 %v890_v47  ;;  %1375 = vmatpush.msrb.mxu1 %v1026_v48  ;;  %v834_v15 = vld [vmem:[%s2421_s23 + $0x1408] sm:$0xff]  ;;  %v683_v35 = vld [vmem:[%s2421_s23 + $0xf50] sm:$0xff] }
  0xba   : > { %1396 = vmatpush.msrb.mxu2 %v251_v49  ;;  %1418 = vmatpush.msrb.mxu3 %v363_v63  ;;  %v970_v16 = vld [vmem:[%s2421_s23 + $0x1848] sm:$0xff]  ;;  %v803_v36 = vld [vmem:[%s2421_s23 + $0x1310] sm:$0xff] }
  0xbb   : > { %1357 = vmatpush.msrb.mxu0 %v882_v51  ;;  %1376 = vmatpush.msrb.mxu1 %v1018_v52  ;;  %v962_v23 = vld [vmem:[%s2421_s23 + $0x1808] sm:$0xff]  ;;  %v539_v37 = vld [vmem:[%s2421_s23 + $0xad0] sm:$0xff] }
  0xbc   : > { %1397 = vmatpush.msrb.mxu2 %v243_v53  ;;  %1419 = vmatpush.msrb.mxu3 %v355_v5  ;;  %v675_v38 = vld [vmem:[%s2421_s23 + $0xf10] sm:$0xff] }
  0xbd   : > { %1358 = vmatpush.msrb.mxu0 %v874_v55  ;;  %1377 = vmatpush.msrb.mxu1 %v1010_v56  ;;  %v795_v39 = vld [vmem:[%s2421_s23 + $0x12d0] sm:$0xff] }
  0xbe   : > { %1398 = vmatpush.msrb.mxu2 %v235_v57  ;;  %1420 = vmatpush.msrb.mxu3 %v347_v10  ;;  %v931_v40 = vld [vmem:[%s2421_s23 + $0x1710] sm:$0xff] }
  0xbf   : > { %1359 = vmatpush.msrb.mxu0 %v866_v59  ;;  %1378 = vmatpush.msrb.mxu1 %v1002_v60  ;;  %v531_v41 = vld [vmem:[%s2421_s23 + $0xa90] sm:$0xff] }
  0xc0   : > { %1399 = vmatpush.msrb.mxu2 %v227_v62  ;;  %1421 = vmatpush.msrb.mxu3 %v339_v14  ;;  %v667_v42 = vld [vmem:[%s2421_s23 + $0xed0] sm:$0xff] }
  0xc1   : > { %1360 = vmatpush.msrb.mxu0 %v858_v0  ;;  %1379 = vmatpush.msrb.mxu1 %v994_v1  ;;  %v787_v43 = vld [vmem:[%s2421_s23 + $0x1290] sm:$0xff] }
  0xc2   : > { %1400 = vmatpush.msrb.mxu2 %v219_v4  ;;  %1422 = vmatpush.msrb.mxu3 %v331_v19  ;;  %v923_v44 = vld [vmem:[%s2421_s23 + $0x16d0] sm:$0xff] }
  0xc3   : > { %1361 = vmatpush.msrb.mxu0 %v850_v6  ;;  %1380 = vmatpush.msrb.mxu1 %v986_v7  ;;  %v523_v45 = vld [vmem:[%s2421_s23 + $0xa50] sm:$0xff] }
  0xc4   : > { %1401 = vmatpush.msrb.mxu2 %v211_v9  ;;  %1423 = vmatpush.msrb.mxu3 %v323_v24  ;;  %v659_v46 = vld [vmem:[%s2421_s23 + $0xe90] sm:$0xff] }
  0xc5   : > { %1362 = vmatpush.msrb.mxu0 %v842_v11  ;;  %1381 = vmatpush.msrb.mxu1 %v978_v12  ;;  %v779_v47 = vld [vmem:[%s2421_s23 + $0x1250] sm:$0xff] }
  0xc6   : > { %1402 = vmatpush.msrb.mxu2 %v203_v13  ;;  %1488 = vmatpush.msra.mxu3 %v955_v29  ;;  %v915_v48 = vld [vmem:[%s2421_s23 + $0x1690] sm:$0xff]  ;;  %v444_v29 = vld [vmem:[%s2421_s23 + $0x7d8] sm:$0xff] }
  0xc7   : > { %1363 = vmatpush.msrb.mxu0 %v834_v15  ;;  %1382 = vmatpush.msrb.mxu1 %v970_v16  ;;  %v515_v49 = vld [vmem:[%s2421_s23 + $0xa10] sm:$0xff] }
  0xc8   : > { %1403 = vmatpush.msrb.mxu2 %v195_v18  ;;  %1364 = vmatmul.f32.vlgmr.msrb.gmra.mxu0 %v2590_v27  ;;  %v651_v50 = vld [vmem:[%s2421_s23 + $0xe50] sm:$0xff] }
  0xc9   : > { %1428 = vmatpush.msra.mxu0 %v571_v21  ;;  %1383 = vmatpush.msrb.mxu1 %v962_v23  ;;  %v771_v51 = vld [vmem:[%s2421_s23 + $0x1210] sm:$0xff] }
  0xca   : > { %1468 = vmatpush.msra.mxu2 %v827_v20  ;;  %1384 = vmatmul.f32.vlgmr.msrb.gmra.mxu1 %v2576_v17  ;;  %v939_v17 = vld [vmem:[%s2421_s23 + $0x1750] sm:$0xff] }
  0xcb   : > { %1429 = vmatpush.msra.mxu0 %v563_v25  ;;  %1448 = vmatpush.msra.mxu1 %v699_v26  ;;  %v907_v52 = vld [vmem:[%s2421_s23 + $0x1650] sm:$0xff] }
  0xcc   : > { %1469 = vmatpush.msra.mxu2 %v819_v28  ;;  %1489 = vmatpush.msra.mxu3 %v947_v33  ;;  %v507_v53 = vld [vmem:[%s2421_s23 + $0x9d0] sm:$0xff]  ;;  %v316_v33 = vld [vmem:[%s2421_s23 + $0x3d8] sm:$0xff] }
  0xcd   : > { %1430 = vmatpush.msra.mxu0 %v555_v30  ;;  %1449 = vmatpush.msra.mxu1 %v691_v31  ;;  %v643_v54 = vld [vmem:[%s2421_s23 + $0xe10] sm:$0xff] }
  0xce   : > { %1470 = vmatpush.msra.mxu2 %v811_v32  ;;  %1490 = vmatpush.msra.mxu3 %v939_v17  ;;  %v763_v55 = vld [vmem:[%s2421_s23 + $0x11d0] sm:$0xff]  ;;  %v428_v17 = vld [vmem:[%s2421_s23 + $0x758] sm:$0xff] }
  0xcf   : > { %1431 = vmatpush.msra.mxu0 %v547_v34  ;;  %1450 = vmatpush.msra.mxu1 %v683_v35  ;;  %v899_v56 = vld [vmem:[%s2421_s23 + $0x1610] sm:$0xff]  ;;  %v572_v34 = vld [vmem:[%s2421_s23 + $0xbd8] sm:$0xff] }
  0xd0   : > { %1471 = vmatpush.msra.mxu2 %v803_v36  ;;  %1491 = vmatpush.msra.mxu3 %v931_v40  ;;  %v499_v57 = vld [vmem:[%s2421_s23 + $0x990] sm:$0xff]  ;;  %v308_v36 = vld [vmem:[%s2421_s23 + $0x398] sm:$0xff] }
  0xd1   : > { %1432 = vmatpush.msra.mxu0 %v539_v37  ;;  %1451 = vmatpush.msra.mxu1 %v675_v38  ;;  %v635_v58 = vld [vmem:[%s2421_s23 + $0xdd0] sm:$0xff]  ;;  %v564_v37 = vld [vmem:[%s2421_s23 + $0xb98] sm:$0xff] }
  0xd2   : > { %1472 = vmatpush.msra.mxu2 %v795_v39  ;;  %1492 = vmatpush.msra.mxu3 %v923_v44  ;;  %v755_v59 = vld [vmem:[%s2421_s23 + $0x1190] sm:$0xff]  ;;  %v300_v38 = vld [vmem:[%s2421_s23 + $0x358] sm:$0xff] }
  0xd3   : > { %1433 = vmatpush.msra.mxu0 %v531_v41  ;;  %1452 = vmatpush.msra.mxu1 %v667_v42  ;;  %v891_v60 = vld [vmem:[%s2421_s23 + $0x15d0] sm:$0xff]  ;;  %v420_v39 = vld [vmem:[%s2421_s23 + $0x718] sm:$0xff] }
  0xd4   : > { %1473 = vmatpush.msra.mxu2 %v787_v43  ;;  %1493 = vmatpush.msra.mxu3 %v915_v48  ;;  %v491_v62 = vld [vmem:[%s2421_s23 + $0x950] sm:$0xff]  ;;  %v556_v40 = vld [vmem:[%s2421_s23 + $0xb58] sm:$0xff] }
  0xd5   : > { %1434 = vmatpush.msra.mxu0 %v523_v45  ;;  %1453 = vmatpush.msra.mxu1 %v659_v46  ;;  %v627_v63 = vld [vmem:[%s2421_s23 + $0xd90] sm:$0xff]  ;;  %v292_v42 = vld [vmem:[%s2421_s23 + $0x318] sm:$0xff] }
  0xd6   : > { %1474 = vmatpush.msra.mxu2 %v779_v47  ;;  %1494 = vmatpush.msra.mxu3 %v907_v52  ;;  %v747_v0 = vld [vmem:[%s2421_s23 + $0x1150] sm:$0xff]  ;;  %v412_v43 = vld [vmem:[%s2421_s23 + $0x6d8] sm:$0xff] }
  0xd7   : > { %1435 = vmatpush.msra.mxu0 %v515_v49  ;;  %1454 = vmatpush.msra.mxu1 %v651_v50  ;;  %v883_v1 = vld [vmem:[%s2421_s23 + $0x1590] sm:$0xff]  ;;  %v548_v44 = vld [vmem:[%s2421_s23 + $0xb18] sm:$0xff] }
  0xd8   : > { %1475 = vmatpush.msra.mxu2 %v771_v51  ;;  %1495 = vmatpush.msra.mxu3 %v899_v56  ;;  %v483_v4 = vld [vmem:[%s2421_s23 + $0x910] sm:$0xff]  ;;  %v284_v45 = vld [vmem:[%s2421_s23 + $0x2d8] sm:$0xff] }
  0xd9   : > { %1436 = vmatpush.msra.mxu0 %v507_v53  ;;  %1455 = vmatpush.msra.mxu1 %v643_v54  ;;  %v619_v5 = vld [vmem:[%s2421_s23 + $0xd50] sm:$0xff]  ;;  %v404_v46 = vld [vmem:[%s2421_s23 + $0x698] sm:$0xff] }
  0xda   : > { %1476 = vmatpush.msra.mxu2 %v763_v55  ;;  %1496 = vmatpush.msra.mxu3 %v891_v60  ;;  %v739_v6 = vld [vmem:[%s2421_s23 + $0x1110] sm:$0xff]  ;;  %v540_v47 = vld [vmem:[%s2421_s23 + $0xad8] sm:$0xff] }
  0xdb   : > { %1437 = vmatpush.msra.mxu0 %v499_v57  ;;  %1456 = vmatpush.msra.mxu1 %v635_v58  ;;  %v875_v7 = vld [vmem:[%s2421_s23 + $0x1550] sm:$0xff]  ;;  %v276_v48 = vld [vmem:[%s2421_s23 + $0x298] sm:$0xff] }
  0xdc   : > { %1477 = vmatpush.msra.mxu2 %v755_v59  ;;  %1497 = vmatpush.msra.mxu3 %v883_v1  ;;  %v475_v9 = vld [vmem:[%s2421_s23 + $0x8d0] sm:$0xff]  ;;  %v532_v49 = vld [vmem:[%s2421_s23 + $0xa98] sm:$0xff] }
  0xdd   : > { %1438 = vmatpush.msra.mxu0 %v491_v62  ;;  %1457 = vmatpush.msra.mxu1 %v627_v63  ;;  %v611_v10 = vld [vmem:[%s2421_s23 + $0xd10] sm:$0xff]  ;;  %v268_v51 = vld [vmem:[%s2421_s23 + $0x258] sm:$0xff] }
  0xde   : > { %1478 = vmatpush.msra.mxu2 %v747_v0  ;;  %v731_v11 = vld [vmem:[%s2421_s23 + $0x10d0] sm:$0xff]  ;;  %1498 = vmatpush.msra.mxu3 %v875_v7  ;;  %v388_v52 = vld [vmem:[%s2421_s23 + $0x618] sm:$0xff] }
  0xdf   : > { %1439 = vmatpush.msra.mxu0 %v483_v4  ;;  %1458 = vmatpush.msra.mxu1 %v619_v5  ;;  %v867_v12 = vld [vmem:[%s2421_s23 + $0x1510] sm:$0xff]  ;;  %v260_v54 = vld [vmem:[%s2421_s23 + $0x218] sm:$0xff] }
  0xe0   : > { %1479 = vmatpush.msra.mxu2 %v739_v6  ;;  %v467_v13 = vld [vmem:[%s2421_s23 + $0x890] sm:$0xff]  ;;  %1499 = vmatpush.msra.mxu3 %v867_v12  ;;  %v380_v55 = vld [vmem:[%s2421_s23 + $0x5d8] sm:$0xff] }
  0xe1   : > { %v603_v14 = vld [vmem:[%s2421_s23 + $0xcd0] sm:$0xff]  ;;  %1440 = vmatpush.msra.mxu0 %v475_v9  ;;  %1459 = vmatpush.msra.mxu1 %v611_v10  ;;  %v516_v56 = vld [vmem:[%s2421_s23 + $0xa18] sm:$0xff] }
  0xe2   : > { %v723_v15 = vld [vmem:[%s2421_s23 + $0x1090] sm:$0xff]  ;;  %1480 = vmatpush.msra.mxu2 %v731_v11  ;;  %1424 = vmatmul.f32.vlgmr.msrb.gmra.mxu3 %v2564_v8  ;;  %v252_v58 = vld [vmem:[%s2421_s23 + $0x1d8] sm:$0xff] }
  0xe3   : > { %v859_v16 = vld [vmem:[%s2421_s23 + $0x14d0] sm:$0xff]  ;;  %1441 = vmatpush.msra.mxu0 %v467_v13  ;;  %1460 = vmatpush.msra.mxu1 %v603_v14  ;;  %v372_v59 = vld [vmem:[%s2421_s23 + $0x598] sm:$0xff] }
  0xe4   : > { %v459_v18 = vld [vmem:[%s2421_s23 + $0x850] sm:$0xff]  ;;  %1481 = vmatpush.msra.mxu2 %v723_v15  ;;  %1500 = vmatpush.msra.mxu3 %v859_v16  ;;  %v508_v60 = vld [vmem:[%s2421_s23 + $0x9d8] sm:$0xff] }
  0xe5   : > { %v595_v19 = vld [vmem:[%s2421_s23 + $0xc90] sm:$0xff]  ;;  %1442 = vmatpush.msra.mxu0 %v459_v18  ;;  %1404 = vmatmul.f32.vlgmr.msrb.gmra.mxu2 %v2554_v2  ;;  %v436_v2 = vld [vmem:[%s2421_s23 + $0x798] sm:$0xff] }
  0xe6   : > { %v715_v20 = vld [vmem:[%s2421_s23 + $0x1050] sm:$0xff]  ;;  %1461 = vmatpush.msra.mxu1 %v595_v19  ;;  %v244_v63 = vld [vmem:[%s2421_s23 + $0x198] sm:$0xff] }
  0xe7   : > { %v851_v21 = vld [vmem:[%s2421_s23 + $0x1490] sm:$0xff]  ;;  %1482 = vmatpush.msra.mxu2 %v715_v20  ;;  %v364_v0 = vld [vmem:[%s2421_s23 + $0x558] sm:$0xff] }
  0xe8   : > { %v451_v23 = vld [vmem:[%s2421_s23 + $0x810] sm:$0xff]  ;;  %1501 = vmatpush.msra.mxu3 %v851_v21  ;;  %v500_v1 = vld [vmem:[%s2421_s23 + $0x998] sm:$0xff] }
  0xe9   : > { %v587_v24 = vld [vmem:[%s2421_s23 + $0xc50] sm:$0xff]  ;;  %1443 = vmatpush.msra.mxu0 %v451_v23  ;;  %v236_v5 = vld [vmem:[%s2421_s23 + $0x158] sm:$0xff] }
  0xea   : > { %v707_v25 = vld [vmem:[%s2421_s23 + $0x1010] sm:$0xff]  ;;  %1462 = vmatpush.msra.mxu1 %v587_v24  ;;  %1444 = vmatmul.f32.vlgmr.msra.gmra.mxu0 %v2548_v61  ;;  %v356_v6 = vld [vmem:[%s2421_s23 + $0x518] sm:$0xff] }
  0xeb   : > { %v843_v26 = vld [vmem:[%s2421_s23 + $0x1450] sm:$0xff]  ;;  %1483 = vmatpush.msra.mxu2 %v707_v25  ;;  %v492_v7 = vld [vmem:[%s2421_s23 + $0x958] sm:$0xff] }
  0xec   : > { %v1083_v28 = vld [vmem:[%s2421_s23 + $0x1bd0] sm:$0xff]  ;;  %1502 = vmatpush.msra.mxu3 %v843_v26  ;;  %v228_v10 = vld [vmem:[%s2421_s23 + $0x118] sm:$0xff] }
  0xed   : > { %v579_v30 = vld [vmem:[%s2421_s23 + $0xc10] sm:$0xff]  ;;  %1508 = vmatpush.msrb.mxu0 %v1083_v28  ;;  %1548 = vmatpush.msrb.mxu2 %v444_v29  ;;  %v348_v11 = vld [vmem:[%s2421_s23 + $0x4d8] sm:$0xff] }
  0xee   : > { %v835_v31 = vld [vmem:[%s2421_s23 + $0x1410] sm:$0xff]  ;;  %1463 = vmatpush.msra.mxu1 %v579_v30  ;;  %1484 = vmatmul.f32.vlgmr.msra.gmra.mxu2 %v2582_v22  ;;  %v484_v12 = vld [vmem:[%s2421_s23 + $0x918] sm:$0xff] }
  0xef   : > { %v1075_v32 = vld [vmem:[%s2421_s23 + $0x1b90] sm:$0xff]  ;;  %1503 = vmatpush.msra.mxu3 %v835_v31  ;;  %1549 = vmatpush.msrb.mxu2 %v436_v2  ;;  %v220_v14 = vld [vmem:[%s2421_s23 + $0xd8] sm:$0xff] }
  0xf0   : > { %v1067_v35 = vld [vmem:[%s2421_s23 + $0x1b50] sm:$0xff]  ;;  %1509 = vmatpush.msrb.mxu0 %v1075_v32  ;;  %1528 = vmatpush.msrb.mxu1 %v316_v33  ;;  %v340_v15 = vld [vmem:[%s2421_s23 + $0x498] sm:$0xff] }
  0xf1   : > { %1568 = vmatpush.msrb.mxu3 %v572_v34  ;;  %v1059_v8 = vld [vmem:[%s2421_s23 + $0x1b10] sm:$0xff]  ;;  %1550 = vmatpush.msrb.mxu2 %v428_v17  ;;  %v476_v16 = vld [vmem:[%s2421_s23 + $0x8d8] sm:$0xff] }
  0xf2   : > { %1510 = vmatpush.msrb.mxu0 %v1067_v35  ;;  %1529 = vmatpush.msrb.mxu1 %v308_v36  ;;  %v1051_v41 = vld [vmem:[%s2421_s23 + $0x1ad0] sm:$0xff]  ;;  %v212_v19 = vld [vmem:[%s2421_s23 + $0x98] sm:$0xff] }
  0xf3   : > { %1569 = vmatpush.msrb.mxu3 %v564_v37  ;;  %1551 = vmatpush.msrb.mxu2 %v420_v39  ;;  %v1043_v22 = vld [vmem:[%s2421_s23 + $0x1a90] sm:$0xff]  ;;  %v332_v20 = vld [vmem:[%s2421_s23 + $0x458] sm:$0xff] }
  0xf4   : > { %1511 = vmatpush.msrb.mxu0 %v1059_v8  ;;  %1530 = vmatpush.msrb.mxu1 %v300_v38  ;;  %v1035_v61 = vld [vmem:[%s2421_s23 + $0x1a50] sm:$0xff]  ;;  %v468_v21 = vld [vmem:[%s2421_s23 + $0x898] sm:$0xff] }
  0xf5   : > { %1570 = vmatpush.msrb.mxu3 %v556_v40  ;;  %1552 = vmatpush.msrb.mxu2 %v412_v43  ;;  %v1027_v50 = vld [vmem:[%s2421_s23 + $0x1a10] sm:$0xff]  ;;  %v204_v24 = vld [vmem:[%s2421_s23 + $0x58] sm:$0xff] }
  0xf6   : > { %1504 = vmatmul.f32.vlgmr.msra.gmra.mxu3 %v2590_v27  ;;  %1512 = vmatpush.msrb.mxu0 %v1051_v41  ;;  %v396_v27 = vld [vmem:[%s2421_s23 + $0x658] sm:$0xff]  ;;  %v1019_v53 = vld [vmem:[%s2421_s23 + $0x19d0] sm:$0xff] }
  0xf7   : > { %1531 = vmatpush.msrb.mxu1 %v292_v42  ;;  %1571 = vmatpush.msrb.mxu3 %v548_v44  ;;  %v1011_v57 = vld [vmem:[%s2421_s23 + $0x1990] sm:$0xff]  ;;  %v324_v25 = vld [vmem:[%s2421_s23 + $0x418] sm:$0xff] }
  0xf8   : > { %1464 = vmatmul.f32.vlgmr.msra.gmra.mxu1 %v2557_v3  ;;  %1513 = vmatpush.msrb.mxu0 %v1043_v22  ;;  %v524_v3 = vld [vmem:[%s2421_s23 + $0xa58] sm:$0xff]  ;;  %v1003_v62 = vld [vmem:[%s2421_s23 + $0x1950] sm:$0xff] }
  0xf9   : > { %1532 = vmatpush.msrb.mxu1 %v284_v45  ;;  %1553 = vmatpush.msrb.mxu2 %v404_v46  ;;  %v995_v4 = vld [vmem:[%s2421_s23 + $0x1910] sm:$0xff]  ;;  %v460_v26 = vld [vmem:[%s2421_s23 + $0x858] sm:$0xff] }
  0xfa   : > { %1572 = vmatpush.msrb.mxu3 %v540_v47  ;;  %1514 = vmatpush.msrb.mxu0 %v1035_v61  ;;  %v987_v9 = vld [vmem:[%s2421_s23 + $0x18d0] sm:$0xff]  ;;  %v956_v28 = vld [vmem:[%s2421_s23 + $0x17d8] sm:$0xff] }
  0xfb   : > { %1533 = vmatpush.msrb.mxu1 %v276_v48  ;;  %1554 = vmatpush.msrb.mxu2 %v396_v27  ;;  %v979_v13 = vld [vmem:[%s2421_s23 + $0x1890] sm:$0xff]  ;;  %v700_v29 = vld [vmem:[%s2421_s23 + $0xfd8] sm:$0xff] }
  0xfc   : > { %1573 = vmatpush.msrb.mxu3 %v532_v49  ;;  %1515 = vmatpush.msrb.mxu0 %v1027_v50  ;;  %v971_v18 = vld [vmem:[%s2421_s23 + $0x1850] sm:$0xff]  ;;  %v196_v30 = vld [vmem:[%s2421_s23 + $0x18] sm:$0xff] }
  0xfd   : > { %1534 = vmatpush.msrb.mxu1 %v268_v51  ;;  %1555 = vmatpush.msrb.mxu2 %v388_v52  ;;  %v963_v23 = vld [vmem:[%s2421_s23 + $0x1810] sm:$0xff]  ;;  %v452_v31 = vld [vmem:[%s2421_s23 + $0x818] sm:$0xff] }
  0xfe   : > { %1574 = vmatpush.msrb.mxu3 %v524_v3  ;;  %1516 = vmatpush.msrb.mxu0 %v1019_v53  ;;  %v828_v32 = vld [vmem:[%s2421_s23 + $0x13d8] sm:$0xff]  ;;  %v2847_v33 = vld.sshfl [vmem:[#allocation1 + $0x30] sm:$0xff pattern:$0x73625140] }
  0xff   : > { %1535 = vmatpush.msrb.mxu1 %v260_v54  ;;  %1556 = vmatpush.msrb.mxu2 %v380_v55  ;;  %v692_v2 = vld [vmem:[%s2421_s23 + $0xf98] sm:$0xff] }
 0x100   : > { %1575 = vmatpush.msrb.mxu3 %v516_v56  ;;  %1517 = vmatpush.msrb.mxu0 %v1011_v57  ;;  %v948_v34 = vld [vmem:[%s2421_s23 + $0x1798] sm:$0xff] }
 0x101   : > { %1536 = vmatpush.msrb.mxu1 %v252_v58  ;;  %1557 = vmatpush.msrb.mxu2 %v372_v59  ;;  %v1084_v35 = vld [vmem:[%s2421_s23 + $0x1bd8] sm:$0xff] }
 0x102   : > { %1576 = vmatpush.msrb.mxu3 %v508_v60  ;;  %1518 = vmatpush.msrb.mxu0 %v1003_v62  ;;  %v820_v36 = vld [vmem:[%s2421_s23 + $0x1398] sm:$0xff] }
 0x103   : > { %1537 = vmatpush.msrb.mxu1 %v244_v63  ;;  %1558 = vmatpush.msrb.mxu2 %v364_v0  ;;  %v684_v17 = vld [vmem:[%s2421_s23 + $0xf58] sm:$0xff] }
 0x104   : > { %1577 = vmatpush.msrb.mxu3 %v500_v1  ;;  %1519 = vmatpush.msrb.mxu0 %v995_v4  ;;  %v940_v37 = vld [vmem:[%s2421_s23 + $0x1758] sm:$0xff] }
 0x105   : > { %1538 = vmatpush.msrb.mxu1 %v236_v5  ;;  %1559 = vmatpush.msrb.mxu2 %v356_v6  ;;  %v1076_v8 = vld [vmem:[%s2421_s23 + $0x1b98] sm:$0xff] }
 0x106   : > { %1578 = vmatpush.msrb.mxu3 %v492_v7  ;;  %1520 = vmatpush.msrb.mxu0 %v987_v9  ;;  %v812_v38 = vld [vmem:[%s2421_s23 + $0x1358] sm:$0xff] }
 0x107   : > { %1539 = vmatpush.msrb.mxu1 %v228_v10  ;;  %1560 = vmatpush.msrb.mxu2 %v348_v11  ;;  %v676_v39 = vld [vmem:[%s2421_s23 + $0xf18] sm:$0xff] }
 0x108   : > { %1579 = vmatpush.msrb.mxu3 %v484_v12  ;;  %1521 = vmatpush.msrb.mxu0 %v979_v13  ;;  %v932_v40 = vld [vmem:[%s2421_s23 + $0x1718] sm:$0xff] }
 0x109   : > { %1540 = vmatpush.msrb.mxu1 %v220_v14  ;;  %1561 = vmatpush.msrb.mxu2 %v340_v15  ;;  %v1068_v41 = vld [vmem:[%s2421_s23 + $0x1b58] sm:$0xff]  ;;  %v2897_v14 = vld.sshfl [vmem:[#allocation1 + $0x8] sm:$0xff pattern:$0x73625140] }
 0x10a   : > { %1580 = vmatpush.msrb.mxu3 %v476_v16  ;;  %1522 = vmatpush.msrb.mxu0 %v971_v18  ;;  %v804_v42 = vld [vmem:[%s2421_s23 + $0x1318] sm:$0xff] }
 0x10b   : > { %1541 = vmatpush.msrb.mxu1 %v212_v19  ;;  %1562 = vmatpush.msrb.mxu2 %v332_v20  ;;  %v668_v43 = vld [vmem:[%s2421_s23 + $0xed8] sm:$0xff]  ;;  %v2904_v20 = vld.sshfl [vmem:[#allocation1 + $0x10] sm:$0xff pattern:$0x73625140] }
 0x10c   : > { %1581 = vmatpush.msrb.mxu3 %v468_v21  ;;  %1523 = vmatpush.msrb.mxu0 %v963_v23  ;;  %v924_v44 = vld [vmem:[%s2421_s23 + $0x16d8] sm:$0xff] }
 0x10d   : > { %1542 = vmatpush.msrb.mxu1 %v204_v24  ;;  %1563 = vmatpush.msrb.mxu2 %v324_v25  ;;  %v1060_v22 = vld [vmem:[%s2421_s23 + $0x1b18] sm:$0xff] }
 0x10e   : > { %1582 = vmatpush.msrb.mxu3 %v460_v26  ;;  %1524 = vmatmul.f32.vlgmr.msrb.gmra.mxu0 %v2847_v33  ;;  %v796_v45 = vld [vmem:[%s2421_s23 + $0x12d8] sm:$0xff]  ;;  %v2911_v26 = vld.sshfl [vmem:[#allocation1] sm:$0xff pattern:$0x73625140] }
 0x10f   : > { %1628 = vmatpush.msra.mxu2 %v956_v28  ;;  %1588 = vmatpush.msra.mxu0 %v700_v29  ;;  %v660_v46 = vld [vmem:[%s2421_s23 + $0xe98] sm:$0xff] }
 0x110   : > { %1543 = vmatpush.msrb.mxu1 %v196_v30  ;;  %1583 = vmatpush.msrb.mxu3 %v452_v31  ;;  %v916_v47 = vld [vmem:[%s2421_s23 + $0x1698] sm:$0xff] }
 0x111   : > { %1589 = vmatpush.msra.mxu0 %v692_v2  ;;  %1629 = vmatpush.msra.mxu2 %v948_v34  ;;  %v1052_v61 = vld [vmem:[%s2421_s23 + $0x1ad8] sm:$0xff]  ;;  %v573_v2 = vld [vmem:[%s2421_s23 + $0xbe0] sm:$0xff] }
 0x112   : > { %1608 = vmatpush.msra.mxu1 %v828_v32  ;;  %1648 = vmatpush.msra.mxu3 %v1084_v35  ;;  %v788_v48 = vld [vmem:[%s2421_s23 + $0x1298] sm:$0xff]  ;;  %v317_v32 = vld [vmem:[%s2421_s23 + $0x3e0] sm:$0xff] }
 0x113   : > { %1590 = vmatpush.msra.mxu0 %v684_v17  ;;  %1630 = vmatpush.msra.mxu2 %v940_v37  ;;  %v652_v27 = vld [vmem:[%s2421_s23 + $0xe58] sm:$0xff]  ;;  %v309_v17 = vld [vmem:[%s2421_s23 + $0x3a0] sm:$0xff] }
 0x114   : > { %1609 = vmatpush.msra.mxu1 %v820_v36  ;;  %1649 = vmatpush.msra.mxu3 %v1076_v8  ;;  %v908_v49 = vld [vmem:[%s2421_s23 + $0x1658] sm:$0xff]  ;;  %v2922_v36 = vld.sshfl [vmem:[#allocation1 + $0x28] sm:$0xff pattern:$0x73625140]  ;;  %v445_v37 = vld [vmem:[%s2421_s23 + $0x7e0] sm:$0xff] }
 0x115   : > { %1591 = vmatpush.msra.mxu0 %v676_v39  ;;  %1631 = vmatpush.msra.mxu2 %v932_v40  ;;  %v1044_v50 = vld [vmem:[%s2421_s23 + $0x1a98] sm:$0xff]  ;;  %v565_v8 = vld [vmem:[%s2421_s23 + $0xba0] sm:$0xff] }
 0x116   : > { %1610 = vmatpush.msra.mxu1 %v812_v38  ;;  %1650 = vmatpush.msra.mxu3 %v1068_v41  ;;  %v780_v51 = vld [vmem:[%s2421_s23 + $0x1258] sm:$0xff]  ;;  %v701_v39 = vld [vmem:[%s2421_s23 + $0xfe0] sm:$0xff] }
 0x117   : > { %1592 = vmatpush.msra.mxu0 %v668_v43  ;;  %1632 = vmatpush.msra.mxu2 %v924_v44  ;;  %v644_v52 = vld [vmem:[%s2421_s23 + $0xe18] sm:$0xff]  ;;  %v301_v40 = vld [vmem:[%s2421_s23 + $0x360] sm:$0xff] }
 0x118   : > { %1611 = vmatpush.msra.mxu1 %v804_v42  ;;  %1651 = vmatpush.msra.mxu3 %v1060_v22  ;;  %v900_v3 = vld [vmem:[%s2421_s23 + $0x1618] sm:$0xff]  ;;  %v437_v41 = vld [vmem:[%s2421_s23 + $0x7a0] sm:$0xff] }
 0x119   : > { %1593 = vmatpush.msra.mxu0 %v660_v46  ;;  %1633 = vmatpush.msra.mxu2 %v916_v47  ;;  %v1036_v53 = vld [vmem:[%s2421_s23 + $0x1a58] sm:$0xff]  ;;  %v557_v42 = vld [vmem:[%s2421_s23 + $0xb60] sm:$0xff] }
 0x11a   : > { %1612 = vmatpush.msra.mxu1 %v796_v45  ;;  %1652 = vmatpush.msra.mxu3 %v1052_v61  ;;  %v772_v54 = vld [vmem:[%s2421_s23 + $0x1218] sm:$0xff]  ;;  %v693_v43 = vld [vmem:[%s2421_s23 + $0xfa0] sm:$0xff] }
 0x11b   : > { %1594 = vmatpush.msra.mxu0 %v652_v27  ;;  %1634 = vmatpush.msra.mxu2 %v908_v49  ;;  %v636_v55 = vld [vmem:[%s2421_s23 + $0xdd8] sm:$0xff]  ;;  %v2937_v44 = vld.sshfl [vmem:[#allocation1 + $0x20] sm:$0xff pattern:$0x73625140] }
 0x11c   : > { %1613 = vmatpush.msra.mxu1 %v788_v48  ;;  %1653 = vmatpush.msra.mxu3 %v1044_v50  ;;  %v892_v56 = vld [vmem:[%s2421_s23 + $0x15d8] sm:$0xff]  ;;  %v293_v22 = vld [vmem:[%s2421_s23 + $0x320] sm:$0xff] }
 0x11d   : > { %1595 = vmatpush.msra.mxu0 %v644_v52  ;;  %1635 = vmatpush.msra.mxu2 %v900_v3  ;;  %v1028_v57 = vld [vmem:[%s2421_s23 + $0x1a18] sm:$0xff]  ;;  %v429_v45 = vld [vmem:[%s2421_s23 + $0x760] sm:$0xff] }
 0x11e   : > { %1614 = vmatpush.msra.mxu1 %v780_v51  ;;  %v764_v58 = vld [vmem:[%s2421_s23 + $0x11d8] sm:$0xff]  ;;  %1654 = vmatpush.msra.mxu3 %v1036_v53  ;;  %v549_v46 = vld [vmem:[%s2421_s23 + $0xb20] sm:$0xff] }
 0x11f   : > { %v628_v59 = vld [vmem:[%s2421_s23 + $0xd98] sm:$0xff]  ;;  %1596 = vmatpush.msra.mxu0 %v636_v55  ;;  %1636 = vmatpush.msra.mxu2 %v892_v56  ;;  %v685_v47 = vld [vmem:[%s2421_s23 + $0xf60] sm:$0xff] }
 0x120   : > { %1615 = vmatpush.msra.mxu1 %v772_v54  ;;  %v884_v60 = vld [vmem:[%s2421_s23 + $0x1598] sm:$0xff]  ;;  %1655 = vmatpush.msra.mxu3 %v1028_v57  ;;  %v285_v61 = vld [vmem:[%s2421_s23 + $0x2e0] sm:$0xff] }
 0x121   : > { %v1020_v62 = vld [vmem:[%s2421_s23 + $0x19d8] sm:$0xff]  ;;  %1597 = vmatpush.msra.mxu0 %v628_v59  ;;  %1637 = vmatpush.msra.mxu2 %v884_v60  ;;  %v421_v48 = vld [vmem:[%s2421_s23 + $0x720] sm:$0xff] }
 0x122   : > { %v756_v63 = vld [vmem:[%s2421_s23 + $0x1198] sm:$0xff]  ;;  %1616 = vmatpush.msra.mxu1 %v764_v58  ;;  %1656 = vmatpush.msra.mxu3 %v1020_v62  ;;  %v541_v27 = vld [vmem:[%s2421_s23 + $0xae0] sm:$0xff] }
 0x123   : > { %v620_v0 = vld [vmem:[%s2421_s23 + $0xd58] sm:$0xff]  ;;  %1564 = vmatmul.f32.vlgmr.msrb.gmra.mxu2 %v2897_v14  ;;  %1584 = vmatmul.f32.vlgmr.msrb.gmra.mxu3 %v2904_v20  ;;  %v677_v49 = vld [vmem:[%s2421_s23 + $0xf20] sm:$0xff] }
 0x124   : > { %v876_v1 = vld [vmem:[%s2421_s23 + $0x1558] sm:$0xff]  ;;  %1617 = vmatpush.msra.mxu1 %v756_v63  ;;  %1598 = vmatpush.msra.mxu0 %v620_v0  ;;  %v277_v50 = vld [vmem:[%s2421_s23 + $0x2a0] sm:$0xff] }
 0x125   : > { %v1012_v4 = vld [vmem:[%s2421_s23 + $0x1998] sm:$0xff]  ;;  %1638 = vmatpush.msra.mxu2 %v876_v1  ;;  %1544 = vmatmul.f32.vlgmr.msrb.gmra.mxu1 %v2911_v26  ;;  %v413_v51 = vld [vmem:[%s2421_s23 + $0x6e0] sm:$0xff] }
 0x126   : > { %v748_v5 = vld [vmem:[%s2421_s23 + $0x1158] sm:$0xff]  ;;  %1657 = vmatpush.msra.mxu3 %v1012_v4  ;;  %v533_v52 = vld [vmem:[%s2421_s23 + $0xaa0] sm:$0xff] }
 0x127   : > { %v612_v6 = vld [vmem:[%s2421_s23 + $0xd18] sm:$0xff]  ;;  %1618 = vmatpush.msra.mxu1 %v748_v5  ;;  %v669_v3 = vld [vmem:[%s2421_s23 + $0xee0] sm:$0xff] }
 0x128   : > { %v868_v7 = vld [vmem:[%s2421_s23 + $0x1518] sm:$0xff]  ;;  %1599 = vmatpush.msra.mxu0 %v612_v6  ;;  %v269_v53 = vld [vmem:[%s2421_s23 + $0x260] sm:$0xff] }
 0x129   : > { %v1004_v9 = vld [vmem:[%s2421_s23 + $0x1958] sm:$0xff]  ;;  %1639 = vmatpush.msra.mxu2 %v868_v7  ;;  %v405_v54 = vld [vmem:[%s2421_s23 + $0x6a0] sm:$0xff] }
 0x12a   : > { %v604_v10 = vld [vmem:[%s2421_s23 + $0xcd8] sm:$0xff]  ;;  %1658 = vmatpush.msra.mxu3 %v1004_v9  ;;  %v525_v55 = vld [vmem:[%s2421_s23 + $0xa60] sm:$0xff] }
 0x12b   : > { %v740_v11 = vld [vmem:[%s2421_s23 + $0x1118] sm:$0xff]  ;;  %1600 = vmatpush.msra.mxu0 %v604_v10  ;;  %v661_v56 = vld [vmem:[%s2421_s23 + $0xea0] sm:$0xff] }
 0x12c   : > { %v860_v12 = vld [vmem:[%s2421_s23 + $0x14d8] sm:$0xff]  ;;  %1619 = vmatpush.msra.mxu1 %v740_v11  ;;  %v261_v57 = vld [vmem:[%s2421_s23 + $0x220] sm:$0xff] }
 0x12d   : > { %v996_v13 = vld [vmem:[%s2421_s23 + $0x1918] sm:$0xff]  ;;  %1640 = vmatpush.msra.mxu2 %v860_v12  ;;  %v397_v58 = vld [vmem:[%s2421_s23 + $0x660] sm:$0xff] }
 0x12e   : > { %v596_v15 = vld [vmem:[%s2421_s23 + $0xc98] sm:$0xff]  ;;  %1659 = vmatpush.msra.mxu3 %v996_v13  ;;  %v517_v59 = vld [vmem:[%s2421_s23 + $0xa20] sm:$0xff] }
 0x12f   : > { %v732_v16 = vld [vmem:[%s2421_s23 + $0x10d8] sm:$0xff]  ;;  %1601 = vmatpush.msra.mxu0 %v596_v15  ;;  %v653_v60 = vld [vmem:[%s2421_s23 + $0xe60] sm:$0xff] }
 0x130   : > { %v852_v18 = vld [vmem:[%s2421_s23 + $0x1498] sm:$0xff]  ;;  %1620 = vmatpush.msra.mxu1 %v732_v16  ;;  %v253_v62 = vld [vmem:[%s2421_s23 + $0x1e0] sm:$0xff] }
 0x131   : > { %v988_v19 = vld [vmem:[%s2421_s23 + $0x18d8] sm:$0xff]  ;;  %1641 = vmatpush.msra.mxu2 %v852_v18  ;;  %v389_v63 = vld [vmem:[%s2421_s23 + $0x620] sm:$0xff] }
 0x132   : > { %v588_v21 = vld [vmem:[%s2421_s23 + $0xc58] sm:$0xff]  ;;  %1660 = vmatpush.msra.mxu3 %v988_v19  ;;  %v509_v0 = vld [vmem:[%s2421_s23 + $0x9e0] sm:$0xff] }
 0x133   : > { %v724_v23 = vld [vmem:[%s2421_s23 + $0x1098] sm:$0xff]  ;;  %1602 = vmatpush.msra.mxu0 %v588_v21  ;;  %v645_v1 = vld [vmem:[%s2421_s23 + $0xe20] sm:$0xff] }
 0x134   : > { %v844_v24 = vld [vmem:[%s2421_s23 + $0x1458] sm:$0xff]  ;;  %1621 = vmatpush.msra.mxu1 %v724_v23  ;;  %v245_v4 = vld [vmem:[%s2421_s23 + $0x1a0] sm:$0xff] }
 0x135   : > { %v980_v25 = vld [vmem:[%s2421_s23 + $0x1898] sm:$0xff]  ;;  %1642 = vmatpush.msra.mxu2 %v844_v24  ;;  %v381_v5 = vld [vmem:[%s2421_s23 + $0x5e0] sm:$0xff] }
 0x136   : > { %v580_v28 = vld [vmem:[%s2421_s23 + $0xc18] sm:$0xff]  ;;  %1661 = vmatpush.msra.mxu3 %v980_v25  ;;  %v501_v6 = vld [vmem:[%s2421_s23 + $0x9a0] sm:$0xff] }
 0x137   : > { %v716_v29 = vld [vmem:[%s2421_s23 + $0x1058] sm:$0xff]  ;;  %1603 = vmatpush.msra.mxu0 %v580_v28  ;;  %v637_v7 = vld [vmem:[%s2421_s23 + $0xde0] sm:$0xff] }
 0x138   : > { %v836_v30 = vld [vmem:[%s2421_s23 + $0x1418] sm:$0xff]  ;;  %1622 = vmatpush.msra.mxu1 %v716_v29  ;;  %v237_v9 = vld [vmem:[%s2421_s23 + $0x160] sm:$0xff] }
 0x139   : > { %v972_v31 = vld [vmem:[%s2421_s23 + $0x1858] sm:$0xff]  ;;  %1643 = vmatpush.msra.mxu2 %v836_v30  ;;  %1668 = vmatpush.msrb.mxu0 %v317_v32  ;;  %v373_v10 = vld [vmem:[%s2421_s23 + $0x5a0] sm:$0xff] }
 0x13a   : > { %v708_v34 = vld [vmem:[%s2421_s23 + $0x1018] sm:$0xff]  ;;  %1662 = vmatpush.msra.mxu3 %v972_v31  ;;  %1644 = vmatmul.f32.vlgmr.msra.gmra.mxu2 %v2922_v36  ;;  %v493_v11 = vld [vmem:[%s2421_s23 + $0x960] sm:$0xff] }
 0x13b   : > { %v964_v35 = vld [vmem:[%s2421_s23 + $0x1818] sm:$0xff]  ;;  %1708 = vmatpush.msrb.mxu2 %v573_v2  ;;  %1623 = vmatpush.msra.mxu1 %v708_v34  ;;  %v629_v12 = vld [vmem:[%s2421_s23 + $0xda0] sm:$0xff] }
 0x13c   : > { %1663 = vmatpush.msra.mxu3 %v964_v35  ;;  %v2928_v38 = vld.sshfl [vmem:[#allocation1 + $0x18] sm:$0xff pattern:$0x73625140]  ;;  %1669 = vmatpush.msrb.mxu0 %v309_v17  ;;  %v229_v13 = vld [vmem:[%s2421_s23 + $0x120] sm:$0xff] }
 0x13d   : > { %1604 = vmatmul.f32.vlgmr.msra.gmra.mxu0 %v2928_v38  ;;  %1664 = vmatmul.f32.vlgmr.msra.gmra.mxu3 %v2847_v33  ;;  %v365_v15 = vld [vmem:[%s2421_s23 + $0x560] sm:$0xff] }
 0x13e   : > { %1688 = vmatpush.msrb.mxu1 %v445_v37  ;;  %1709 = vmatpush.msrb.mxu2 %v565_v8  ;;  %v485_v16 = vld [vmem:[%s2421_s23 + $0x920] sm:$0xff] }
 0x13f   : > { %1728 = vmatpush.msrb.mxu3 %v701_v39  ;;  %1624 = vmatmul.f32.vlgmr.msra.gmra.mxu1 %v2937_v44  ;;  %v621_v18 = vld [vmem:[%s2421_s23 + $0xd60] sm:$0xff] }
 0x140   : > { %1670 = vmatpush.msrb.mxu0 %v301_v40  ;;  %1689 = vmatpush.msrb.mxu1 %v437_v41  ;;  %v221_v19 = vld [vmem:[%s2421_s23 + $0xe0] sm:$0xff] }
 0x141   : > { %1710 = vmatpush.msrb.mxu2 %v557_v42  ;;  %1729 = vmatpush.msrb.mxu3 %v693_v43  ;;  %v357_v21 = vld [vmem:[%s2421_s23 + $0x520] sm:$0xff] }
 0x142   : > { %1671 = vmatpush.msrb.mxu0 %v293_v22  ;;  %1690 = vmatpush.msrb.mxu1 %v429_v45  ;;  %v477_v23 = vld [vmem:[%s2421_s23 + $0x8e0] sm:$0xff] }
 0x143   : > { %1711 = vmatpush.msrb.mxu2 %v549_v46  ;;  %1730 = vmatpush.msrb.mxu3 %v685_v47  ;;  %v613_v24 = vld [vmem:[%s2421_s23 + $0xd20] sm:$0xff]  ;;  %v318_v46 = vld [vmem:[%s2421_s23 + $0x3e8] sm:$0xff] }
 0x144   : > { %1672 = vmatpush.msrb.mxu0 %v285_v61  ;;  %1691 = vmatpush.msrb.mxu1 %v421_v48  ;;  %v213_v25 = vld [vmem:[%s2421_s23 + $0xa0] sm:$0xff] }
 0x145   : > { %1712 = vmatpush.msrb.mxu2 %v541_v27  ;;  %1731 = vmatpush.msrb.mxu3 %v677_v49  ;;  %v349_v28 = vld [vmem:[%s2421_s23 + $0x4e0] sm:$0xff]  ;;  %v310_v27 = vld [vmem:[%s2421_s23 + $0x3a8] sm:$0xff] }
 0x146   : > { %1673 = vmatpush.msrb.mxu0 %v277_v50  ;;  %1692 = vmatpush.msrb.mxu1 %v413_v51  ;;  %v469_v29 = vld [vmem:[%s2421_s23 + $0x8a0] sm:$0xff] }
 0x147   : > { %1713 = vmatpush.msrb.mxu2 %v533_v52  ;;  %1732 = vmatpush.msrb.mxu3 %v669_v3  ;;  %v605_v30 = vld [vmem:[%s2421_s23 + $0xce0] sm:$0xff]  ;;  %v302_v52 = vld [vmem:[%s2421_s23 + $0x368] sm:$0xff] }
 0x148   : > { %1674 = vmatpush.msrb.mxu0 %v269_v53  ;;  %1693 = vmatpush.msrb.mxu1 %v405_v54  ;;  %v205_v31 = vld [vmem:[%s2421_s23 + $0x60] sm:$0xff] }
 0x149   : > { %1714 = vmatpush.msrb.mxu2 %v525_v55  ;;  %1733 = vmatpush.msrb.mxu3 %v661_v56  ;;  %v341_v32 = vld [vmem:[%s2421_s23 + $0x4a0] sm:$0xff]  ;;  %v294_v55 = vld [vmem:[%s2421_s23 + $0x328] sm:$0xff] }
 0x14a   : > { %1675 = vmatpush.msrb.mxu0 %v261_v57  ;;  %1694 = vmatpush.msrb.mxu1 %v397_v58  ;;  %v461_v2 = vld [vmem:[%s2421_s23 + $0x860] sm:$0xff] }
 0x14b   : > { %1715 = vmatpush.msrb.mxu2 %v517_v59  ;;  %1734 = vmatpush.msrb.mxu3 %v653_v60  ;;  %v597_v34 = vld [vmem:[%s2421_s23 + $0xca0] sm:$0xff]  ;;  %v286_v59 = vld [vmem:[%s2421_s23 + $0x2e8] sm:$0xff] }
 0x14c   : > { %1676 = vmatpush.msrb.mxu0 %v253_v62  ;;  %1695 = vmatpush.msrb.mxu1 %v389_v63  ;;  %v197_v35 = vld [vmem:[%s2421_s23 + $0x20] sm:$0xff] }
 0x14d   : > { %1716 = vmatpush.msrb.mxu2 %v509_v0  ;;  %1735 = vmatpush.msrb.mxu3 %v645_v1  ;;  %v333_v17 = vld [vmem:[%s2421_s23 + $0x460] sm:$0xff]  ;;  %v278_v0 = vld [vmem:[%s2421_s23 + $0x2a8] sm:$0xff] }
 0x14e   : > { %1677 = vmatpush.msrb.mxu0 %v245_v4  ;;  %1696 = vmatpush.msrb.mxu1 %v381_v5  ;;  %v453_v37 = vld [vmem:[%s2421_s23 + $0x820] sm:$0xff] }
 0x14f   : > { %1717 = vmatpush.msrb.mxu2 %v501_v6  ;;  %1736 = vmatpush.msrb.mxu3 %v637_v7  ;;  %v589_v8 = vld [vmem:[%s2421_s23 + $0xc60] sm:$0xff]  ;;  %v270_v6 = vld [vmem:[%s2421_s23 + $0x268] sm:$0xff] }
 0x150   : > { %1678 = vmatpush.msrb.mxu0 %v237_v9  ;;  %1697 = vmatpush.msrb.mxu1 %v373_v10  ;;  %v829_v39 = vld [vmem:[%s2421_s23 + $0x13e0] sm:$0xff] }
 0x151   : > { %1718 = vmatpush.msrb.mxu2 %v493_v11  ;;  %1737 = vmatpush.msrb.mxu3 %v629_v12  ;;  %v1085_v40 = vld [vmem:[%s2421_s23 + $0x1be0] sm:$0xff]  ;;  %v262_v11 = vld [vmem:[%s2421_s23 + $0x228] sm:$0xff] }
 0x152   : > { %1679 = vmatpush.msrb.mxu0 %v229_v13  ;;  %1698 = vmatpush.msrb.mxu1 %v365_v15  ;;  %v325_v41 = vld [vmem:[%s2421_s23 + $0x420] sm:$0xff] }
 0x153   : > { %1719 = vmatpush.msrb.mxu2 %v485_v16  ;;  %1738 = vmatpush.msrb.mxu3 %v621_v18  ;;  %v581_v42 = vld [vmem:[%s2421_s23 + $0xc20] sm:$0xff]  ;;  %v254_v16 = vld [vmem:[%s2421_s23 + $0x1e8] sm:$0xff] }
 0x154   : > { %1680 = vmatpush.msrb.mxu0 %v221_v19  ;;  %1699 = vmatpush.msrb.mxu1 %v357_v21  ;;  %v821_v43 = vld [vmem:[%s2421_s23 + $0x13a0] sm:$0xff] }
 0x155   : > { %1720 = vmatpush.msrb.mxu2 %v477_v23  ;;  %1739 = vmatpush.msrb.mxu3 %v613_v24  ;;  %v957_v22 = vld [vmem:[%s2421_s23 + $0x17e0] sm:$0xff]  ;;  %v246_v23 = vld [vmem:[%s2421_s23 + $0x1a8] sm:$0xff] }
 0x156   : > { %1681 = vmatpush.msrb.mxu0 %v213_v25  ;;  %1700 = vmatpush.msrb.mxu1 %v349_v28  ;;  %v1077_v45 = vld [vmem:[%s2421_s23 + $0x1ba0] sm:$0xff] }
 0x157   : > { %1721 = vmatpush.msrb.mxu2 %v469_v29  ;;  %1740 = vmatpush.msrb.mxu3 %v605_v30  ;;  %v813_v47 = vld [vmem:[%s2421_s23 + $0x1360] sm:$0xff]  ;;  %v238_v29 = vld [vmem:[%s2421_s23 + $0x168] sm:$0xff] }
 0x158   : > { %1682 = vmatpush.msrb.mxu0 %v205_v31  ;;  %1701 = vmatpush.msrb.mxu1 %v341_v32  ;;  %v949_v61 = vld [vmem:[%s2421_s23 + $0x17a0] sm:$0xff] }
 0x159   : > { %1722 = vmatpush.msrb.mxu2 %v461_v2  ;;  %1741 = vmatpush.msrb.mxu3 %v597_v34  ;;  %v1069_v48 = vld [vmem:[%s2421_s23 + $0x1b60] sm:$0xff]  ;;  %v230_v2 = vld [vmem:[%s2421_s23 + $0x128] sm:$0xff] }
 0x15a   : > { %1683 = vmatpush.msrb.mxu0 %v197_v35  ;;  %1702 = vmatpush.msrb.mxu1 %v333_v17  ;;  %v805_v49 = vld [vmem:[%s2421_s23 + $0x1320] sm:$0xff] }
 0x15b   : > { %1723 = vmatpush.msrb.mxu2 %v453_v37  ;;  %1742 = vmatpush.msrb.mxu3 %v589_v8  ;;  %v941_v50 = vld [vmem:[%s2421_s23 + $0x1760] sm:$0xff]  ;;  %v222_v37 = vld [vmem:[%s2421_s23 + $0xe8] sm:$0xff] }
 0x15c   : > { %1748 = vmatpush.msra.mxu0 %v829_v39  ;;  %1703 = vmatpush.msrb.mxu1 %v325_v41  ;;  %v1061_v51 = vld [vmem:[%s2421_s23 + $0x1b20] sm:$0xff]  ;;  %v214_v41 = vld [vmem:[%s2421_s23 + $0xa8] sm:$0xff] }
 0x15d   : > { %1788 = vmatpush.msra.mxu2 %v1085_v40  ;;  %1743 = vmatpush.msrb.mxu3 %v581_v42  ;;  %v797_v3 = vld [vmem:[%s2421_s23 + $0x12e0] sm:$0xff] }
 0x15e   : > { %1749 = vmatpush.msra.mxu0 %v821_v43  ;;  %1768 = vmatpush.msra.mxu1 %v957_v22  ;;  %v933_v53 = vld [vmem:[%s2421_s23 + $0x1720] sm:$0xff] }
 0x15f   : > { %1789 = vmatpush.msra.mxu2 %v1077_v45  ;;  %1808 = vmatpush.msra.mxu3 %v318_v46  ;;  %v1053_v54 = vld [vmem:[%s2421_s23 + $0x1ae0] sm:$0xff]  ;;  %v206_v45 = vld [vmem:[%s2421_s23 + $0x68] sm:$0xff] }
 0x160   : > { %1750 = vmatpush.msra.mxu0 %v813_v47  ;;  %1769 = vmatpush.msra.mxu1 %v949_v61  ;;  %v789_v56 = vld [vmem:[%s2421_s23 + $0x12a0] sm:$0xff]  ;;  %v446_v46 = vld [vmem:[%s2421_s23 + $0x7e8] sm:$0xff] }
 0x161   : > { %1790 = vmatpush.msra.mxu2 %v1069_v48  ;;  %1809 = vmatpush.msra.mxu3 %v310_v27  ;;  %v925_v57 = vld [vmem:[%s2421_s23 + $0x16e0] sm:$0xff]  ;;  %v702_v47 = vld [vmem:[%s2421_s23 + $0xfe8] sm:$0xff] }
 0x162   : > { %1751 = vmatpush.msra.mxu0 %v805_v49  ;;  %1770 = vmatpush.msra.mxu1 %v941_v50  ;;  %v1045_v58 = vld [vmem:[%s2421_s23 + $0x1aa0] sm:$0xff]  ;;  %v198_v48 = vld [vmem:[%s2421_s23 + $0x28] sm:$0xff] }
 0x163   : > { %1791 = vmatpush.msra.mxu2 %v1061_v51  ;;  %1810 = vmatpush.msra.mxu3 %v302_v52  ;;  %v781_v60 = vld [vmem:[%s2421_s23 + $0x1260] sm:$0xff]  ;;  %v438_v27 = vld [vmem:[%s2421_s23 + $0x7a8] sm:$0xff] }
 0x164   : > { %1752 = vmatpush.msra.mxu0 %v797_v3  ;;  %1771 = vmatpush.msra.mxu1 %v933_v53  ;;  %v917_v62 = vld [vmem:[%s2421_s23 + $0x16a0] sm:$0xff]  ;;  %v574_v49 = vld [vmem:[%s2421_s23 + $0xbe8] sm:$0xff] }
 0x165   : > { %1792 = vmatpush.msra.mxu2 %v1053_v54  ;;  %1811 = vmatpush.msra.mxu3 %v294_v55  ;;  %v1037_v63 = vld [vmem:[%s2421_s23 + $0x1a60] sm:$0xff]  ;;  %v694_v50 = vld [vmem:[%s2421_s23 + $0xfa8] sm:$0xff] }
 0x166   : > { %1753 = vmatpush.msra.mxu0 %v789_v56  ;;  %1772 = vmatpush.msra.mxu1 %v925_v57  ;;  %v773_v1 = vld [vmem:[%s2421_s23 + $0x1220] sm:$0xff]  ;;  %v830_v51 = vld [vmem:[%s2421_s23 + $0x13e8] sm:$0xff] }
 0x167   : > { %1793 = vmatpush.msra.mxu2 %v1045_v58  ;;  %1812 = vmatpush.msra.mxu3 %v286_v59  ;;  %v909_v4 = vld [vmem:[%s2421_s23 + $0x1660] sm:$0xff]  ;;  %v430_v52 = vld [vmem:[%s2421_s23 + $0x768] sm:$0xff] }
 0x168   : > { %1754 = vmatpush.msra.mxu0 %v781_v60  ;;  %1773 = vmatpush.msra.mxu1 %v917_v62  ;;  %v1029_v5 = vld [vmem:[%s2421_s23 + $0x1a20] sm:$0xff]  ;;  %v566_v3 = vld [vmem:[%s2421_s23 + $0xba8] sm:$0xff] }
 0x169   : > { %1794 = vmatpush.msra.mxu2 %v1037_v63  ;;  %1813 = vmatpush.msra.mxu3 %v278_v0  ;;  %v765_v7 = vld [vmem:[%s2421_s23 + $0x11e0] sm:$0xff]  ;;  %v686_v53 = vld [vmem:[%s2421_s23 + $0xf68] sm:$0xff] }
 0x16a   : > { %v901_v9 = vld [vmem:[%s2421_s23 + $0x1620] sm:$0xff]  ;;  %1755 = vmatpush.msra.mxu0 %v773_v1  ;;  %1774 = vmatpush.msra.mxu1 %v909_v4  ;;  %v822_v54 = vld [vmem:[%s2421_s23 + $0x13a8] sm:$0xff]  ;;  %v3083_v1 = vpop.f32.mrf.mxu0  ;;  %v3085_v4 = vpop.f32.mrf.mxu2 }
 0x16b   : > { %v1021_v10 = vld [vmem:[%s2421_s23 + $0x19e0] sm:$0xff]  ;;  %1795 = vmatpush.msra.mxu2 %v1029_v5  ;;  %1814 = vmatpush.msra.mxu3 %v270_v6  ;;  %v422_v55 = vld [vmem:[%s2421_s23 + $0x728] sm:$0xff]  ;;  %v3089_v6 = vpop.f32.mrf.mxu1 }
 0x16c   : > { %v757_v12 = vld [vmem:[%s2421_s23 + $0x11a0] sm:$0xff]  ;;  %1756 = vmatpush.msra.mxu0 %v765_v7  ;;  %1775 = vmatpush.msra.mxu1 %v901_v9  ;;  %v558_v56 = vld [vmem:[%s2421_s23 + $0xb68] sm:$0xff] }
 0x16d   : > { %v893_v13 = vld [vmem:[%s2421_s23 + $0x15e0] sm:$0xff]  ;;  %1796 = vmatpush.msra.mxu2 %v1021_v10  ;;  %1815 = vmatpush.msra.mxu3 %v262_v11  ;;  %v678_v57 = vld [vmem:[%s2421_s23 + $0xf28] sm:$0xff] }
 0x16e   : > { %v1013_v15 = vld [vmem:[%s2421_s23 + $0x19a0] sm:$0xff]  ;;  %1757 = vmatpush.msra.mxu0 %v757_v12  ;;  %1776 = vmatpush.msra.mxu1 %v893_v13  ;;  %v814_v58 = vld [vmem:[%s2421_s23 + $0x1368] sm:$0xff]  ;;  %v3096_v12 = vpop.f32.mrf.mxu3 }
 0x16f   : > { %v749_v18 = vld [vmem:[%s2421_s23 + $0x1160] sm:$0xff]  ;;  %1797 = vmatpush.msra.mxu2 %v1013_v15  ;;  %1816 = vmatpush.msra.mxu3 %v254_v16  ;;  %v414_v59 = vld [vmem:[%s2421_s23 + $0x6e8] sm:$0xff] }
 0x170   : > { %v885_v19 = vld [vmem:[%s2421_s23 + $0x15a0] sm:$0xff]  ;;  %1758 = vmatpush.msra.mxu0 %v749_v18  ;;  %1724 = vmatmul.f32.vlgmr.msrb.gmra.mxu2 %v2904_v20  ;;  %v550_v60 = vld [vmem:[%s2421_s23 + $0xb28] sm:$0xff] }
 0x171   : > { %v1005_v21 = vld [vmem:[%s2421_s23 + $0x1960] sm:$0xff]  ;;  %1777 = vmatpush.msra.mxu1 %v885_v19  ;;  %1817 = vmatpush.msra.mxu3 %v246_v23  ;;  %v670_v62 = vld [vmem:[%s2421_s23 + $0xee8] sm:$0xff] }
 0x172   : > { %v741_v24 = vld [vmem:[%s2421_s23 + $0x1120] sm:$0xff]  ;;  %1798 = vmatpush.msra.mxu2 %v1005_v21  ;;  %1684 = vmatmul.f32.vlgmr.msrb.gmra.mxu0 %v2911_v26  ;;  %v806_v63 = vld [vmem:[%s2421_s23 + $0x1328] sm:$0xff] }
 0x173   : > { %v877_v25 = vld [vmem:[%s2421_s23 + $0x1560] sm:$0xff]  ;;  %1759 = vmatpush.msra.mxu0 %v741_v24  ;;  %1818 = vmatpush.msra.mxu3 %v238_v29  ;;  %v406_v0 = vld [vmem:[%s2421_s23 + $0x6a8] sm:$0xff] }
 0x174   : > { %v997_v28 = vld [vmem:[%s2421_s23 + $0x1920] sm:$0xff]  ;;  %1778 = vmatpush.msra.mxu1 %v877_v25  ;;  %1744 = vmatmul.f32.vlgmr.msrb.gmra.mxu3 %v2928_v38  ;;  %v662_v5 = vld [vmem:[%s2421_s23 + $0xea8] sm:$0xff] }
 0x175   : > { %v733_v30 = vld [vmem:[%s2421_s23 + $0x10e0] sm:$0xff]  ;;  %1799 = vmatpush.msra.mxu2 %v997_v28  ;;  %1819 = vmatpush.msra.mxu3 %v230_v2  ;;  %v798_v7 = vld [vmem:[%s2421_s23 + $0x12e8] sm:$0xff]  ;;  %v3114_v2 = vpop.f32.mrf.mxu2 }
 0x176   : > { %v869_v31 = vld [vmem:[%s2421_s23 + $0x1520] sm:$0xff]  ;;  %1760 = vmatpush.msra.mxu0 %v733_v30  ;;  %1704 = vmatmul.f32.vlgmr.msrb.gmra.mxu1 %v2897_v14  ;;  %v398_v9 = vld [vmem:[%s2421_s23 + $0x668] sm:$0xff] }
 0x177   : > { %v989_v32 = vld [vmem:[%s2421_s23 + $0x18e0] sm:$0xff]  ;;  %1779 = vmatpush.msra.mxu1 %v869_v31  ;;  %1820 = vmatpush.msra.mxu3 %v222_v37  ;;  %v534_v10 = vld [vmem:[%s2421_s23 + $0xaa8] sm:$0xff]  ;;  %v3120_v37 = vpop.f32.mrf.mxu3 }
 0x178   : > { %v725_v34 = vld [vmem:[%s2421_s23 + $0x10a0] sm:$0xff]  ;;  %1800 = vmatpush.msra.mxu2 %v989_v32  ;;  %v654_v11 = vld [vmem:[%s2421_s23 + $0xe68] sm:$0xff]  ;;  %v3112_v32 = vpop.f32.mrf.mxu0 }
 0x179   : > { %v861_v35 = vld [vmem:[%s2421_s23 + $0x14e0] sm:$0xff]  ;;  %1761 = vmatpush.msra.mxu0 %v725_v34  ;;  %1821 = vmatpush.msra.mxu3 %v214_v41  ;;  %v790_v13 = vld [vmem:[%s2421_s23 + $0x12a8] sm:$0xff] }
 0x17a   : > { %v981_v17 = vld [vmem:[%s2421_s23 + $0x18a0] sm:$0xff]  ;;  %1780 = vmatpush.msra.mxu1 %v861_v35  ;;  %v390_v15 = vld [vmem:[%s2421_s23 + $0x628] sm:$0xff] }
 0x17b   : > { %v717_v8 = vld [vmem:[%s2421_s23 + $0x1060] sm:$0xff]  ;;  %1801 = vmatpush.msra.mxu2 %v981_v17  ;;  %1822 = vmatpush.msra.mxu3 %v206_v45  ;;  %v526_v16 = vld [vmem:[%s2421_s23 + $0xa68] sm:$0xff]  ;;  %v3118_v17 = vpop.f32.mrf.mxu1 }
 0x17c   : > { %v853_v39 = vld [vmem:[%s2421_s23 + $0x14a0] sm:$0xff]  ;;  %1762 = vmatpush.msra.mxu0 %v717_v8  ;;  %v646_v18 = vld [vmem:[%s2421_s23 + $0xe28] sm:$0xff] }
 0x17d   : > { %v973_v40 = vld [vmem:[%s2421_s23 + $0x1860] sm:$0xff]  ;;  %1781 = vmatpush.msra.mxu1 %v853_v39  ;;  %1823 = vmatpush.msra.mxu3 %v198_v48  ;;  %v382_v19 = vld [vmem:[%s2421_s23 + $0x5e8] sm:$0xff] }
 0x17e   : > { %v709_v42 = vld [vmem:[%s2421_s23 + $0x1020] sm:$0xff]  ;;  %1802 = vmatpush.msra.mxu2 %v973_v40  ;;  %v518_v21 = vld [vmem:[%s2421_s23 + $0xa28] sm:$0xff]  ;;  %1824 = vmatmul.f32.vlgmr.msra.gmra.mxu3 %v2911_v26  ;;  %v303_v26 = vld [vmem:[%s2421_s23 + $0x370] sm:$0xff] }
 0x17f   : > { %v845_v43 = vld [vmem:[%s2421_s23 + $0x1460] sm:$0xff]  ;;  %1763 = vmatpush.msra.mxu0 %v709_v42  ;;  %1888 = vmatpush.msrb.mxu3 %v830_v51  ;;  %v638_v23 = vld [vmem:[%s2421_s23 + $0xde8] sm:$0xff]  ;;  %v3138_v51 = vpop.f32.mrf.mxu2 }
 0x180   : > { %v965_v22 = vld [vmem:[%s2421_s23 + $0x1820] sm:$0xff]  ;;  %1782 = vmatpush.msra.mxu1 %v845_v43  ;;  %1764 = vmatmul.f32.vlgmr.msra.gmra.mxu0 %v2937_v44  ;;  %v774_v24 = vld [vmem:[%s2421_s23 + $0x1228] sm:$0xff] }
 0x181   : > { %1803 = vmatpush.msra.mxu2 %v965_v22  ;;  %v837_v61 = vld [vmem:[%s2421_s23 + $0x1420] sm:$0xff]  ;;  %1828 = vmatpush.msrb.mxu0 %v446_v46  ;;  %v374_v25 = vld [vmem:[%s2421_s23 + $0x5a8] sm:$0xff] }
 0x182   : > { %1783 = vmatpush.msra.mxu1 %v837_v61  ;;  %1889 = vmatpush.msrb.mxu3 %v822_v54  ;;  %v510_v28 = vld [vmem:[%s2421_s23 + $0x9e8] sm:$0xff] }
 0x183   : > { %1868 = vmatpush.msrb.mxu2 %v702_v47  ;;  %1829 = vmatpush.msrb.mxu0 %v438_v27  ;;  %v630_v29 = vld [vmem:[%s2421_s23 + $0xda8] sm:$0xff] }
 0x184   : > { %1848 = vmatpush.msrb.mxu1 %v574_v49  ;;  %1804 = vmatmul.f32.vlgmr.msra.gmra.mxu2 %v2847_v33  ;;  %v542_v33 = vld [vmem:[%s2421_s23 + $0xae8] sm:$0xff] }
 0x185   : > { %1869 = vmatpush.msrb.mxu2 %v694_v50  ;;  %1830 = vmatpush.msrb.mxu0 %v430_v52  ;;  %v766_v30 = vld [vmem:[%s2421_s23 + $0x11e8] sm:$0xff]  ;;  %v3136_v50 = vpop.f32.mrf.mxu0 }
 0x186   : > { %1849 = vmatpush.msrb.mxu1 %v566_v3  ;;  %1890 = vmatpush.msrb.mxu3 %v814_v58  ;;  %v366_v31 = vld [vmem:[%s2421_s23 + $0x568] sm:$0xff]  ;;  %v3148_v58 = vpop.f32.mrf.mxu3 }
 0x187   : > { %1870 = vmatpush.msrb.mxu2 %v686_v53  ;;  %1831 = vmatpush.msrb.mxu0 %v422_v55  ;;  %v502_v34 = vld [vmem:[%s2421_s23 + $0x9a8] sm:$0xff]  ;;  %v3142_v53 = vpop.f32.mrf.mxu1 }
 0x188   : > { %1850 = vmatpush.msrb.mxu1 %v558_v56  ;;  %1891 = vmatpush.msrb.mxu3 %v806_v63  ;;  %v622_v35 = vld [vmem:[%s2421_s23 + $0xd68] sm:$0xff] }
 0x189   : > { %1871 = vmatpush.msrb.mxu2 %v678_v57  ;;  %1832 = vmatpush.msrb.mxu0 %v414_v59  ;;  %v758_v8 = vld [vmem:[%s2421_s23 + $0x11a8] sm:$0xff] }
 0x18a   : > { %1851 = vmatpush.msrb.mxu1 %v550_v60  ;;  %1892 = vmatpush.msrb.mxu3 %v798_v7  ;;  %v358_v39 = vld [vmem:[%s2421_s23 + $0x528] sm:$0xff]  ;;  %v311_v7 = vld [vmem:[%s2421_s23 + $0x3b0] sm:$0xff] }
 0x18b   : > { %1872 = vmatpush.msrb.mxu2 %v670_v62  ;;  %1784 = vmatmul.f32.vlgmr.msra.gmra.mxu1 %v2922_v36  ;;  %v782_v36 = vld [vmem:[%s2421_s23 + $0x1268] sm:$0xff]  ;;  %v319_v62 = vld [vmem:[%s2421_s23 + $0x3f0] sm:$0xff] }
 0x18c   : > { %1833 = vmatpush.msrb.mxu0 %v406_v0  ;;  %1852 = vmatpush.msrb.mxu1 %v542_v33  ;;  %v494_v40 = vld [vmem:[%s2421_s23 + $0x968] sm:$0xff] }
 0x18d   : > { %1873 = vmatpush.msrb.mxu2 %v662_v5  ;;  %1893 = vmatpush.msrb.mxu3 %v790_v13  ;;  %v614_v41 = vld [vmem:[%s2421_s23 + $0xd28] sm:$0xff] }
 0x18e   : > { %1834 = vmatpush.msrb.mxu0 %v398_v9  ;;  %1853 = vmatpush.msrb.mxu1 %v534_v10  ;;  %v750_v42 = vld [vmem:[%s2421_s23 + $0x1168] sm:$0xff]  ;;  %v447_v9 = vld [vmem:[%s2421_s23 + $0x7f0] sm:$0xff]  ;;  %v3160_v10 = vpop.f32.mrf.mxu0 }
 0x18f   : > { %1874 = vmatpush.msrb.mxu2 %v654_v11  ;;  %1894 = vmatpush.msrb.mxu3 %v782_v36  ;;  %v350_v43 = vld [vmem:[%s2421_s23 + $0x4e8] sm:$0xff]  ;;  %v1405_v11 = vpop.f32.mrf.mxu2 }
 0x190   : > { %1835 = vmatpush.msrb.mxu0 %v390_v15  ;;  %1854 = vmatpush.msrb.mxu1 %v526_v16  ;;  %v486_v22 = vld [vmem:[%s2421_s23 + $0x928] sm:$0xff]  ;;  %v3164_v16 = vpop.f32.mrf.mxu1 }
 0x191   : > { %1875 = vmatpush.msrb.mxu2 %v646_v18  ;;  %1895 = vmatpush.msrb.mxu3 %v774_v24  ;;  %v606_v45 = vld [vmem:[%s2421_s23 + $0xce8] sm:$0xff]  ;;  %v439_v18 = vld [vmem:[%s2421_s23 + $0x7b0] sm:$0xff] }
 0x192   : > { %1836 = vmatpush.msrb.mxu0 %v382_v19  ;;  %1855 = vmatpush.msrb.mxu1 %v518_v21  ;;  %v742_v46 = vld [vmem:[%s2421_s23 + $0x1128] sm:$0xff]  ;;  %v1425_v19 = vpop.f32.mrf.mxu3  ;;  %v431_v24 = vld [vmem:[%s2421_s23 + $0x770] sm:$0xff] }
 0x193   : > { %1876 = vmatpush.msrb.mxu2 %v638_v23  ;;  %1896 = vmatpush.msrb.mxu3 %v766_v30  ;;  %v342_v47 = vld [vmem:[%s2421_s23 + $0x4a8] sm:$0xff]  ;;  %v295_v23 = vld [vmem:[%s2421_s23 + $0x330] sm:$0xff] }
 0x194   : > { %1837 = vmatpush.msrb.mxu0 %v374_v25  ;;  %1856 = vmatpush.msrb.mxu1 %v510_v28  ;;  %v478_v61 = vld [vmem:[%s2421_s23 + $0x8e8] sm:$0xff]  ;;  %v423_v30 = vld [vmem:[%s2421_s23 + $0x730] sm:$0xff] }
 0x195   : > { %1877 = vmatpush.msrb.mxu2 %v630_v29  ;;  %1897 = vmatpush.msrb.mxu3 %v758_v8  ;;  %v598_v48 = vld [vmem:[%s2421_s23 + $0xca8] sm:$0xff]  ;;  %v287_v29 = vld [vmem:[%s2421_s23 + $0x2f0] sm:$0xff] }
 0x196   : > { %1838 = vmatpush.msrb.mxu0 %v366_v31  ;;  %1857 = vmatpush.msrb.mxu1 %v502_v34  ;;  %v734_v27 = vld [vmem:[%s2421_s23 + $0x10e8] sm:$0xff]  ;;  %v1445_v31 = vpop.f32.mrf.mxu0  ;;  %v279_v8 = vld [vmem:[%s2421_s23 + $0x2b0] sm:$0xff] }
 0x197   : > { %1878 = vmatpush.msrb.mxu2 %v622_v35  ;;  %1898 = vmatpush.msrb.mxu3 %v750_v42  ;;  %v334_v49 = vld [vmem:[%s2421_s23 + $0x468] sm:$0xff]  ;;  %v271_v42 = vld [vmem:[%s2421_s23 + $0x270] sm:$0xff] }
 0x198   : > { %1839 = vmatpush.msrb.mxu0 %v358_v39  ;;  %1858 = vmatpush.msrb.mxu1 %v494_v40  ;;  %v470_v52 = vld [vmem:[%s2421_s23 + $0x8a8] sm:$0xff]  ;;  %v1465_v35 = vpop.f32.mrf.mxu1  ;;  %v415_v39 = vld [vmem:[%s2421_s23 + $0x6f0] sm:$0xff]  ;;  %v3185_v40 = vpop.f32.mrf.mxu2 }
 0x199   : > { %1879 = vmatpush.msrb.mxu2 %v614_v41  ;;  %1899 = vmatpush.msrb.mxu3 %v742_v46  ;;  %v590_v3 = vld [vmem:[%s2421_s23 + $0xc68] sm:$0xff] }
 0x19a   : > { %1840 = vmatpush.msrb.mxu0 %v350_v43  ;;  %1859 = vmatpush.msrb.mxu1 %v486_v22  ;;  %v726_v54 = vld [vmem:[%s2421_s23 + $0x10a8] sm:$0xff]  ;;  %v407_v43 = vld [vmem:[%s2421_s23 + $0x6b0] sm:$0xff]  ;;  %v1426_v22 = vadd.f32 %v1425_v19, %v1405_v11  ;;  %v3194_v46 = vpop.f32.mrf.mxu3 }
 0x19b   : > { %1880 = vmatpush.msrb.mxu2 %v606_v45  ;;  %v326_v55 = vld [vmem:[%s2421_s23 + $0x428] sm:$0xff]  ;;  %1900 = vmatpush.msrb.mxu3 %v734_v27  ;;  %v367_v11 = vld [vmem:[%s2421_s23 + $0x570] sm:$0xff] }
 0x19c   : > { %1841 = vmatpush.msrb.mxu0 %v342_v47  ;;  %1860 = vmatpush.msrb.mxu1 %v478_v61  ;;  %v462_v56 = vld [vmem:[%s2421_s23 + $0x868] sm:$0xff]  ;;  %v399_v47 = vld [vmem:[%s2421_s23 + $0x670] sm:$0xff]  ;;  %v1146_v61 = vadd.f32 %v3089_v6, %v3083_v1 }
 0x19d   : > { %1881 = vmatpush.msrb.mxu2 %v598_v48  ;;  %v582_v57 = vld [vmem:[%s2421_s23 + $0xc28] sm:$0xff]  ;;  %1901 = vmatpush.msrb.mxu3 %v726_v54 }
 0x19e   : > { %1842 = vmatpush.msrb.mxu0 %v334_v49  ;;  %1861 = vmatpush.msrb.mxu1 %v470_v52  ;;  %v718_v59 = vld [vmem:[%s2421_s23 + $0x1068] sm:$0xff]  ;;  %v391_v52 = vld [vmem:[%s2421_s23 + $0x630] sm:$0xff]  ;;  %v3205_v54 = vpop.f32.mrf.mxu0 }
 0x19f   : > { %1882 = vmatpush.msrb.mxu2 %v590_v3  ;;  %v958_v60 = vld [vmem:[%s2421_s23 + $0x17e8] sm:$0xff]  ;;  %1902 = vmatpush.msrb.mxu3 %v718_v59  ;;  %v1446_v3 = vadd.f32 %v1445_v31, %v1426_v22  ;;  %v335_v22 = vld [vmem:[%s2421_s23 + $0x470] sm:$0xff] }
 0x1a0   : > { %1843 = vmatpush.msrb.mxu0 %v326_v55  ;;  %1862 = vmatpush.msrb.mxu1 %v462_v56  ;;  %v454_v63 = vld [vmem:[%s2421_s23 + $0x828] sm:$0xff]  ;;  %v383_v55 = vld [vmem:[%s2421_s23 + $0x5f0] sm:$0xff] }
 0x1a1   : > { %1883 = vmatpush.msrb.mxu2 %v582_v57  ;;  %v710_v0 = vld [vmem:[%s2421_s23 + $0x1028] sm:$0xff]  ;;  %1844 = vmatmul.f32.vlgmr.msrb.gmra.mxu0 %v2897_v14  ;;  %v1286_v14 = vadd.f32 %v3136_v50, %v3120_v37  ;;  %v255_v50 = vld [vmem:[%s2421_s23 + $0x1f0] sm:$0xff]  ;;  %v1166_v57 = vadd.f32 %v3085_v4, %v1146_v61 }
 0x1a2   : > { %1908 = vmatpush.msra.mxu0 %v958_v60  ;;  %v950_v33 = vld [vmem:[%s2421_s23 + $0x17a8] sm:$0xff]  ;;  %1863 = vmatpush.msrb.mxu1 %v454_v63  ;;  %v1545_v56 = vpop.f32.mrf.mxu1 }
 0x1a3   : > { %v1086_v5 = vld [vmem:[%s2421_s23 + $0x1be8] sm:$0xff]  ;;  %1948 = vmatpush.msra.mxu2 %v319_v62  ;;  %1903 = vmatpush.msrb.mxu3 %v710_v0  ;;  %v1306_v48 = vadd.f32 %v3142_v53, %v1286_v14  ;;  %v247_v53 = vld [vmem:[%s2421_s23 + $0x1b0] sm:$0xff] }
 0x1a4   : > { %v942_v13 = vld [vmem:[%s2421_s23 + $0x1768] sm:$0xff]  ;;  %1909 = vmatpush.msra.mxu0 %v950_v33  ;;  %1928 = vmatpush.msra.mxu1 %v1086_v5  ;;  %v239_v0 = vld [vmem:[%s2421_s23 + $0x170] sm:$0xff] }
 0x1a5   : > { %v1078_v15 = vld [vmem:[%s2421_s23 + $0x1ba8] sm:$0xff]  ;;  %1949 = vmatpush.msra.mxu2 %v311_v7  ;;  %1968 = vmatpush.msra.mxu3 %v447_v9  ;;  %v1326_v59 = vadd.f32 %v3138_v51, %v1306_v48  ;;  %v375_v33 = vld [vmem:[%s2421_s23 + $0x5b0] sm:$0xff]  ;;  %v1466_v7 = vadd.f32 %v1465_v35, %v1446_v3 }
 0x1a6   : > { %v934_v36 = vld [vmem:[%s2421_s23 + $0x1728] sm:$0xff]  ;;  %1910 = vmatpush.msra.mxu0 %v942_v13  ;;  %1929 = vmatpush.msra.mxu1 %v1078_v15  ;;  %v1565_v63 = vpop.f32.mrf.mxu2  ;;  %v231_v9 = vld [vmem:[%s2421_s23 + $0x130] sm:$0xff]  ;;  %v1585_v13 = vpop.f32.mrf.mxu3  ;;  %v1186_v15 = vadd.f32 %v3096_v12, %v1166_v57 }
 0x1a7   : > { %v1070_v21 = vld [vmem:[%s2421_s23 + $0x1b68] sm:$0xff]  ;;  %1950 = vmatpush.msra.mxu2 %v303_v26  ;;  %1969 = vmatpush.msra.mxu3 %v439_v18  ;;  %v1566_v5 = vadd.f32 %v1565_v63, %v1545_v56  ;;  %v1346_v26 = vadd.f32 %v3148_v58, %v1326_v59  ;;  %v1486_v12 = vadd.f32 %v3185_v40, %v1466_v7  ;;  %v207_v35 = vld [vmem:[%s2421_s23 + $0x70] sm:$0xff] }
 0x1a8   : > { %1884 = vmatmul.f32.vlgmr.msrb.gmra.mxu2 %v2928_v38  ;;  %1911 = vmatpush.msra.mxu0 %v934_v36  ;;  %v926_v25 = vld [vmem:[%s2421_s23 + $0x16e8] sm:$0xff]  ;;  %v559_v56 = vld [vmem:[%s2421_s23 + $0xb70] sm:$0xff] }
 0x1a9   : > { %1930 = vmatpush.msra.mxu1 %v1070_v21  ;;  %1951 = vmatpush.msra.mxu2 %v295_v23  ;;  %v1062_v28 = vld [vmem:[%s2421_s23 + $0x1b28] sm:$0xff]  ;;  %v1586_v19 = vadd.f32 %v1585_v13, %v1566_v5  ;;  %v223_v21 = vld [vmem:[%s2421_s23 + $0xf0] sm:$0xff]  ;;  %v1506_v40 = vadd.f32 %v3194_v46, %v1486_v12 }
 0x1aa   : > { %1970 = vmatpush.msra.mxu3 %v431_v24  ;;  %1912 = vmatpush.msra.mxu0 %v926_v25  ;;  %v918_v38 = vld [vmem:[%s2421_s23 + $0x16a8] sm:$0xff]  ;;  %v359_v23 = vld [vmem:[%s2421_s23 + $0x530] sm:$0xff]  ;;  %v1366_v24 = vadd.f32 %v3160_v10, %v1346_v26 }
 0x1ab   : > { %1904 = vmatmul.f32.vlgmr.msrb.gmra.mxu3 %v2937_v44  ;;  %v1054_v34 = vld [vmem:[%s2421_s23 + $0x1ae8] sm:$0xff]  ;;  %1931 = vmatpush.msra.mxu1 %v1062_v28  ;;  %v695_v57 = vld [vmem:[%s2421_s23 + $0xfb0] sm:$0xff] }
 0x1ac   : > { %1952 = vmatpush.msra.mxu2 %v287_v29  ;;  %1971 = vmatpush.msra.mxu3 %v423_v30  ;;  %v910_v44 = vld [vmem:[%s2421_s23 + $0x1668] sm:$0xff]  ;;  %v215_v29 = vld [vmem:[%s2421_s23 + $0xb0] sm:$0xff]  ;;  %v1386_v14 = vadd.f32 %v3164_v16, %v1366_v24  ;;  %v1526_v16 = vadd.f32 %v3205_v54, %v1506_v40 }
 0x1ad   : > { %1864 = vmatmul.f32.vlgmr.msrb.gmra.mxu1 %v2904_v20  ;;  %v1046_v41 = vld [vmem:[%s2421_s23 + $0x1aa8] sm:$0xff]  ;;  %1913 = vmatpush.msra.mxu0 %v918_v38  ;;  %v263_v20 = vld [vmem:[%s2421_s23 + $0x230] sm:$0xff]  ;;  %v1206_v38 = vadd.f32 %v3112_v32, %v1186_v15 }
 0x1ae   : > { %1932 = vmatpush.msra.mxu1 %v1054_v34  ;;  %1953 = vmatpush.msra.mxu2 %v279_v8  ;;  %v902_v37 = vld [vmem:[%s2421_s23 + $0x1628] sm:$0xff]  ;;  %v351_v30 = vld [vmem:[%s2421_s23 + $0x4f0] sm:$0xff]  ;;  %v2236_v48 = vrot.slane %v1386_v14, 6  ;;  %v2237_v54 = vrot.slane %v1526_v16, 4 }
 0x1af   : > { %1972 = vmatpush.msra.mxu3 %v415_v39  ;;  %v1038_v45 = vld [vmem:[%s2421_s23 + $0x1a68] sm:$0xff]  ;;  %1914 = vmatpush.msra.mxu0 %v910_v44  ;;  %v343_v8 = vld [vmem:[%s2421_s23 + $0x4b0] sm:$0xff] }
 0x1b0   : > { %1933 = vmatpush.msra.mxu1 %v1046_v41  ;;  %1954 = vmatpush.msra.mxu2 %v271_v42  ;;  %v894_v27 = vld [vmem:[%s2421_s23 + $0x15e8] sm:$0xff]  ;;  %v807_v7 = vld [vmem:[%s2421_s23 + $0x1330] sm:$0xff] }
 0x1b1   : > { %1973 = vmatpush.msra.mxu3 %v407_v43  ;;  %v1030_v49 = vld [vmem:[%s2421_s23 + $0x1a28] sm:$0xff]  ;;  %1915 = vmatpush.msra.mxu0 %v902_v37  ;;  %v199_v43 = vld [vmem:[%s2421_s23 + $0x30] sm:$0xff]  ;;  %v1226_v37 = vadd.f32 %v3118_v17, %v1206_v38 }
 0x1b2   : > { %1934 = vmatpush.msra.mxu1 %v1038_v45  ;;  %1955 = vmatpush.msra.mxu2 %v263_v20  ;;  %v886_v1 = vld [vmem:[%s2421_s23 + $0x15a8] sm:$0xff]  ;;  %v831_v45 = vld [vmem:[%s2421_s23 + $0x13f0] sm:$0xff] }
 0x1b3   : > { %1974 = vmatpush.msra.mxu3 %v399_v47  ;;  %v1022_v6 = vld [vmem:[%s2421_s23 + $0x19e8] sm:$0xff]  ;;  %1916 = vmatpush.msra.mxu0 %v894_v27  ;;  %v575_v20 = vld [vmem:[%s2421_s23 + $0xbf0] sm:$0xff]  ;;  %v1246_v3 = vadd.f32 %v3114_v2, %v1226_v37 }
 0x1b4   : > { %1935 = vmatpush.msra.mxu1 %v1030_v49  ;;  %1956 = vmatpush.msra.mxu2 %v255_v50  ;;  %v878_v60 = vld [vmem:[%s2421_s23 + $0x1568] sm:$0xff]  ;;  %v327_v27 = vld [vmem:[%s2421_s23 + $0x430] sm:$0xff] }
 0x1b5   : > { %1975 = vmatpush.msra.mxu3 %v391_v52  ;;  %v1014_v62 = vld [vmem:[%s2421_s23 + $0x19a8] sm:$0xff]  ;;  %1917 = vmatpush.msra.mxu0 %v886_v1  ;;  %v567_v50 = vld [vmem:[%s2421_s23 + $0xbb0] sm:$0xff]  ;;  %v2243_v59 = vsel %vm2242_vm0, %v1246_v3, %v2236_v48 }
 0x1b6   : > { %1936 = vmatpush.msra.mxu1 %v1022_v6  ;;  %1957 = vmatpush.msra.mxu2 %v247_v53  ;;  %v870_v4 = vld [vmem:[%s2421_s23 + $0x1528] sm:$0xff]  ;;  %v703_v52 = vld [vmem:[%s2421_s23 + $0xff0] sm:$0xff] }
 0x1b7   : > { %1976 = vmatpush.msra.mxu3 %v383_v55  ;;  %v1006_v51 = vld [vmem:[%s2421_s23 + $0x1968] sm:$0xff]  ;;  %1918 = vmatpush.msra.mxu0 %v878_v60  ;;  %v823_v1 = vld [vmem:[%s2421_s23 + $0x13b0] sm:$0xff] }
 0x1b8   : > { %1937 = vmatpush.msra.mxu1 %v1014_v62  ;;  %1958 = vmatpush.msra.mxu2 %v239_v0  ;;  %v862_v18 = vld [vmem:[%s2421_s23 + $0x14e8] sm:$0xff]  ;;  %v959_v6 = vld [vmem:[%s2421_s23 + $0x17f0] sm:$0xff] }
 0x1b9   : > { %1977 = vmatpush.msra.mxu3 %v375_v33  ;;  %v998_v36 = vld [vmem:[%s2421_s23 + $0x1928] sm:$0xff]  ;;  %1919 = vmatpush.msra.mxu0 %v870_v4  ;;  %v3258_v55 = vld.sshfl [vmem:[#allocation1 + $0x30] sm:$0xff pattern:$0x73625140] }
 0x1ba   : > { %1938 = vmatpush.msra.mxu1 %v1006_v51  ;;  %1959 = vmatpush.msra.mxu2 %v231_v9  ;;  %v854_v58 = vld [vmem:[%s2421_s23 + $0x14a8] sm:$0xff]  ;;  %v1605_v28 = vpop.f32.mrf.mxu0  ;;  %v815_v60 = vld [vmem:[%s2421_s23 + $0x1370] sm:$0xff] }
 0x1bb   : > { %1978 = vmatpush.msra.mxu3 %v367_v11  ;;  %v990_v25 = vld [vmem:[%s2421_s23 + $0x18e8] sm:$0xff]  ;;  %1920 = vmatpush.msra.mxu0 %v862_v18  ;;  %v1606_v31 = vadd.f32 %v1605_v28, %v1586_v19  ;;  %v951_v62 = vld [vmem:[%s2421_s23 + $0x17b0] sm:$0xff] }
 0x1bc   : > { %1939 = vmatpush.msra.mxu1 %v998_v36  ;;  %1960 = vmatpush.msra.mxu2 %v223_v21  ;;  %v846_v10 = vld [vmem:[%s2421_s23 + $0x1468] sm:$0xff]  ;;  %v1625_v39 = vpop.f32.mrf.mxu1  ;;  %v551_v0 = vld [vmem:[%s2421_s23 + $0xb30] sm:$0xff] }
 0x1bd   : > { %1979 = vmatpush.msra.mxu3 %v359_v23  ;;  %v982_v34 = vld [vmem:[%s2421_s23 + $0x18a8] sm:$0xff]  ;;  %1921 = vmatpush.msra.mxu0 %v854_v58  ;;  %v1626_v41 = vadd.f32 %v1625_v39, %v1606_v31  ;;  %v1645_v42 = vpop.f32.mrf.mxu2  ;;  %v687_v33 = vld [vmem:[%s2421_s23 + $0xf70] sm:$0xff] }
 0x1be   : > { %1940 = vmatpush.msra.mxu1 %v990_v25  ;;  %1961 = vmatpush.msra.mxu2 %v215_v29  ;;  %v838_v44 = vld [vmem:[%s2421_s23 + $0x1428] sm:$0xff]  ;;  %v943_v4 = vld [vmem:[%s2421_s23 + $0x1770] sm:$0xff] }
 0x1bf   : > { %1980 = vmatpush.msra.mxu3 %v351_v30  ;;  %v974_v32 = vld [vmem:[%s2421_s23 + $0x1868] sm:$0xff]  ;;  %1922 = vmatpush.msra.mxu0 %v846_v10  ;;  %v1646_v46 = vadd.f32 %v1645_v42, %v1626_v41  ;;  %v543_v9 = vld [vmem:[%s2421_s23 + $0xaf0] sm:$0xff] }
 0x1c0   : > { %1941 = vmatpush.msra.mxu1 %v982_v34  ;;  %1962 = vmatpush.msra.mxu2 %v207_v35  ;;  %v966_v47 = vld [vmem:[%s2421_s23 + $0x1828] sm:$0xff]  ;;  %v1665_v61 = vpop.f32.mrf.mxu3  ;;  %v679_v11 = vld [vmem:[%s2421_s23 + $0xf30] sm:$0xff] }
 0x1c1   : > { %1981 = vmatpush.msra.mxu3 %v343_v8  ;;  %1923 = vmatpush.msra.mxu0 %v838_v44  ;;  %v1666_v17 = vadd.f32 %v1665_v61, %v1646_v46  ;;  %v3250_v49 = vld.sshfl [vmem:[#allocation1 + $0x28] sm:$0xff pattern:$0x73625140]  ;;  %v799_v13 = vld [vmem:[%s2421_s23 + $0x12f0] sm:$0xff] }
 0x1c2   : > { %1942 = vmatpush.msra.mxu1 %v974_v32  ;;  %1963 = vmatpush.msra.mxu2 %v199_v43  ;;  %v189_v2 = vld [vmem:[#allocation2] sm:$0xff]  ;;  %v935_v15 = vld [vmem:[%s2421_s23 + $0x1730] sm:$0xff] }
 0x1c3   : > { %1982 = vmatpush.msra.mxu3 %v335_v22  ;;  %1924 = vmatmul.f32.vlgmr.msra.gmra.mxu0 %v3250_v49  ;;  %v2238_v53 = vrot.slane %v1666_v17, 2  ;;  %v535_v26 = vld [vmem:[%s2421_s23 + $0xab0] sm:$0xff] }
 0x1c4   : > { %2028 = vmatpush.msrb.mxu2 %v831_v45  ;;  %1988 = vmatpush.msrb.mxu0 %v575_v20  ;;  %v671_v18 = vld [vmem:[%s2421_s23 + $0xef0] sm:$0xff] }
 0x1c5   : > { %1943 = vmatpush.msra.mxu1 %v966_v47  ;;  %1983 = vmatpush.msra.mxu3 %v327_v27  ;;  %v2245_v63 = vsel %vm2244_vm1, %v2237_v54, %v2238_v53  ;;  %v791_v36 = vld [vmem:[%s2421_s23 + $0x12b0] sm:$0xff] }
 0x1c6   : > { %1944 = vmatmul.f32.vlgmr.msra.gmra.mxu1 %v3258_v55  ;;  %1989 = vmatpush.msrb.mxu0 %v567_v50  ;;  %v2247_v5 = vsel %vm2246_vm2, %v2243_v59, %v2245_v63  ;;  %v927_v19 = vld [vmem:[%s2421_s23 + $0x16f0] sm:$0xff]  ;;  %v3329_v63 = vld.sshfl [vmem:[#allocation1 + $0x8] sm:$0xff pattern:$0x73625140] }
 0x1c7   : > { %2008 = vmatpush.msrb.mxu1 %v703_v52  ;;  %2029 = vmatpush.msrb.mxu2 %v823_v1  ;;  %v2253_v51 = vadd.f32 %v2247_v5, %v189_v2  ;;  %v527_v21 = vld [vmem:[%s2421_s23 + $0xa70] sm:$0xff] }
 0x1c8   : > { %2048 = vmatpush.msrb.mxu3 %v959_v6  ;;  %1990 = vmatpush.msrb.mxu0 %v559_v56  ;;  %v663_v23 = vld [vmem:[%s2421_s23 + $0xeb0] sm:$0xff]  ;;  %v3321_v56 = vld.sshfl [vmem:[#allocation1] sm:$0xff pattern:$0x73625140] }
 0x1c9   : > { %2009 = vmatpush.msrb.mxu1 %v695_v57  ;;  %2030 = vmatpush.msrb.mxu2 %v815_v60  ;;  %2255 = vst [vmem:[#allocation2] sm:$0xff] %v2253_v51  ;;  %v783_v24 = vld [vmem:[%s2421_s23 + $0x1270] sm:$0xff]  ;;  %v448_v57 = vld [vmem:[%s2421_s23 + $0x7f8] sm:$0xff] }
 0x1ca   : > { %2049 = vmatpush.msrb.mxu3 %v951_v62  ;;  %1991 = vmatpush.msrb.mxu0 %v551_v0  ;;  %v919_v12 = vld [vmem:[%s2421_s23 + $0x16b0] sm:$0xff]  ;;  %v320_v62 = vld [vmem:[%s2421_s23 + $0x3f8] sm:$0xff] }
 0x1cb   : > { %2010 = vmatpush.msrb.mxu1 %v687_v33  ;;  %2031 = vmatpush.msrb.mxu2 %v807_v7  ;;  %v519_v58 = vld [vmem:[%s2421_s23 + $0xa30] sm:$0xff]  ;;  %v440_v0 = vld [vmem:[%s2421_s23 + $0x7b8] sm:$0xff] }
 0x1cc   : > { %2050 = vmatpush.msrb.mxu3 %v943_v4  ;;  %1992 = vmatpush.msrb.mxu0 %v543_v9  ;;  %v655_v25 = vld [vmem:[%s2421_s23 + $0xe70] sm:$0xff]  ;;  %v576_v33 = vld [vmem:[%s2421_s23 + $0xbf8] sm:$0xff] }
 0x1cd   : > { %2011 = vmatpush.msrb.mxu1 %v679_v11  ;;  %2032 = vmatpush.msrb.mxu2 %v799_v13  ;;  %v775_v28 = vld [vmem:[%s2421_s23 + $0x1230] sm:$0xff]  ;;  %v312_v7 = vld [vmem:[%s2421_s23 + $0x3b8] sm:$0xff] }
 0x1ce   : > { %2051 = vmatpush.msrb.mxu3 %v935_v15  ;;  %1993 = vmatpush.msrb.mxu0 %v535_v26  ;;  %v911_v29 = vld [vmem:[%s2421_s23 + $0x1670] sm:$0xff]  ;;  %v432_v4 = vld [vmem:[%s2421_s23 + $0x778] sm:$0xff]  ;;  %v3342_v26 = vld.sshfl [vmem:[#allocation1 + $0x20] sm:$0xff pattern:$0x73625140] }
 0x1cf   : > { %2012 = vmatpush.msrb.mxu1 %v671_v18  ;;  %2033 = vmatpush.msrb.mxu2 %v791_v36  ;;  %v511_v30 = vld [vmem:[%s2421_s23 + $0x9f0] sm:$0xff]  ;;  %v568_v51 = vld [vmem:[%s2421_s23 + $0xbb8] sm:$0xff] }
 0x1d0   : > { %2052 = vmatpush.msrb.mxu3 %v927_v19  ;;  %1994 = vmatpush.msrb.mxu0 %v527_v21  ;;  %v647_v31 = vld [vmem:[%s2421_s23 + $0xe30] sm:$0xff]  ;;  %v304_v11 = vld [vmem:[%s2421_s23 + $0x378] sm:$0xff] }
 0x1d1   : > { %2013 = vmatpush.msrb.mxu1 %v663_v23  ;;  %2034 = vmatpush.msrb.mxu2 %v783_v24  ;;  %v767_v38 = vld [vmem:[%s2421_s23 + $0x11f0] sm:$0xff]  ;;  %v424_v13 = vld [vmem:[%s2421_s23 + $0x738] sm:$0xff] }
 0x1d2   : > { %2053 = vmatpush.msrb.mxu3 %v919_v12  ;;  %1995 = vmatpush.msrb.mxu0 %v519_v58  ;;  %v903_v10 = vld [vmem:[%s2421_s23 + $0x1630] sm:$0xff]  ;;  %v560_v15 = vld [vmem:[%s2421_s23 + $0xb78] sm:$0xff] }
 0x1d3   : > { %2014 = vmatpush.msrb.mxu1 %v655_v25  ;;  %2035 = vmatpush.msrb.mxu2 %v775_v28  ;;  %v503_v34 = vld [vmem:[%s2421_s23 + $0x9b0] sm:$0xff]  ;;  %v296_v36 = vld [vmem:[%s2421_s23 + $0x338] sm:$0xff] }
 0x1d4   : > { %2054 = vmatpush.msrb.mxu3 %v911_v29  ;;  %v639_v35 = vld [vmem:[%s2421_s23 + $0xdf0] sm:$0xff]  ;;  %1996 = vmatpush.msrb.mxu0 %v511_v30  ;;  %v416_v19 = vld [vmem:[%s2421_s23 + $0x6f8] sm:$0xff] }
 0x1d5   : > { %2015 = vmatpush.msrb.mxu1 %v647_v31  ;;  %v759_v8 = vld [vmem:[%s2421_s23 + $0x11b0] sm:$0xff]  ;;  %2036 = vmatpush.msrb.mxu2 %v767_v38  ;;  %v552_v23 = vld [vmem:[%s2421_s23 + $0xb38] sm:$0xff] }
 0x1d6   : > { %v895_v39 = vld [vmem:[%s2421_s23 + $0x15f0] sm:$0xff]  ;;  %2055 = vmatpush.msrb.mxu3 %v903_v10  ;;  %1997 = vmatpush.msrb.mxu0 %v503_v34  ;;  %v288_v12 = vld [vmem:[%s2421_s23 + $0x2f8] sm:$0xff] }
 0x1d7   : > { %v495_v14 = vld [vmem:[%s2421_s23 + $0x970] sm:$0xff]  ;;  %2016 = vmatpush.msrb.mxu1 %v639_v35  ;;  %2037 = vmatpush.msrb.mxu2 %v759_v8  ;;  %v408_v58 = vld [vmem:[%s2421_s23 + $0x6b8] sm:$0xff] }
 0x1d8   : > { %v631_v40 = vld [vmem:[%s2421_s23 + $0xdb0] sm:$0xff]  ;;  %2056 = vmatpush.msrb.mxu3 %v895_v39  ;;  %1998 = vmatpush.msrb.mxu0 %v495_v14  ;;  %v544_v25 = vld [vmem:[%s2421_s23 + $0xaf8] sm:$0xff] }
 0x1d9   : > { %v751_v44 = vld [vmem:[%s2421_s23 + $0x1170] sm:$0xff]  ;;  %2017 = vmatpush.msrb.mxu1 %v631_v40  ;;  %1964 = vmatmul.f32.vlgmr.msra.gmra.mxu2 %v3321_v56  ;;  %v3357_v28 = vld.sshfl [vmem:[#allocation1 + $0x18] sm:$0xff pattern:$0x73625140] }
 0x1da   : > { %v887_v32 = vld [vmem:[%s2421_s23 + $0x15b0] sm:$0xff]  ;;  %2038 = vmatpush.msrb.mxu2 %v751_v44  ;;  %1984 = vmatmul.f32.vlgmr.msra.gmra.mxu3 %v3329_v63  ;;  %v280_v30 = vld [vmem:[%s2421_s23 + $0x2b8] sm:$0xff] }
 0x1db   : > { %v487_v41 = vld [vmem:[%s2421_s23 + $0x930] sm:$0xff]  ;;  %2057 = vmatpush.msrb.mxu3 %v887_v32  ;;  %v400_v31 = vld [vmem:[%s2421_s23 + $0x678] sm:$0xff] }
 0x1dc   : > { %v623_v42 = vld [vmem:[%s2421_s23 + $0xd70] sm:$0xff]  ;;  %1999 = vmatpush.msrb.mxu0 %v487_v41  ;;  %v536_v38 = vld [vmem:[%s2421_s23 + $0xab8] sm:$0xff] }
 0x1dd   : > { %v743_v43 = vld [vmem:[%s2421_s23 + $0x1130] sm:$0xff]  ;;  %2018 = vmatpush.msrb.mxu1 %v623_v42  ;;  %v272_v34 = vld [vmem:[%s2421_s23 + $0x278] sm:$0xff] }
 0x1de   : > { %v879_v22 = vld [vmem:[%s2421_s23 + $0x1570] sm:$0xff]  ;;  %2039 = vmatpush.msrb.mxu2 %v743_v43  ;;  %v392_v35 = vld [vmem:[%s2421_s23 + $0x638] sm:$0xff] }
 0x1df   : > { %v479_v37 = vld [vmem:[%s2421_s23 + $0x8f0] sm:$0xff]  ;;  %2058 = vmatpush.msrb.mxu3 %v879_v22  ;;  %v528_v8 = vld [vmem:[%s2421_s23 + $0xa78] sm:$0xff] }
 0x1e0   : > { %v615_v16 = vld [vmem:[%s2421_s23 + $0xd30] sm:$0xff]  ;;  %2000 = vmatpush.msrb.mxu0 %v479_v37  ;;  %v264_v14 = vld [vmem:[%s2421_s23 + $0x238] sm:$0xff] }
 0x1e1   : > { %v735_v45 = vld [vmem:[%s2421_s23 + $0x10f0] sm:$0xff]  ;;  %2019 = vmatpush.msrb.mxu1 %v615_v16  ;;  %v384_v40 = vld [vmem:[%s2421_s23 + $0x5f8] sm:$0xff] }
 0x1e2   : > { %v871_v46 = vld [vmem:[%s2421_s23 + $0x1530] sm:$0xff]  ;;  %2040 = vmatpush.msrb.mxu2 %v735_v45  ;;  %v520_v44 = vld [vmem:[%s2421_s23 + $0xa38] sm:$0xff] }
 0x1e3   : > { %v471_v20 = vld [vmem:[%s2421_s23 + $0x8b0] sm:$0xff]  ;;  %2059 = vmatpush.msrb.mxu3 %v871_v46  ;;  %v256_v41 = vld [vmem:[%s2421_s23 + $0x1f8] sm:$0xff] }
 0x1e4   : > { %v607_v47 = vld [vmem:[%s2421_s23 + $0xcf0] sm:$0xff]  ;;  %2001 = vmatpush.msrb.mxu0 %v471_v20  ;;  %v376_v42 = vld [vmem:[%s2421_s23 + $0x5b8] sm:$0xff] }
 0x1e5   : > { %v727_v61 = vld [vmem:[%s2421_s23 + $0x10b0] sm:$0xff]  ;;  %2020 = vmatpush.msrb.mxu1 %v607_v47  ;;  %v512_v43 = vld [vmem:[%s2421_s23 + $0x9f8] sm:$0xff] }
 0x1e6   : > { %v863_v48 = vld [vmem:[%s2421_s23 + $0x14f0] sm:$0xff]  ;;  %2041 = vmatpush.msrb.mxu2 %v727_v61  ;;  %v248_v37 = vld [vmem:[%s2421_s23 + $0x1b8] sm:$0xff] }
 0x1e7   : > { %v463_v27 = vld [vmem:[%s2421_s23 + $0x870] sm:$0xff]  ;;  %2060 = vmatpush.msrb.mxu3 %v863_v48  ;;  %v368_v16 = vld [vmem:[%s2421_s23 + $0x578] sm:$0xff] }
 0x1e8   : > { %v599_v17 = vld [vmem:[%s2421_s23 + $0xcb0] sm:$0xff]  ;;  %2002 = vmatpush.msrb.mxu0 %v463_v27  ;;  %v504_v45 = vld [vmem:[%s2421_s23 + $0x9b8] sm:$0xff] }
 0x1e9   : > { %v719_v50 = vld [vmem:[%s2421_s23 + $0x1070] sm:$0xff]  ;;  %2021 = vmatpush.msrb.mxu1 %v599_v17  ;;  %v240_v20 = vld [vmem:[%s2421_s23 + $0x178] sm:$0xff] }
 0x1ea   : > { %v855_v52 = vld [vmem:[%s2421_s23 + $0x14b0] sm:$0xff]  ;;  %2042 = vmatpush.msrb.mxu2 %v719_v50  ;;  %v360_v47 = vld [vmem:[%s2421_s23 + $0x538] sm:$0xff] }
 0x1eb   : > { %v455_v3 = vld [vmem:[%s2421_s23 + $0x830] sm:$0xff]  ;;  %2061 = vmatpush.msrb.mxu3 %v855_v52  ;;  %v496_v61 = vld [vmem:[%s2421_s23 + $0x978] sm:$0xff] }
 0x1ec   : > { %v591_v54 = vld [vmem:[%s2421_s23 + $0xc70] sm:$0xff]  ;;  %2003 = vmatpush.msrb.mxu0 %v455_v3  ;;  %v232_v27 = vld [vmem:[%s2421_s23 + $0x138] sm:$0xff] }
 0x1ed   : > { %v711_v1 = vld [vmem:[%s2421_s23 + $0x1030] sm:$0xff]  ;;  %2022 = vmatpush.msrb.mxu1 %v591_v54  ;;  %v352_v17 = vld [vmem:[%s2421_s23 + $0x4f8] sm:$0xff] }
 0x1ee   : > { %v847_v6 = vld [vmem:[%s2421_s23 + $0x1470] sm:$0xff]  ;;  %2043 = vmatpush.msrb.mxu2 %v711_v1  ;;  %v488_v50 = vld [vmem:[%s2421_s23 + $0x938] sm:$0xff] }
 0x1ef   : > { %v1087_v53 = vld [vmem:[%s2421_s23 + $0x1bf0] sm:$0xff]  ;;  %2062 = vmatpush.msrb.mxu3 %v847_v6  ;;  %2044 = vmatmul.f32.vlgmr.msrb.gmra.mxu2 %v3342_v26  ;;  %v224_v3 = vld [vmem:[%s2421_s23 + $0xf8] sm:$0xff] }
 0x1f0   : > { %v583_v2 = vld [vmem:[%s2421_s23 + $0xc30] sm:$0xff]  ;;  %2068 = vmatpush.msra.mxu0 %v1087_v53  ;;  %2108 = vmatpush.msra.mxu2 %v448_v57  ;;  %v344_v54 = vld [vmem:[%s2421_s23 + $0x4b8] sm:$0xff] }
 0x1f1   : > { %v839_v59 = vld [vmem:[%s2421_s23 + $0x1430] sm:$0xff]  ;;  %2023 = vmatpush.msrb.mxu1 %v583_v2  ;;  %v480_v1 = vld [vmem:[%s2421_s23 + $0x8f8] sm:$0xff] }
 0x1f2   : > { %v1079_v60 = vld [vmem:[%s2421_s23 + $0x1bb0] sm:$0xff]  ;;  %2063 = vmatpush.msrb.mxu3 %v839_v59  ;;  %2109 = vmatpush.msra.mxu2 %v440_v0  ;;  %v216_v53 = vld [vmem:[%s2421_s23 + $0xb8] sm:$0xff] }
 0x1f3   : > { %v1071_v5 = vld [vmem:[%s2421_s23 + $0x1b70] sm:$0xff]  ;;  %2069 = vmatpush.msra.mxu0 %v1079_v60  ;;  %2088 = vmatpush.msra.mxu1 %v320_v62  ;;  %v336_v57 = vld [vmem:[%s2421_s23 + $0x478] sm:$0xff] }
 0x1f4   : > { %2128 = vmatpush.msra.mxu3 %v576_v33  ;;  %v1063_v9 = vld [vmem:[%s2421_s23 + $0x1b30] sm:$0xff]  ;;  %2110 = vmatpush.msra.mxu2 %v432_v4  ;;  %v472_v2 = vld [vmem:[%s2421_s23 + $0x8b8] sm:$0xff] }
 0x1f5   : > { %2070 = vmatpush.msra.mxu0 %v1071_v5  ;;  %2089 = vmatpush.msra.mxu1 %v312_v7  ;;  %v1055_v18 = vld [vmem:[%s2421_s23 + $0x1af0] sm:$0xff]  ;;  %v208_v60 = vld [vmem:[%s2421_s23 + $0x78] sm:$0xff] }
 0x1f6   : > { %2129 = vmatpush.msra.mxu3 %v568_v51  ;;  %2111 = vmatpush.msra.mxu2 %v424_v13  ;;  %v3348_v21 = vld.sshfl [vmem:[#allocation1 + $0x10] sm:$0xff pattern:$0x73625140]  ;;  %v328_v62 = vld [vmem:[%s2421_s23 + $0x438] sm:$0xff] }
 0x1f7   : > { %2071 = vmatpush.msra.mxu0 %v1063_v9  ;;  %2090 = vmatpush.msra.mxu1 %v304_v11  ;;  %v1047_v24 = vld [vmem:[%s2421_s23 + $0x1ab0] sm:$0xff]  ;;  %v464_v0 = vld [vmem:[%s2421_s23 + $0x878] sm:$0xff] }
 0x1f8   : > { %2130 = vmatpush.msra.mxu3 %v560_v15  ;;  %2004 = vmatmul.f32.vlgmr.msrb.gmra.mxu0 %v3348_v21  ;;  %v1039_v29 = vld [vmem:[%s2421_s23 + $0x1a70] sm:$0xff]  ;;  %v960_v33 = vld [vmem:[%s2421_s23 + $0x17f8] sm:$0xff] }
 0x1f9   : > { %2064 = vmatmul.f32.vlgmr.msrb.gmra.mxu3 %v3250_v49  ;;  %2072 = vmatpush.msra.mxu0 %v1055_v18  ;;  %v1031_v10 = vld [vmem:[%s2421_s23 + $0x1a30] sm:$0xff]  ;;  %v704_v5 = vld [vmem:[%s2421_s23 + $0xff8] sm:$0xff] }
 0x1fa   : > { %2091 = vmatpush.msra.mxu1 %v296_v36  ;;  %2112 = vmatpush.msra.mxu2 %v416_v19  ;;  %v1023_v39 = vld [vmem:[%s2421_s23 + $0x19f0] sm:$0xff]  ;;  %v200_v7 = vld [vmem:[%s2421_s23 + $0x38] sm:$0xff] }
 0x1fb   : > { %2131 = vmatpush.msra.mxu3 %v552_v23  ;;  %2024 = vmatmul.f32.vlgmr.msrb.gmra.mxu1 %v3357_v28  ;;  %v1015_v32 = vld [vmem:[%s2421_s23 + $0x19b0] sm:$0xff]  ;;  %v456_v4 = vld [vmem:[%s2421_s23 + $0x838] sm:$0xff] }
 0x1fc   : > { %2073 = vmatpush.msra.mxu0 %v1047_v24  ;;  %2092 = vmatpush.msra.mxu1 %v288_v12  ;;  %v1007_v22 = vld [vmem:[%s2421_s23 + $0x1970] sm:$0xff]  ;;  %v832_v51 = vld [vmem:[%s2421_s23 + $0x13f8] sm:$0xff] }
 0x1fd   : > { %2113 = vmatpush.msra.mxu2 %v408_v58  ;;  %2132 = vmatpush.msra.mxu3 %v544_v25  ;;  %v999_v46 = vld [vmem:[%s2421_s23 + $0x1930] sm:$0xff]  ;;  %v696_v9 = vld [vmem:[%s2421_s23 + $0xfb8] sm:$0xff] }
 0x1fe   : > { %2074 = vmatpush.msra.mxu0 %v1039_v29  ;;  %2093 = vmatpush.msra.mxu1 %v280_v30  ;;  %v991_v48 = vld [vmem:[%s2421_s23 + $0x18f0] sm:$0xff]  ;;  %v952_v11 = vld [vmem:[%s2421_s23 + $0x17b8] sm:$0xff] }
 0x1ff   : > { %2114 = vmatpush.msra.mxu2 %v400_v31  ;;  %2133 = vmatpush.msra.mxu3 %v536_v38  ;;  %v983_v52 = vld [vmem:[%s2421_s23 + $0x18b0] sm:$0xff]  ;;  %v1088_v13 = vld [vmem:[%s2421_s23 + $0x1bf8] sm:$0xff] }
 0x200   : > { %2075 = vmatpush.msra.mxu0 %v1031_v10  ;;  %2094 = vmatpush.msra.mxu1 %v272_v34  ;;  %v975_v6 = vld [vmem:[%s2421_s23 + $0x1870] sm:$0xff]  ;;  %v824_v15 = vld [vmem:[%s2421_s23 + $0x13b8] sm:$0xff] }
 0x201   : > { %2115 = vmatpush.msra.mxu2 %v392_v35  ;;  %2134 = vmatpush.msra.mxu3 %v528_v8  ;;  %v967_v59 = vld [vmem:[%s2421_s23 + $0x1830] sm:$0xff]  ;;  %v688_v18 = vld [vmem:[%s2421_s23 + $0xf78] sm:$0xff] }
 0x202   : > { %2076 = vmatpush.msra.mxu0 %v1023_v39  ;;  %2095 = vmatpush.msra.mxu1 %v264_v14  ;;  %v944_v36 = vld [vmem:[%s2421_s23 + $0x1778] sm:$0xff] }
 0x203   : > { %2116 = vmatpush.msra.mxu2 %v384_v40  ;;  %2135 = vmatpush.msra.mxu3 %v520_v44  ;;  %v1080_v19 = vld [vmem:[%s2421_s23 + $0x1bb8] sm:$0xff] }
 0x204   : > { %2077 = vmatpush.msra.mxu0 %v1015_v32  ;;  %2096 = vmatpush.msra.mxu1 %v256_v41  ;;  %v816_v23 = vld [vmem:[%s2421_s23 + $0x1378] sm:$0xff] }
 0x205   : > { %2117 = vmatpush.msra.mxu2 %v376_v42  ;;  %2136 = vmatpush.msra.mxu3 %v512_v43  ;;  %v680_v24 = vld [vmem:[%s2421_s23 + $0xf38] sm:$0xff] }
 0x206   : > { %2078 = vmatpush.msra.mxu0 %v1007_v22  ;;  %2097 = vmatpush.msra.mxu1 %v248_v37  ;;  %v936_v12 = vld [vmem:[%s2421_s23 + $0x1738] sm:$0xff] }
 0x207   : > { %2118 = vmatpush.msra.mxu2 %v368_v16  ;;  %2137 = vmatpush.msra.mxu3 %v504_v45  ;;  %v1072_v58 = vld [vmem:[%s2421_s23 + $0x1b78] sm:$0xff] }
 0x208   : > { %2079 = vmatpush.msra.mxu0 %v999_v46  ;;  %2098 = vmatpush.msra.mxu1 %v240_v20  ;;  %v808_v25 = vld [vmem:[%s2421_s23 + $0x1338] sm:$0xff] }
 0x209   : > { %2119 = vmatpush.msra.mxu2 %v360_v47  ;;  %2138 = vmatpush.msra.mxu3 %v496_v61  ;;  %v672_v29 = vld [vmem:[%s2421_s23 + $0xef8] sm:$0xff] }
 0x20a   : > { %2080 = vmatpush.msra.mxu0 %v991_v48  ;;  %2099 = vmatpush.msra.mxu1 %v232_v27  ;;  %v928_v30 = vld [vmem:[%s2421_s23 + $0x16f8] sm:$0xff] }
 0x20b   : > { %2120 = vmatpush.msra.mxu2 %v352_v17  ;;  %2139 = vmatpush.msra.mxu3 %v488_v50  ;;  %v1064_v31 = vld [vmem:[%s2421_s23 + $0x1b38] sm:$0xff] }
 0x20c   : > { %2081 = vmatpush.msra.mxu0 %v983_v52  ;;  %2100 = vmatpush.msra.mxu1 %v224_v3  ;;  %v800_v38 = vld [vmem:[%s2421_s23 + $0x12f8] sm:$0xff] }
 0x20d   : > { %2121 = vmatpush.msra.mxu2 %v344_v54  ;;  %2140 = vmatpush.msra.mxu3 %v480_v1  ;;  %v664_v10 = vld [vmem:[%s2421_s23 + $0xeb8] sm:$0xff] }
 0x20e   : > { %2082 = vmatpush.msra.mxu0 %v975_v6  ;;  %2101 = vmatpush.msra.mxu1 %v216_v53  ;;  %v920_v34 = vld [vmem:[%s2421_s23 + $0x16b8] sm:$0xff] }
 0x20f   : > { %2122 = vmatpush.msra.mxu2 %v336_v57  ;;  %2141 = vmatpush.msra.mxu3 %v472_v2  ;;  %v1056_v35 = vld [vmem:[%s2421_s23 + $0x1af8] sm:$0xff] }
 0x210   : > { %2083 = vmatpush.msra.mxu0 %v967_v59  ;;  %2102 = vmatpush.msra.mxu1 %v208_v60  ;;  %v792_v8 = vld [vmem:[%s2421_s23 + $0x12b8] sm:$0xff] }
 0x211   : > { %2123 = vmatpush.msra.mxu2 %v328_v62  ;;  %2142 = vmatpush.msra.mxu3 %v464_v0  ;;  %v656_v39 = vld [vmem:[%s2421_s23 + $0xe78] sm:$0xff] }
 0x212   : > { %2084 = vmatmul.f32.vlgmr.msra.gmra.mxu0 %v3258_v55  ;;  %2103 = vmatpush.msra.mxu1 %v200_v7  ;;  %v912_v14 = vld [vmem:[%s2421_s23 + $0x1678] sm:$0xff] }
 0x213   : > { %2188 = vmatpush.msrb.mxu2 %v960_v33  ;;  %2148 = vmatpush.msrb.mxu0 %v704_v5  ;;  %v1048_v40 = vld [vmem:[%s2421_s23 + $0x1ab8] sm:$0xff] }
 0x214   : > { %2143 = vmatpush.msra.mxu3 %v456_v4  ;;  %2168 = vmatpush.msrb.mxu1 %v832_v51  ;;  %v784_v44 = vld [vmem:[%s2421_s23 + $0x1278] sm:$0xff] }
 0x215   : > { %2149 = vmatpush.msrb.mxu0 %v696_v9  ;;  %2189 = vmatpush.msrb.mxu2 %v952_v11  ;;  %v648_v32 = vld [vmem:[%s2421_s23 + $0xe38] sm:$0xff]  ;;  %v1685_v11 = vpop.f32.mrf.mxu0 }
 0x216   : > { %2208 = vmatpush.msrb.mxu3 %v1088_v13  ;;  %2169 = vmatpush.msrb.mxu1 %v824_v15  ;;  %v904_v41 = vld [vmem:[%s2421_s23 + $0x1638] sm:$0xff]  ;;  %v1725_v13 = vpop.f32.mrf.mxu2  ;;  %v1705_v15 = vpop.f32.mrf.mxu1 }
 0x217   : > { %2150 = vmatpush.msrb.mxu0 %v688_v18  ;;  %2190 = vmatpush.msrb.mxu2 %v944_v36  ;;  %v1040_v42 = vld [vmem:[%s2421_s23 + $0x1a78] sm:$0xff]  ;;  %v1745_v18 = vpop.f32.mrf.mxu3 }
 0x218   : > { %2209 = vmatpush.msrb.mxu3 %v1080_v19  ;;  %2170 = vmatpush.msrb.mxu1 %v816_v23  ;;  %v776_v43 = vld [vmem:[%s2421_s23 + $0x1238] sm:$0xff] }
 0x219   : > { %2151 = vmatpush.msrb.mxu0 %v680_v24  ;;  %2191 = vmatpush.msrb.mxu2 %v936_v12  ;;  %v640_v22 = vld [vmem:[%s2421_s23 + $0xdf8] sm:$0xff] }
 0x21a   : > { %2210 = vmatpush.msrb.mxu3 %v1072_v58  ;;  %2171 = vmatpush.msrb.mxu1 %v808_v25  ;;  %v896_v37 = vld [vmem:[%s2421_s23 + $0x15f8] sm:$0xff] }
 0x21b   : > { %2152 = vmatpush.msrb.mxu0 %v672_v29  ;;  %2192 = vmatpush.msrb.mxu2 %v928_v30  ;;  %v1032_v16 = vld [vmem:[%s2421_s23 + $0x1a38] sm:$0xff] }
 0x21c   : > { %2211 = vmatpush.msrb.mxu3 %v1064_v31  ;;  %2172 = vmatpush.msrb.mxu1 %v800_v38  ;;  %v768_v45 = vld [vmem:[%s2421_s23 + $0x11f8] sm:$0xff] }
 0x21d   : > { %2153 = vmatpush.msrb.mxu0 %v664_v10  ;;  %2193 = vmatpush.msrb.mxu2 %v920_v34  ;;  %v632_v46 = vld [vmem:[%s2421_s23 + $0xdb8] sm:$0xff]  ;;  %v1765_v36 = vpop.f32.mrf.mxu0 }
 0x21e   : > { %2212 = vmatpush.msrb.mxu3 %v1056_v35  ;;  %2173 = vmatpush.msrb.mxu1 %v792_v8  ;;  %v888_v20 = vld [vmem:[%s2421_s23 + $0x15b8] sm:$0xff]  ;;  %v1805_v19 = vpop.f32.mrf.mxu2  ;;  %v1785_v23 = vpop.f32.mrf.mxu1  ;;  %v1706_v8 = vadd.f32 %v1705_v15, %v1685_v11 }
 0x21f   : > { %2154 = vmatpush.msrb.mxu0 %v656_v39  ;;  %2194 = vmatpush.msrb.mxu2 %v912_v14  ;;  %v1024_v47 = vld [vmem:[%s2421_s23 + $0x19f8] sm:$0xff]  ;;  %v1825_v24 = vpop.f32.mrf.mxu3 }
 0x220   : > { %2213 = vmatpush.msrb.mxu3 %v1048_v40  ;;  %2174 = vmatpush.msrb.mxu1 %v784_v44  ;;  %v760_v61 = vld [vmem:[%s2421_s23 + $0x11b8] sm:$0xff] }
 0x221   : > { %2155 = vmatpush.msrb.mxu0 %v648_v32  ;;  %2195 = vmatpush.msrb.mxu2 %v904_v41  ;;  %v624_v48 = vld [vmem:[%s2421_s23 + $0xd78] sm:$0xff]  ;;  %v1726_v41 = vadd.f32 %v1725_v13, %v1706_v8 }
 0x222   : > { %2214 = vmatpush.msrb.mxu3 %v1040_v42  ;;  %2175 = vmatpush.msrb.mxu1 %v776_v43  ;;  %v880_v27 = vld [vmem:[%s2421_s23 + $0x1578] sm:$0xff] }
 0x223   : > { %2156 = vmatpush.msrb.mxu0 %v640_v22  ;;  %2196 = vmatpush.msrb.mxu2 %v896_v37  ;;  %v1016_v17 = vld [vmem:[%s2421_s23 + $0x19b8] sm:$0xff] }
 0x224   : > { %2215 = vmatpush.msrb.mxu3 %v1032_v16  ;;  %2176 = vmatpush.msrb.mxu1 %v768_v45  ;;  %v616_v50 = vld [vmem:[%s2421_s23 + $0xd38] sm:$0xff]  ;;  %v1746_v45 = vadd.f32 %v1745_v18, %v1726_v41 }
 0x225   : > { %2157 = vmatpush.msrb.mxu0 %v632_v46  ;;  %2197 = vmatpush.msrb.mxu2 %v888_v20  ;;  %v752_v52 = vld [vmem:[%s2421_s23 + $0x1178] sm:$0xff]  ;;  %v1845_v12 = vpop.f32.mrf.mxu0 }
 0x226   : > { %2216 = vmatpush.msrb.mxu3 %v1024_v47  ;;  %2177 = vmatpush.msrb.mxu1 %v760_v61  ;;  %v872_v3 = vld [vmem:[%s2421_s23 + $0x1538] sm:$0xff] }
 0x227   : > { %2158 = vmatpush.msrb.mxu0 %v624_v48  ;;  %2198 = vmatpush.msrb.mxu2 %v880_v27  ;;  %v1008_v54 = vld [vmem:[%s2421_s23 + $0x1978] sm:$0xff] }
 0x228   : > { %2217 = vmatpush.msrb.mxu3 %v1016_v17  ;;  %2124 = vmatmul.f32.vlgmr.msra.gmra.mxu2 %v3329_v63  ;;  %v608_v1 = vld [vmem:[%s2421_s23 + $0xcf8] sm:$0xff]  ;;  %v1766_v17 = vadd.f32 %v1765_v36, %v1746_v45 }
 0x229   : > { %2159 = vmatpush.msrb.mxu0 %v616_v50  ;;  %2178 = vmatpush.msrb.mxu1 %v752_v52  ;;  %v744_v6 = vld [vmem:[%s2421_s23 + $0x1138] sm:$0xff] }
 0x22a   : > { %v864_v53 = vld [vmem:[%s2421_s23 + $0x14f8] sm:$0xff]  ;;  %2199 = vmatpush.msrb.mxu2 %v872_v3  ;;  %2218 = vmatpush.msrb.mxu3 %v1008_v54  ;;  %v1865_v25 = vpop.f32.mrf.mxu1 }
 0x22b   : > { %v1000_v57 = vld [vmem:[%s2421_s23 + $0x1938] sm:$0xff]  ;;  %2144 = vmatmul.f32.vlgmr.msra.gmra.mxu3 %v3348_v21  ;;  %2160 = vmatpush.msrb.mxu0 %v608_v1  ;;  %v1885_v58 = vpop.f32.mrf.mxu2  ;;  %v1786_v1 = vadd.f32 %v1785_v23, %v1766_v17 }
 0x22c   : > { %v600_v2 = vld [vmem:[%s2421_s23 + $0xcb8] sm:$0xff]  ;;  %2179 = vmatpush.msrb.mxu1 %v744_v6  ;;  %2200 = vmatpush.msrb.mxu2 %v864_v53 }
 0x22d   : > { %v736_v59 = vld [vmem:[%s2421_s23 + $0x10f8] sm:$0xff]  ;;  %2219 = vmatpush.msrb.mxu3 %v1000_v57  ;;  %2104 = vmatmul.f32.vlgmr.msra.gmra.mxu1 %v3321_v56 }
 0x22e   : > { %v856_v63 = vld [vmem:[%s2421_s23 + $0x14b8] sm:$0xff]  ;;  %2161 = vmatpush.msrb.mxu0 %v600_v2  ;;  %2180 = vmatpush.msrb.mxu1 %v736_v59 }
 0x22f   : > { %v992_v60 = vld [vmem:[%s2421_s23 + $0x18f8] sm:$0xff]  ;;  %2201 = vmatpush.msrb.mxu2 %v856_v63  ;;  %v1806_v63 = vadd.f32 %v1805_v19, %v1786_v1 }
 0x230   : > { %v592_v62 = vld [vmem:[%s2421_s23 + $0xc78] sm:$0xff]  ;;  %2220 = vmatpush.msrb.mxu3 %v992_v60 }
 0x231   : > { %v728_v0 = vld [vmem:[%s2421_s23 + $0x10b8] sm:$0xff]  ;;  %2162 = vmatpush.msrb.mxu0 %v592_v62 }
 0x232   : > { %v848_v21 = vld [vmem:[%s2421_s23 + $0x1478] sm:$0xff]  ;;  %2181 = vmatpush.msrb.mxu1 %v728_v0  ;;  %v190_v0 = vld [vmem:[#allocation2 + $0x8] sm:$0xff] }
 0x233   : > { %v984_v33 = vld [vmem:[%s2421_s23 + $0x18b8] sm:$0xff]  ;;  %2202 = vmatpush.msrb.mxu2 %v848_v21 }
 0x234   : > { %v584_v5 = vld [vmem:[%s2421_s23 + $0xc38] sm:$0xff]  ;;  %2221 = vmatpush.msrb.mxu3 %v984_v33 }
 0x235   : > { %v720_v7 = vld [vmem:[%s2421_s23 + $0x1078] sm:$0xff]  ;;  %2163 = vmatpush.msrb.mxu0 %v584_v5 }
 0x236   : > { %v840_v4 = vld [vmem:[%s2421_s23 + $0x1438] sm:$0xff]  ;;  %2182 = vmatpush.msrb.mxu1 %v720_v7  ;;  %2164 = vmatmul.f32.vlgmr.msrb.gmra.mxu0 %v3357_v28  ;;  %v1905_v28 = vpop.f32.mrf.mxu3 }
 0x237   : > { %v976_v51 = vld [vmem:[%s2421_s23 + $0x1878] sm:$0xff]  ;;  %2203 = vmatpush.msrb.mxu2 %v840_v4 }
 0x238   : > { %v712_v56 = vld [vmem:[%s2421_s23 + $0x1038] sm:$0xff]  ;;  %2222 = vmatpush.msrb.mxu3 %v976_v51  ;;  %2204 = vmatmul.f32.vlgmr.msrb.gmra.mxu2 %v3250_v49 }
 0x239   : > { %v968_v9 = vld [vmem:[%s2421_s23 + $0x1838] sm:$0xff]  ;;  %2183 = vmatpush.msrb.mxu1 %v712_v56 }
 0x23a   : > { %2223 = vmatpush.msrb.mxu3 %v968_v9  ;;  %2184 = vmatmul.f32.vlgmr.msrb.gmra.mxu1 %v3342_v26 }
 0x23b   : > { %2224 = vmatmul.f32.vlgmr.msrb.gmra.mxu3 %v3258_v55  ;;  %v1846_v55 = vadd.f32 %v1845_v12, %v1825_v24 }
 0x23d   : > { %v1866_v39 = vadd.f32 %v1865_v25, %v1846_v55 }
 0x23f   : > { %v1886_v42 = vadd.f32 %v1885_v58, %v1866_v39 }
 0x240   : > { %v1925_v29 = vpop.f32.mrf.mxu0 }
 0x241   : > { %v1906_v46 = vadd.f32 %v1905_v28, %v1886_v42 }
 0x243   : > { %v1945_v30 = vpop.f32.mrf.mxu1  ;;  %v1926_v47 = vadd.f32 %v1925_v29, %v1906_v46 }
 0x245   : > { %v1946_v50 = vadd.f32 %v1945_v30, %v1926_v47 }
 0x247   : > { %v2239_v2 = vrot.slane %v1946_v50, 6 }
 0x249   : > { %v2248_v21 = vsel %vm2242_vm0, %v1806_v63, %v2239_v2 }
 0x25c   : > { %v1965_v49 = vpop.f32.mrf.mxu2 }
 0x25d   : > { %v1985_v31 = vpop.f32.mrf.mxu3 }
 0x25e   : > { %v1986_v34 = vadd.f32 %v1985_v31, %v1965_v49 }
 0x272   : > { %v2045_v10 = vpop.f32.mrf.mxu2 }
 0x275   : > { %v2005_v38 = vpop.f32.mrf.mxu0 }
 0x276   : > { %v2006_v40 = vadd.f32 %v2005_v38, %v1986_v34 }
 0x278   : > { %v2025_v26 = vpop.f32.mrf.mxu1 }
 0x279   : > { %v2026_v22 = vadd.f32 %v2025_v26, %v2006_v40 }
 0x27b   : > { %v2046_v61 = vadd.f32 %v2045_v10, %v2026_v22 }
 0x27c   : > { %v2065_v35 = vpop.f32.mrf.mxu3 }
 0x27d   : > { %v2066_v52 = vadd.f32 %v2065_v35, %v2046_v61 }
 0x28f   : > { %v2085_v14 = vpop.f32.mrf.mxu0 }
 0x290   : > { %v2086_v6 = vadd.f32 %v2085_v14, %v2066_v52 }
 0x292   : > { %v2240_v60 = vrot.slane %v2086_v6, 4 }
 0x2aa   : > { %v2105_v44 = vpop.f32.mrf.mxu1 }
 0x2ab   : > { %v2125_v32 = vpop.f32.mrf.mxu2 }
 0x2ac   : > { %v2126_v43 = vadd.f32 %v2125_v32, %v2105_v44 }
 0x2ae   : > { %v2145_v37 = vpop.f32.mrf.mxu3 }
 0x2af   : > { %v2146_v16 = vadd.f32 %v2145_v37, %v2126_v43 }
 0x2b3   : > { %v2165_v20 = vpop.f32.mrf.mxu0 }
 0x2b4   : > { %v2166_v48 = vadd.f32 %v2165_v20, %v2146_v16 }
 0x2b7   : > { %v2185_v27 = vpop.f32.mrf.mxu1 }
 0x2b8   : > { %v2186_v3 = vadd.f32 %v2185_v27, %v2166_v48 }
 0x2bb   : > { %v2205_v54 = vpop.f32.mrf.mxu2 }
 0x2bc   : > { %v2206_v53 = vadd.f32 %v2205_v54, %v2186_v3 }
 0x2be   : > { %v2225_v57 = vpop.f32.mrf.mxu3 }
 0x2bf   : > { %v2226_v59 = vadd.f32 %v2225_v57, %v2206_v53 }
 0x2c1   : > { %v2241_v62 = vrot.slane %v2226_v59, 2 }
 0x2c3   : > { %v2249_v33 = vsel %vm2244_vm1, %v2240_v60, %v2241_v62  ;;  %2260 = sbr.rel (%p2345_p6) target bundleno = 726 (0x2d6), region = 40 }
 0x2c4   : > { %v2250_v5 = vsel %vm2246_vm2, %v2248_v21, %v2249_v33 }
 0x2c5   : > { %v2254_v7 = vadd.f32 %v2250_v5, %v190_v0 }
 0x2c7   : > { %2256 = vst [vmem:[#allocation2 + $0x8] sm:$0xff] %v2254_v7 }
 0x2c8   : > { %v2263_v4 = vld [vmem:[%s3498_s2] sm:$0xff]  ;;  %v2261_v12 = vld [vmem:[#allocation2] sm:$0xff] }
 0x2c9   : > { %v2265_v51 = vperm.slane %v2263_v4, 0  ;;  %v2266_v56 = vperm.slane %v2263_v4, 1  ;;  %v2267_v9 = vperm.slane %v2263_v4, 2  ;;  %v2268_v11 = vperm.slane %v2263_v4, 3 }
 0x2ca   : > { %v2269_v13 = vperm.slane %v2263_v4, 4  ;;  %v2270_v15 = vperm.slane %v2263_v4, 5  ;;  %v2271_v18 = vperm.slane %v2263_v4, 6  ;;  %v2272_v36 = vperm.slane %v2263_v4, 7 }
 0x2cb   : > { %v2273_v19 = vrot.slane %v2266_v56, 6  ;;  %v2274_v23 = vrot.slane %v2267_v9, 4  ;;  %v2275_v24 = vrot.slane %v2268_v11, 2 }
 0x2cc   : > { %v2276_v58 = vrot.slane %v2270_v15, 6  ;;  %v2277_v25 = vrot.slane %v2271_v18, 4  ;;  %v2278_v28 = vrot.slane %v2272_v36, 2 }
 0x2cd   : > { %v2279_v29 = vsel %vm2242_vm0, %v2265_v51, %v2273_v19  ;;  %v2280_v49 = vsel %vm2244_vm1, %v2274_v23, %v2275_v24 }
 0x2ce   : > { %v2262_v30 = vld [vmem:[#allocation2 + $0x8] sm:$0xff]  ;;  %v2281_v31 = vsel %vm2246_vm2, %v2279_v29, %v2280_v49  ;;  %v2282_v38 = vsel %vm2242_vm0, %v2269_v13, %v2276_v58  ;;  %v2283_v26 = vsel %vm2244_vm1, %v2277_v25, %v2278_v28 }
 0x2cf   : > { %v2287_v10 = vadd.f32 %v2281_v31, %v2261_v12  ;;  %v2284_v55 = vsel %vm2246_vm2, %v2282_v38, %v2283_v26 }
 0x2d0   : > { %v2288_v34 = vadd.f32 %v2284_v55, %v2262_v30 }
 0x2d1   : > { %vm2289_vm3 = vcmp.ge.f32.partialorder %v2287_v10, 0.0  ;;  %v2291_v35 = vmul.f32 0.02, %v2287_v10 }
 0x2d2   : > { %vm2290_vm4 = vcmp.ge.f32.partialorder %v2288_v34, 0.0  ;;  %v2292_v8 = vmul.f32 0.02, %v2288_v34 }
 0x2d3   : > { %v2293_v39 = vsel %vm2289_vm3, %v2287_v10, %v2291_v35 }
 0x2d4   : > { %2295 = vst [vmem:[%s3499_s3] sm:$0xff] %v2293_v39  ;;  %v2294_v14 = vsel %vm2290_vm4, %v2288_v34, %v2292_v8 }
 0x2d5   : > { %2296 = vst [vmem:[%s3499_s3 + $0x8] sm:$0xff] %v2294_v14 }
 0x2d6 PF: > { %s13_s12 = sadd.s32 1, %s2378_s12  }
 0x2d7   : > { %p10_p7 = scmp.ge.s32.totalorder %s13_s12, 9  }
 0x2d9   :  { %12 = sbr.rel (!%p10_p7) target bundleno = 1 (0x1), region = 70 }

// kernel: discriminator_forward.7
= control target key start
LH: loop header
LB: loop body
LE: loop exit
PB: predicated region body
PF: predicated region fallthrough
CT: control target
= control target key end

     0   :  { %s766_s1 = inlined_call_operand.vmem [shape: f32[1024,128], index: 1, kind: input, shape index: {}]   ;;  %s767_s0 = inlined_call_operand.vmem [shape: f32[2,1024], index: 0, kind: input, shape index: {}]   ;;  %s768_s2 = inlined_call_operand.vmem [shape: f32[1,128], index: 2, kind: input, shape index: {}]   ;;  %s769_s3 = inlined_call_operand.vmem [shape: f32[2,128], index: 3, kind: output, shape index: {}]  }
   0x1   :  { %v37_v0 = vld [vmem:[%s766_s1 + $0x78] sm:$0xff]  ;;  %v36_v2 = vld [vmem:[%s766_s1 + $0x70] sm:$0xff]  ;;  %v35_v6 = vld [vmem:[%s766_s1 + $0x68] sm:$0xff] }
   0x2   :  { %v69_v1 = vld [vmem:[%s766_s1 + $0x178] sm:$0xff]  ;;  %171 = vmatpush.msra.mxu0 %v37_v0  ;;  %v68_v4 = vld [vmem:[%s766_s1 + $0x170] sm:$0xff]  ;;  %v67_v8 = vld [vmem:[%s766_s1 + $0x168] sm:$0xff] }
   0x3   :  { %211 = vmatpush.msra.mxu2 %v69_v1  ;;  %v53_v3 = vld [vmem:[%s766_s1 + $0xf8] sm:$0xff]  ;;  %v52_v7 = vld [vmem:[%s766_s1 + $0xf0] sm:$0xff]  ;;  %v51_v10 = vld [vmem:[%s766_s1 + $0xe8] sm:$0xff] }
   0x4   :  { %v85_v5 = vld [vmem:[%s766_s1 + $0x1f8] sm:$0xff]  ;;  %191 = vmatpush.msra.mxu1 %v53_v3  ;;  %172 = vmatpush.msra.mxu0 %v36_v2  ;;  %v84_v9 = vld [vmem:[%s766_s1 + $0x1f0] sm:$0xff]  ;;  %v34_v11 = vld [vmem:[%s766_s1 + $0x60] sm:$0xff] }
   0x5   :  { %231 = vmatpush.msra.mxu3 %v85_v5  ;;  %212 = vmatpush.msra.mxu2 %v68_v4  ;;  %v66_v12 = vld [vmem:[%s766_s1 + $0x160] sm:$0xff]  ;;  %v83_v13 = vld [vmem:[%s766_s1 + $0x1e8] sm:$0xff]  ;;  %v33_v16 = vld [vmem:[%s766_s1 + $0x58] sm:$0xff] }
   0x6   :  { %192 = vmatpush.msra.mxu1 %v52_v7  ;;  %173 = vmatpush.msra.mxu0 %v35_v6  ;;  %v50_v14 = vld [vmem:[%s766_s1 + $0xe0] sm:$0xff]  ;;  %v65_v17 = vld [vmem:[%s766_s1 + $0x158] sm:$0xff]  ;;  %v32_v20 = vld [vmem:[%s766_s1 + $0x50] sm:$0xff] }
   0x7   :  { %232 = vmatpush.msra.mxu3 %v84_v9  ;;  %213 = vmatpush.msra.mxu2 %v67_v8  ;;  %v82_v15 = vld [vmem:[%s766_s1 + $0x1e0] sm:$0xff]  ;;  %v49_v18 = vld [vmem:[%s766_s1 + $0xd8] sm:$0xff]  ;;  %v64_v21 = vld [vmem:[%s766_s1 + $0x150] sm:$0xff] }
   0x8   :  { %193 = vmatpush.msra.mxu1 %v51_v10  ;;  %174 = vmatpush.msra.mxu0 %v34_v11  ;;  %v81_v19 = vld [vmem:[%s766_s1 + $0x1d8] sm:$0xff]  ;;  %v48_v22 = vld [vmem:[%s766_s1 + $0xd0] sm:$0xff]  ;;  %v31_v24 = vld [vmem:[%s766_s1 + $0x48] sm:$0xff] }
   0x9   :  { %233 = vmatpush.msra.mxu3 %v83_v13  ;;  %214 = vmatpush.msra.mxu2 %v66_v12  ;;  %v80_v23 = vld [vmem:[%s766_s1 + $0x1d0] sm:$0xff]  ;;  %v63_v25 = vld [vmem:[%s766_s1 + $0x148] sm:$0xff]  ;;  %v30_v28 = vld [vmem:[%s766_s1 + $0x40] sm:$0xff] }
   0xa   :  { %194 = vmatpush.msra.mxu1 %v50_v14  ;;  %175 = vmatpush.msra.mxu0 %v33_v16  ;;  %v47_v26 = vld [vmem:[%s766_s1 + $0xc8] sm:$0xff]  ;;  %v62_v29 = vld [vmem:[%s766_s1 + $0x140] sm:$0xff]  ;;  %v29_v32 = vld [vmem:[%s766_s1 + $0x38] sm:$0xff] }
   0xb   :  { %234 = vmatpush.msra.mxu3 %v82_v15  ;;  %215 = vmatpush.msra.mxu2 %v65_v17  ;;  %v79_v27 = vld [vmem:[%s766_s1 + $0x1c8] sm:$0xff]  ;;  %v46_v30 = vld [vmem:[%s766_s1 + $0xc0] sm:$0xff]  ;;  %v61_v33 = vld [vmem:[%s766_s1 + $0x138] sm:$0xff] }
   0xc   :  { %195 = vmatpush.msra.mxu1 %v49_v18  ;;  %176 = vmatpush.msra.mxu0 %v32_v20  ;;  %v78_v31 = vld [vmem:[%s766_s1 + $0x1c0] sm:$0xff]  ;;  %v45_v34 = vld [vmem:[%s766_s1 + $0xb8] sm:$0xff]  ;;  %v28_v36 = vld [vmem:[%s766_s1 + $0x30] sm:$0xff] }
   0xd   :  { %235 = vmatpush.msra.mxu3 %v81_v19  ;;  %216 = vmatpush.msra.mxu2 %v64_v21  ;;  %v77_v35 = vld [vmem:[%s766_s1 + $0x1b8] sm:$0xff]  ;;  %v60_v37 = vld [vmem:[%s766_s1 + $0x130] sm:$0xff]  ;;  %v27_v40 = vld [vmem:[%s766_s1 + $0x28] sm:$0xff] }
   0xe   :  { %196 = vmatpush.msra.mxu1 %v48_v22  ;;  %177 = vmatpush.msra.mxu0 %v31_v24  ;;  %v44_v38 = vld [vmem:[%s766_s1 + $0xb0] sm:$0xff]  ;;  %v59_v41 = vld [vmem:[%s766_s1 + $0x128] sm:$0xff]  ;;  %v26_v44 = vld [vmem:[%s766_s1 + $0x20] sm:$0xff] }
   0xf   :  { %236 = vmatpush.msra.mxu3 %v80_v23  ;;  %217 = vmatpush.msra.mxu2 %v63_v25  ;;  %v76_v39 = vld [vmem:[%s766_s1 + $0x1b0] sm:$0xff]  ;;  %v43_v42 = vld [vmem:[%s766_s1 + $0xa8] sm:$0xff]  ;;  %v58_v45 = vld [vmem:[%s766_s1 + $0x120] sm:$0xff] }
  0x10   :  { %197 = vmatpush.msra.mxu1 %v47_v26  ;;  %178 = vmatpush.msra.mxu0 %v30_v28  ;;  %v75_v43 = vld [vmem:[%s766_s1 + $0x1a8] sm:$0xff]  ;;  %v42_v46 = vld [vmem:[%s766_s1 + $0xa0] sm:$0xff]  ;;  %v25_v48 = vld [vmem:[%s766_s1 + $0x18] sm:$0xff] }
  0x11   :  { %237 = vmatpush.msra.mxu3 %v79_v27  ;;  %218 = vmatpush.msra.mxu2 %v62_v29  ;;  %v74_v47 = vld [vmem:[%s766_s1 + $0x1a0] sm:$0xff]  ;;  %v57_v49 = vld [vmem:[%s766_s1 + $0x118] sm:$0xff]  ;;  %v24_v52 = vld [vmem:[%s766_s1 + $0x10] sm:$0xff] }
  0x12   :  { %198 = vmatpush.msra.mxu1 %v46_v30  ;;  %179 = vmatpush.msra.mxu0 %v29_v32  ;;  %v41_v50 = vld [vmem:[%s766_s1 + $0x98] sm:$0xff]  ;;  %v56_v53 = vld [vmem:[%s766_s1 + $0x110] sm:$0xff]  ;;  %v23_v56 = vld [vmem:[%s766_s1 + $0x8] sm:$0xff] }
  0x13   :  { %238 = vmatpush.msra.mxu3 %v78_v31  ;;  %219 = vmatpush.msra.mxu2 %v61_v33  ;;  %v73_v51 = vld [vmem:[%s766_s1 + $0x198] sm:$0xff]  ;;  %v40_v54 = vld [vmem:[%s766_s1 + $0x90] sm:$0xff]  ;;  %v55_v57 = vld [vmem:[%s766_s1 + $0x108] sm:$0xff] }
  0x14   :  { %199 = vmatpush.msra.mxu1 %v45_v34  ;;  %180 = vmatpush.msra.mxu0 %v28_v36  ;;  %v72_v55 = vld [vmem:[%s766_s1 + $0x190] sm:$0xff]  ;;  %v39_v58 = vld [vmem:[%s766_s1 + $0x88] sm:$0xff]  ;;  %v22_v60 = vld [vmem:[%s766_s1] sm:$0xff] }
  0x15   :  { %239 = vmatpush.msra.mxu3 %v77_v35  ;;  %220 = vmatpush.msra.mxu2 %v60_v37  ;;  %v71_v59 = vld [vmem:[%s766_s1 + $0x188] sm:$0xff]  ;;  %v54_v61 = vld [vmem:[%s766_s1 + $0x100] sm:$0xff]  ;;  %v101_v62 = vld [vmem:[%s766_s1 + $0x278] sm:$0xff] }
  0x16   :  { %200 = vmatpush.msra.mxu1 %v44_v38  ;;  %181 = vmatpush.msra.mxu0 %v27_v40  ;;  %v133_v63 = vld [vmem:[%s766_s1 + $0x378] sm:$0xff]  ;;  %v38_v0 = vld [vmem:[%s766_s1 + $0x80] sm:$0xff]  ;;  %v100_v2 = vld [vmem:[%s766_s1 + $0x270] sm:$0xff] }
  0x17   :  { %240 = vmatpush.msra.mxu3 %v76_v39  ;;  %221 = vmatpush.msra.mxu2 %v59_v41  ;;  %v70_v1 = vld [vmem:[%s766_s1 + $0x180] sm:$0xff]  ;;  %v117_v3 = vld [vmem:[%s766_s1 + $0x2f8] sm:$0xff]  ;;  %v132_v4 = vld [vmem:[%s766_s1 + $0x370] sm:$0xff] }
  0x18   :  { %201 = vmatpush.msra.mxu1 %v43_v42  ;;  %182 = vmatpush.msra.mxu0 %v26_v44  ;;  %v149_v5 = vld [vmem:[%s766_s1 + $0x3f8] sm:$0xff]  ;;  %v99_v6 = vld [vmem:[%s766_s1 + $0x268] sm:$0xff]  ;;  %v116_v7 = vld [vmem:[%s766_s1 + $0x2f0] sm:$0xff] }
  0x19   :  { %241 = vmatpush.msra.mxu3 %v75_v43  ;;  %222 = vmatpush.msra.mxu2 %v58_v45  ;;  %v131_v8 = vld [vmem:[%s766_s1 + $0x368] sm:$0xff]  ;;  %v148_v9 = vld [vmem:[%s766_s1 + $0x3f0] sm:$0xff]  ;;  %v98_v10 = vld [vmem:[%s766_s1 + $0x260] sm:$0xff] }
  0x1a   :  { %202 = vmatpush.msra.mxu1 %v42_v46  ;;  %183 = vmatpush.msra.mxu0 %v25_v48  ;;  %v115_v11 = vld [vmem:[%s766_s1 + $0x2e8] sm:$0xff]  ;;  %v20_v12 = vld [vmem:[%s767_s0] sm:$0xff]  ;;  %v97_v15 = vld [vmem:[%s766_s1 + $0x258] sm:$0xff] }
  0x1b   :  { %242 = vmatpush.msra.mxu3 %v74_v47  ;;  %223 = vmatpush.msra.mxu2 %v57_v49  ;;  %v130_v13 = vld [vmem:[%s766_s1 + $0x360] sm:$0xff]  ;;  %v147_v14 = vld [vmem:[%s766_s1 + $0x3e8] sm:$0xff]  ;;  %152 = vst [vmem:[#allocation1] ss:$4 sm:$0xff] %v20_v12  ;;  %v129_v17 = vld [vmem:[%s766_s1 + $0x358] sm:$0xff] }
  0x1c   :  { %203 = vmatpush.msra.mxu1 %v41_v50  ;;  %184 = vmatpush.msra.mxu0 %v24_v52  ;;  %v114_v16 = vld [vmem:[%s766_s1 + $0x2e0] sm:$0xff]  ;;  %v96_v19 = vld [vmem:[%s766_s1 + $0x250] sm:$0xff]  ;;  %v113_v20 = vld [vmem:[%s766_s1 + $0x2d8] sm:$0xff] }
  0x1d   :  { %243 = vmatpush.msra.mxu3 %v73_v51  ;;  %224 = vmatpush.msra.mxu2 %v56_v53  ;;  %v146_v18 = vld [vmem:[%s766_s1 + $0x3e0] sm:$0xff]  ;;  %v128_v21 = vld [vmem:[%s766_s1 + $0x350] sm:$0xff]  ;;  %v145_v22 = vld [vmem:[%s766_s1 + $0x3d8] sm:$0xff] }
  0x1e   :  { %204 = vmatpush.msra.mxu1 %v40_v54  ;;  %185 = vmatpush.msra.mxu0 %v23_v56  ;;  %v95_v23 = vld [vmem:[%s766_s1 + $0x248] sm:$0xff]  ;;  %v112_v24 = vld [vmem:[%s766_s1 + $0x2d0] sm:$0xff]  ;;  %v94_v28 = vld [vmem:[%s766_s1 + $0x240] sm:$0xff] }
  0x1f   :  { %244 = vmatpush.msra.mxu3 %v72_v55  ;;  %225 = vmatpush.msra.mxu2 %v55_v57  ;;  %v127_v25 = vld [vmem:[%s766_s1 + $0x348] sm:$0xff]  ;;  %v144_v26 = vld [vmem:[%s766_s1 + $0x3d0] sm:$0xff]  ;;  %v126_v30 = vld [vmem:[%s766_s1 + $0x340] sm:$0xff] }
  0x20   :  { %205 = vmatpush.msra.mxu1 %v39_v58  ;;  %186 = vmatpush.msra.mxu0 %v22_v60  ;;  %v21_v27 = vld [vmem:[%s767_s0 + $0x8] sm:$0xff]  ;;  %v93_v32 = vld [vmem:[%s766_s1 + $0x238] sm:$0xff]  ;;  %v110_v33 = vld [vmem:[%s766_s1 + $0x2c0] sm:$0xff] }
  0x21   :  { %245 = vmatpush.msra.mxu3 %v71_v59  ;;  %226 = vmatpush.msra.mxu2 %v54_v61  ;;  %v111_v29 = vld [vmem:[%s766_s1 + $0x2c8] sm:$0xff]  ;;  %154 = vst [vmem:[#allocation1 + $0x20] ss:$4 sm:$0xff] %v21_v27  ;;  %v125_v34 = vld [vmem:[%s766_s1 + $0x338] sm:$0xff]  ;;  %v142_v35 = vld [vmem:[%s766_s1 + $0x3c0] sm:$0xff] }
  0x22   :  { %251 = vmatpush.msrb.mxu0 %v101_v62  ;;  %206 = vmatpush.msra.mxu1 %v38_v0  ;;  %v143_v31 = vld [vmem:[%s766_s1 + $0x3c8] sm:$0xff]  ;;  %v92_v36 = vld [vmem:[%s766_s1 + $0x230] sm:$0xff]  ;;  %v109_v37 = vld [vmem:[%s766_s1 + $0x2b8] sm:$0xff] }
  0x23   :  { %291 = vmatpush.msrb.mxu2 %v133_v63  ;;  %246 = vmatpush.msra.mxu3 %v70_v1  ;;  %v124_v38 = vld [vmem:[%s766_s1 + $0x330] sm:$0xff]  ;;  %v141_v39 = vld [vmem:[%s766_s1 + $0x3b8] sm:$0xff]  ;;  %v91_v40 = vld [vmem:[%s766_s1 + $0x228] sm:$0xff] }
  0x24   :  { %252 = vmatpush.msrb.mxu0 %v100_v2  ;;  %271 = vmatpush.msrb.mxu1 %v117_v3  ;;  %v108_v41 = vld [vmem:[%s766_s1 + $0x2b0] sm:$0xff]  ;;  %v123_v42 = vld [vmem:[%s766_s1 + $0x328] sm:$0xff]  ;;  %v90_v45 = vld [vmem:[%s766_s1 + $0x220] sm:$0xff] }
  0x25   :  { %292 = vmatpush.msrb.mxu2 %v132_v4  ;;  %311 = vmatpush.msrb.mxu3 %v149_v5  ;;  %v140_v43 = vld [vmem:[%s766_s1 + $0x3b0] sm:$0xff]  ;;  %v107_v46 = vld [vmem:[%s766_s1 + $0x2a8] sm:$0xff]  ;;  %v122_v47 = vld [vmem:[%s766_s1 + $0x320] sm:$0xff] }
  0x26   :  { %253 = vmatpush.msrb.mxu0 %v99_v6  ;;  %272 = vmatpush.msrb.mxu1 %v116_v7  ;;  %v157_v44 = vld.sshfl [vmem:[#allocation1 + $0x10] sm:$0xff pattern:$0x73625140]  ;;  %v139_v48 = vld [vmem:[%s766_s1 + $0x3a8] sm:$0xff]  ;;  %v89_v51 = vld [vmem:[%s766_s1 + $0x218] sm:$0xff] }
  0x27   :  { %293 = vmatpush.msrb.mxu2 %v131_v8  ;;  %312 = vmatpush.msrb.mxu3 %v148_v9  ;;  %v155_v49 = vld.sshfl [vmem:[#allocation1] sm:$0xff pattern:$0x73625140]  ;;  %v158_v50 = vld.sshfl [vmem:[#allocation1 + $0x18] sm:$0xff pattern:$0x73625140] }
  0x28   :  { %254 = vmatpush.msrb.mxu0 %v98_v10  ;;  %273 = vmatpush.msrb.mxu1 %v115_v11  ;;  %v106_v52 = vld [vmem:[%s766_s1 + $0x2a0] sm:$0xff]  ;;  %v121_v53 = vld [vmem:[%s766_s1 + $0x318] sm:$0xff]  ;;  %v156_v55 = vld.sshfl [vmem:[#allocation1 + $0x8] sm:$0xff pattern:$0x73625140]  ;;  %v349_v10 = vmov 0.0  }
  0x29   :  { %294 = vmatpush.msrb.mxu2 %v130_v13  ;;  %313 = vmatpush.msrb.mxu3 %v147_v14  ;;  %v138_v54 = vld [vmem:[%s766_s1 + $0x3a0] sm:$0xff]  ;;  %v88_v56 = vld [vmem:[%s766_s1 + $0x210] sm:$0xff]  ;;  %v105_v57 = vld [vmem:[%s766_s1 + $0x298] sm:$0xff]  ;;  %18 = vst [vmem:[#allocation2] sm:$0x3] %v349_v10 }
  0x2a   :  { %255 = vmatpush.msrb.mxu0 %v97_v15  ;;  %274 = vmatpush.msrb.mxu1 %v114_v16  ;;  %v120_v58 = vld [vmem:[%s766_s1 + $0x310] sm:$0xff]  ;;  %v137_v59 = vld [vmem:[%s766_s1 + $0x398] sm:$0xff]  ;;  %v87_v60 = vld [vmem:[%s766_s1 + $0x208] sm:$0xff] }
  0x2b   :  { %295 = vmatpush.msrb.mxu2 %v129_v17  ;;  %314 = vmatpush.msrb.mxu3 %v146_v18  ;;  %v104_v61 = vld [vmem:[%s766_s1 + $0x290] sm:$0xff]  ;;  %v119_v62 = vld [vmem:[%s766_s1 + $0x308] sm:$0xff]  ;;  %v86_v0 = vld [vmem:[%s766_s1 + $0x200] sm:$0xff] }
  0x2c   :  { %256 = vmatpush.msrb.mxu0 %v96_v19  ;;  %275 = vmatpush.msrb.mxu1 %v113_v20  ;;  %v136_v63 = vld [vmem:[%s766_s1 + $0x390] sm:$0xff]  ;;  %v103_v1 = vld [vmem:[%s766_s1 + $0x288] sm:$0xff]  ;;  %v118_v2 = vld [vmem:[%s766_s1 + $0x300] sm:$0xff] }
  0x2d   :  { %296 = vmatpush.msrb.mxu2 %v128_v21  ;;  %315 = vmatpush.msrb.mxu3 %v145_v22  ;;  %v135_v3 = vld [vmem:[%s766_s1 + $0x388] sm:$0xff]  ;;  %v159_v4 = vld.sshfl [vmem:[#allocation1 + $0x20] sm:$0xff pattern:$0x73625140] }
  0x2e   :  { %257 = vmatpush.msrb.mxu0 %v95_v23  ;;  %276 = vmatpush.msrb.mxu1 %v112_v24  ;;  %v161_v5 = vld.sshfl [vmem:[#allocation1 + $0x30] sm:$0xff pattern:$0x73625140]  ;;  %v102_v6 = vld [vmem:[%s766_s1 + $0x280] sm:$0xff] }
  0x2f   :  { %297 = vmatpush.msrb.mxu2 %v127_v25  ;;  %316 = vmatpush.msrb.mxu3 %v144_v26  ;;  %v134_v7 = vld [vmem:[%s766_s1 + $0x380] sm:$0xff]  ;;  %v160_v8 = vld.sshfl [vmem:[#allocation1 + $0x28] sm:$0xff pattern:$0x73625140] }
  0x30   :  { %258 = vmatpush.msrb.mxu0 %v94_v28  ;;  %277 = vmatpush.msrb.mxu1 %v111_v29  ;;  %v162_v9 = vld.sshfl [vmem:[#allocation1 + $0x38] sm:$0xff pattern:$0x73625140]  ;;  %v19_v24 = vld [vmem:[#allocation2] sm:$0x3] }
  0x31   :  { %298 = vmatpush.msrb.mxu2 %v126_v30  ;;  %317 = vmatpush.msrb.mxu3 %v143_v31  ;;  %v348_v28 = vld [vmem:[%s768_s2] ss:$0 sm:$0xff] }
  0x32   :  { %259 = vmatpush.msrb.mxu0 %v93_v32  ;;  %278 = vmatpush.msrb.mxu1 %v110_v33 }
  0x33   :  { %299 = vmatpush.msrb.mxu2 %v125_v34  ;;  %318 = vmatpush.msrb.mxu3 %v142_v35 }
  0x34   :  { %260 = vmatpush.msrb.mxu0 %v92_v36  ;;  %279 = vmatpush.msrb.mxu1 %v109_v37 }
  0x35   :  { %300 = vmatpush.msrb.mxu2 %v124_v38  ;;  %319 = vmatpush.msrb.mxu3 %v141_v39 }
  0x36   :  { %261 = vmatpush.msrb.mxu0 %v91_v40  ;;  %280 = vmatpush.msrb.mxu1 %v108_v41 }
  0x37   :  { %301 = vmatpush.msrb.mxu2 %v123_v42  ;;  %320 = vmatpush.msrb.mxu3 %v140_v43 }
  0x38   :  { %227 = vmatmul.f32.vlgmr.msra.gmra.mxu2 %v157_v44  ;;  %262 = vmatpush.msrb.mxu0 %v90_v45 }
  0x39   :  { %281 = vmatpush.msrb.mxu1 %v107_v46  ;;  %302 = vmatpush.msrb.mxu2 %v122_v47 }
  0x3a   :  { %321 = vmatpush.msrb.mxu3 %v139_v48  ;;  %187 = vmatmul.f32.vlgmr.msra.gmra.mxu0 %v155_v49 }
  0x3b   :  { %247 = vmatmul.f32.vlgmr.msra.gmra.mxu3 %v158_v50  ;;  %263 = vmatpush.msrb.mxu0 %v89_v51 }
  0x3c   :  { %282 = vmatpush.msrb.mxu1 %v106_v52  ;;  %303 = vmatpush.msrb.mxu2 %v121_v53 }
  0x3d   :  { %322 = vmatpush.msrb.mxu3 %v138_v54  ;;  %207 = vmatmul.f32.vlgmr.msra.gmra.mxu1 %v156_v55 }
  0x3e   :  { %264 = vmatpush.msrb.mxu0 %v88_v56  ;;  %283 = vmatpush.msrb.mxu1 %v105_v57 }
  0x3f   :  { %304 = vmatpush.msrb.mxu2 %v120_v58  ;;  %323 = vmatpush.msrb.mxu3 %v137_v59 }
  0x40   :  { %265 = vmatpush.msrb.mxu0 %v87_v60  ;;  %284 = vmatpush.msrb.mxu1 %v104_v61 }
  0x41   :  { %305 = vmatpush.msrb.mxu2 %v119_v62  ;;  %324 = vmatpush.msrb.mxu3 %v136_v63 }
  0x42   :  { %266 = vmatpush.msrb.mxu0 %v86_v0  ;;  %285 = vmatpush.msrb.mxu1 %v103_v1 }
  0x43   :  { %306 = vmatpush.msrb.mxu2 %v118_v2  ;;  %325 = vmatpush.msrb.mxu3 %v135_v3 }
  0x44   :  { %267 = vmatmul.f32.vlgmr.msrb.gmra.mxu0 %v159_v4  ;;  %307 = vmatmul.f32.vlgmr.msrb.gmra.mxu2 %v161_v5 }
  0x45   :  { %286 = vmatpush.msrb.mxu1 %v102_v6  ;;  %326 = vmatpush.msrb.mxu3 %v134_v7 }
  0x46   :  { %287 = vmatmul.f32.vlgmr.msrb.gmra.mxu1 %v160_v8  ;;  %327 = vmatmul.f32.vlgmr.msrb.gmra.mxu3 %v162_v9 }
  0xb7   :  { %v188_v11 = vpop.f32.mrf.mxu0 }
  0xba   :  { %v208_v12 = vpop.f32.mrf.mxu1 }
  0xbb   :  { %v209_v13 = vadd.f32 %v208_v12, %v188_v11  ;;  %v228_v14 = vpop.f32.mrf.mxu2 }
  0xbd   :  { %v229_v15 = vadd.f32 %v228_v14, %v209_v13 }
  0xbe   :  { %v248_v16 = vpop.f32.mrf.mxu3 }
  0xbf   :  { %v249_v17 = vadd.f32 %v248_v16, %v229_v15 }
  0xc1   :  { %v268_v18 = vpop.f32.mrf.mxu0 }
  0xc2   :  { %v269_v19 = vadd.f32 %v268_v18, %v249_v17 }
  0xc3   :  { %v288_v20 = vpop.f32.mrf.mxu1 }
  0xc4   :  { %v289_v21 = vadd.f32 %v288_v20, %v269_v19 }
  0xc7   :  { %v308_v22 = vpop.f32.mrf.mxu2 }
  0xc8   :  { %v309_v23 = vadd.f32 %v308_v22, %v289_v21 }
  0xc9   :  { %v328_v25 = vpop.f32.mrf.mxu3 }
  0xca   :  { %v329_v26 = vadd.f32 %v328_v25, %v309_v23 }
  0xcc   :  { %v331_v27 = vadd.f32 %v329_v26, %v19_v24 }
  0xce   :  { %332 = vst [vmem:[#allocation2] sm:$0x3] %v331_v27 }
  0xd5   :  { %v336_v29 = vld [vmem:[#allocation2] sm:$0x3] }
  0xd6   :  { %v341_v30 = vadd.f32 %v348_v28, %v336_v29 }
  0xd8   :  { %342 = vst [vmem:[%s769_s3] sm:$0x3] %v341_v30 }

</bundles_post_ra>
